<compile_context>
chip_gen: v5e
topology: v5e:2x2
jax: 0.10.0
libtpu: 0.0.40
codegen_flags: <defaults>
</compile_context>

<pallas_src>
import jax
import jax.numpy as jnp
from jax import lax
from jax.experimental import pallas as pl
from jax.experimental.pallas import tpu as pltpu

LANES = 128


def _round_up(x, m):
    return (x + m - 1) // m * m


def arm_kernel(x_ref, w9_ref, bn1_s_ref, bn1_b_ref, wa_ref, bn2_s_ref, bn2_b_ref,
               out_ref, xp_s, xsh_s, feat_s):
    """One image per grid step.

    x_ref   : (1, H, W, Cin)     input block
    w9_ref  : (9*Cp, Cop)        conv3x3 weight, taps kw-major (k = dx*3 + dy)
    bn1_*   : (1, Cop)           folded BN scale / bias (first BN)
    wa_ref  : (Cop, Cop)         1x1 conv weight (Cin, Cout), lane-padded
    bn2_*   : (1, Cop)           folded BN scale / bias (bn_atten)
    out_ref : (1, H, W, Cop)     lane-dense output block (Cop % 128 == 0)
    xp_s    : (H+2, W+2, Cp)     VMEM halo + channel-pad scratch (matmul dtype)
    xsh_s   : (H+2, W, Cp)       VMEM dx-shifted slab scratch (reused 3x per step)
    feat_s  : (H*W, Cop)         VMEM f32 scratch for relu(bn(conv3x3(x)))
    """
    _, H, W, Cin = x_ref.shape
    Cp = xp_s.shape[-1]
    Cop = out_ref.shape[-1]
    M = H * W
    mm = xp_s.dtype

    # ---- halo ring (+ pad-lane) zeroing only; interior is fully overwritten -------
    # Pad input channels must still be finite: the matching weight rows are zero,
    # but 0 * NaN from uninitialized VMEM would poison the accumulator.
    if Cin < Cp:                                   # static (trace-time) condition
        xp_s[:, :, Cin:] = jnp.zeros((H + 2, W + 2, Cp - Cin), mm)
    xp_s[0:1, :, :] = jnp.zeros((1, W + 2, Cp), mm)
    xp_s[H + 1:H + 2, :, :] = jnp.zeros((1, W + 2, Cp), mm)
    xp_s[:, 0:1, :] = jnp.zeros((H + 2, 1, Cp), mm)
    xp_s[:, W + 1:W + 2, :] = jnp.zeros((H + 2, 1, Cp), mm)
    # Interior (done every step; no program_id gating -> megacore-split safe).
    xp_s[1:H + 1, 1:W + 1, :Cin] = x_ref[0].astype(mm)

    # ---- 3x3 conv: 9 accumulated MXU dots; dx sublane-shift hoisted (3 copies) ----
    acc = None
    for dx in range(3):
        xsh_s[...] = xp_s[:, dx:dx + W, :]          # the only relayout copy per dx
        for dy in range(3):                         # dy slice of the slab is free
            k = dx * 3 + dy                         # matches kw-major weight layout
            a = xsh_s[dy:dy + H, :, :].reshape(M, Cp)     # W % 8 == 0 -> cheap collapse
            t = jnp.dot(a, w9_ref[k * Cp:(k + 1) * Cp, :],
                        preferred_element_type=jnp.float32)
            acc = t if acc is None else acc + t     # f32 accumulation

    # ---- folded BN + ReLU (f32, VPU); stage feat once in VMEM ---------------------
    feat = jnp.maximum(acc * bn1_s_ref[...] + bn1_b_ref[...], 0.0)   # (M, Cop)
    feat_s[...] = feat

    # ---- global average pool + 1x1 conv (channel matmul) + BN + sigmoid -----------
    pooled = jnp.sum(feat, axis=0, keepdims=True) * (1.0 / M)        # (1, Cop) mean
    atten = jnp.dot(pooled.astype(wa_ref.dtype), wa_ref[...],
                    preferred_element_type=jnp.float32)
    atten = jax.nn.sigmoid(atten * bn2_s_ref[...] + bn2_b_ref[...])  # (1, Cop)

    # ---- channel re-weighting; full-lane (128-multiple) store ----------------------
    out = feat_s[...] * atten                                        # (M, Cop)
    out_ref[0] = out.reshape(H, W, Cop).astype(out_ref.dtype)


def prepare_arm_params(w3_hwio, bn1_scale, bn1_bias, w1_io, bn2_scale, bn2_bias,
                       *, matmul_dtype=jnp.bfloat16):
    """Per-module (one-time) weight / BN preparation, hoisted out of the forward.

    w3_hwio: (3, 3, Cin, Cout); w1_io: (Cout, Cout) laid out as (in, out).
    """
    Cin, Cout = w3_hwio.shape[2], w3_hwio.shape[3]
    Cp, Cop = _round_up(Cin, LANES), _round_up(Cout, LANES)
    f32 = jnp.float32
    # conv3x3 weight: lane-pad channels, reorder taps kw-major (k = kw*3 + kh) to
    # match the dx-outer loop in the kernel, flatten to (9*Cp, Cop).
    w3p = jnp.zeros((3, 3, Cp, Cop), f32).at[:, :, :Cin, :Cout].set(w3_hwio.astype(f32))
    w9 = jnp.transpose(w3p, (1, 0, 2, 3)).reshape(9 * Cp, Cop).astype(matmul_dtype)
    wa = jnp.zeros((Cop, Cop), f32).at[:Cout, :Cout].set(w1_io.astype(f32)).astype(matmul_dtype)
    # Folded BN params, lane-padded with zeros (padded channels stay exactly zero).
    bn1_s = jnp.zeros((1, Cop), f32).at[0, :Cout].set(bn1_scale.astype(f32))
    bn1_b = jnp.zeros((1, Cop), f32).at[0, :Cout].set(bn1_bias.astype(f32))
    bn2_s = jnp.zeros((1, Cop), f32).at[0, :Cout].set(bn2_scale.astype(f32))
    bn2_b = jnp.zeros((1, Cop), f32).at[0, :Cout].set(bn2_bias.astype(f32))
    return dict(w9=w9, wa=wa, bn1_s=bn1_s, bn1_b=bn1_b, bn2_s=bn2_s, bn2_b=bn2_b,
                Cin=Cin, Cout=Cout, Cp=Cp, Cop=Cop, matmul_dtype=matmul_dtype)


def attention_refinement_pallas(x_nhwc, params, *, out_dtype=jnp.float32):
    """x_nhwc: (N, H, W, Cin). Returns (N, H, W, Cout) in out_dtype."""
    N, H, W, Cin = x_nhwc.shape
    assert Cin == params["Cin"], "input channels do not match prepared params"
    assert W % 8 == 0, "W must be a multiple of 8 (sublane-aligned in-kernel reshapes)"
    Cp, Cop, Cout = params["Cp"], params["Cop"], params["Cout"]
    mm = params["matmul_dtype"]
    mm_b = jnp.dtype(mm).itemsize
    out_b = jnp.dtype(out_dtype).itemsize
    x_b = jnp.dtype(x_nhwc.dtype).itemsize

    # VMEM budget derived from actual buffers (double-buffered I/O blocks, weights
    # conservatively counted twice, explicit scratches, headroom for the f32
    # accumulator / elementwise temporaries), instead of a hardcoded 32 MiB.
    need = (2 * H * W * Cin * x_b
            + 2 * H * W * Cop * out_b
            + 2 * ((9 * Cp * Cop + Cop * Cop) * mm_b + 4 * Cop * 4)
            + ((H + 2) * (W + 2) + (H + 2) * W) * Cp * mm_b
            + H * W * Cop * 4
            + 2 * H * W * Cop * 4)
    vmem_limit = int(min(max(1.5 * need, 16 * 1024 * 1024), 100 * 1024 * 1024))

    grid_spec = pltpu.PrefetchScalarGridSpec(
        num_scalar_prefetch=0,
        grid=(N,),                                   # 1 image / step: >= N pipeline
        in_specs=[                                   # steps; even N -> 2 TCs on v7x
            pl.BlockSpec((1, H, W, Cin), lambda n: (n, 0, 0, 0)),
            pl.BlockSpec((9 * Cp, Cop), lambda n: (0, 0)),
            pl.BlockSpec((1, Cop), lambda n: (0, 0)),
            pl.BlockSpec((1, Cop), lambda n: (0, 0)),
            pl.BlockSpec((Cop, Cop), lambda n: (0, 0)),
            pl.BlockSpec((1, Cop), lambda n: (0, 0)),
            pl.BlockSpec((1, Cop), lambda n: (0, 0)),
        ],
        out_specs=pl.BlockSpec((1, H, W, Cop), lambda n: (n, 0, 0, 0)),
        scratch_shapes=[
            pltpu.VMEM((H + 2, W + 2, Cp), mm),      # halo / channel-pad scratch
            pltpu.VMEM((H + 2, W, Cp), mm),          # dx-shifted slab (reused 3x)
            pltpu.VMEM((H * W, Cop), jnp.float32),   # staged feat
        ],
    )

    out_padded = pl.pallas_call(
        arm_kernel,
        out_shape=jax.ShapeDtypeStruct((N, H, W, Cop), out_dtype),
        grid_spec=grid_spec,
        compiler_params=pltpu.CompilerParams(
            dimension_semantics=("parallel",),
            vmem_limit_bytes=vmem_limit),
    )(x_nhwc, params["w9"], params["bn1_s"], params["bn1_b"],
      params["wa"], params["bn2_s"], params["bn2_b"])

    if Cop == Cout:
        return out_padded             # no lane padding -> no extra HBM slice/copy
    return out_padded[..., :Cout]


def fold_bn(gamma, beta, mean, var, eps=1e-5):
    scale = gamma / jnp.sqrt(var + eps)
    bias = beta - mean * scale
    return scale, bias


def reference_jax(x_nchw, w3_oihw, bn1_s, bn1_b, w1_oi, bn2_s, bn2_b):
    """Pure-JAX NCHW reference mirroring the PyTorch forward (eval-mode BN)."""
    feat = lax.conv_general_dilated(
        x_nchw, w3_oihw, window_strides=(1, 1), padding=((1, 1), (1, 1)),
        dimension_numbers=("NCHW", "OIHW", "NCHW"))
    feat = feat * bn1_s[None, :, None, None] + bn1_b[None, :, None, None]
    feat = jnp.maximum(feat, 0.0)
    atten = jnp.mean(feat, axis=(2, 3), keepdims=True)        # (N, C, 1, 1)
    atten = jnp.einsum("nchw,oc->nohw", atten, w1_oi)
    atten = atten * bn2_s[None, :, None, None] + bn2_b[None, :, None, None]
    atten = jax.nn.sigmoid(atten)
    return feat * atten


if __name__ == "__main__":
    N, Cin, Cout, H, W = 2, 4, 8, 16, 16

    key = jax.random.PRNGKey(0)
    kx, kw3, kw1, kg1, kb1, kg2, kb2 = jax.random.split(key, 7)

    # input (PyTorch layout NCHW)
    x_nchw = jax.random.normal(kx, (N, Cin, H, W), jnp.float32)

    # conv weights: kaiming_normal_(a=1) ~ normal with std = sqrt(1 / fan_in)
    fan3 = Cin * 3 * 3
    w3_oihw = jax.random.normal(kw3, (Cout, Cin, 3, 3), jnp.float32) * (1.0 / fan3) ** 0.5
    fan1 = Cout * 1 * 1
    w1_oi = jax.random.normal(kw1, (Cout, Cout), jnp.float32) * (1.0 / fan1) ** 0.5

    # BatchNorm params (running stats: mean=0, var=1; affine perturbed deterministically)
    gamma1 = 1.0 + 0.1 * jax.random.normal(kg1, (Cout,), jnp.float32)
    beta1 = 0.1 * jax.random.normal(kb1, (Cout,), jnp.float32)
    gamma2 = 1.0 + 0.1 * jax.random.normal(kg2, (Cout,), jnp.float32)
    beta2 = 0.1 * jax.random.normal(kb2, (Cout,), jnp.float32)
    mean0 = jnp.zeros((Cout,), jnp.float32)
    var1 = jnp.ones((Cout,), jnp.float32)

    bn1_s, bn1_b = fold_bn(gamma1, beta1, mean0, var1)
    bn2_s, bn2_b = fold_bn(gamma2, beta2, mean0, var1)

    # convert to kernel layout: NHWC input, HWIO conv3x3 weight, (Cin, Cout) 1x1 weight
    x_nhwc = jnp.transpose(x_nchw, (0, 2, 3, 1))
    w3_hwio = jnp.transpose(w3_oihw, (2, 3, 1, 0))
    w1_io = jnp.transpose(w1_oi, (1, 0))

    ref = reference_jax(x_nchw, w3_oihw, bn1_s, bn1_b, w1_oi, bn2_s, bn2_b)

    # f32 MXU path (strict numerical check)
    params_f32 = prepare_arm_params(w3_hwio, bn1_s, bn1_b, w1_io, bn2_s, bn2_b,
                                    matmul_dtype=jnp.float32)
    out_f32 = jax.block_until_ready(attention_refinement_pallas(x_nhwc, params_f32))
    out_f32_nchw = jnp.transpose(out_f32, (0, 3, 1, 2))
    assert out_f32_nchw.shape == (N, Cout, H, W)
    assert jnp.allclose(out_f32_nchw, ref, atol=1e-4, rtol=1e-4), "f32 mismatch vs reference"

    # bf16 MXU path (default; v5e/v6e/v7x-friendly), f32 accumulation; looser tolerance
    params_bf16 = prepare_arm_params(w3_hwio, bn1_s, bn1_b, w1_io, bn2_s, bn2_b,
                                     matmul_dtype=jnp.bfloat16)
    out_bf16 = jax.block_until_ready(attention_refinement_pallas(x_nhwc, params_bf16))
    out_bf16_nchw = jnp.transpose(out_bf16, (0, 3, 1, 2))
    assert jnp.allclose(out_bf16_nchw, ref, atol=5e-2, rtol=5e-2), "bf16 mismatch vs reference"

    print("KERNEL_OK")
</pallas_src>

<mosaic_0001>
module attributes {stable_mosaic.version = 11 : i64} {
  func.func @arm_kernel(%arg0: i32, %arg1: memref<1x16x16x4xf32, #tpu.memory_space<vmem>>, %arg2: memref<1152x128xf32, #tpu.memory_space<vmem>>, %arg3: memref<1x128xf32, #tpu.memory_space<vmem>>, %arg4: memref<1x128xf32, #tpu.memory_space<vmem>>, %arg5: memref<128x128xf32, #tpu.memory_space<vmem>>, %arg6: memref<1x128xf32, #tpu.memory_space<vmem>>, %arg7: memref<1x128xf32, #tpu.memory_space<vmem>>, %arg8: memref<1x16x16x128xf32, #tpu.memory_space<vmem>>, %arg9: memref<18x18x128xf32, #tpu.memory_space<vmem>>, %arg10: memref<18x16x128xf32, #tpu.memory_space<vmem>>, %arg11: memref<256x128xf32, #tpu.memory_space<vmem>>) attributes {dimension_semantics = [#tpu.dimension_semantics<parallel>], iteration_bounds = array<i64: 2>, scalar_prefetch = 0 : i64, scratch_operands = 3 : i64, tpu.core_type = #tpu.core_type<tc>, window_params = [{transform_indices = @transform_0, window_bounds = array<i64: 1, 16, 16, 4>}, {pipeline_mode = #tpu.pipeline_mode<synchronous>, transform_indices = @transform_1, window_bounds = array<i64: 1152, 128>}, {pipeline_mode = #tpu.pipeline_mode<synchronous>, transform_indices = @transform_2, window_bounds = array<i64: 1, 128>}, {pipeline_mode = #tpu.pipeline_mode<synchronous>, transform_indices = @transform_3, window_bounds = array<i64: 1, 128>}, {pipeline_mode = #tpu.pipeline_mode<synchronous>, transform_indices = @transform_4, window_bounds = array<i64: 128, 128>}, {pipeline_mode = #tpu.pipeline_mode<synchronous>, transform_indices = @transform_5, window_bounds = array<i64: 1, 128>}, {pipeline_mode = #tpu.pipeline_mode<synchronous>, transform_indices = @transform_6, window_bounds = array<i64: 1, 128>}, {transform_indices = @transform_7, window_bounds = array<i64: 1, 16, 16, 128>}]} {
    %cst = arith.constant 0.000000e+00 : f32
    %0 = vector.broadcast %cst : f32 to vector<18x18x124xf32>
    %c0 = arith.constant 0 : index
    %c0_0 = arith.constant 0 : index
    %c4 = arith.constant 4 : index
    %1 = vector.load %arg9[%c0, %c0_0, %c4] : memref<18x18x128xf32, #tpu.memory_space<vmem>>, vector<18x18x124xf32>
    tpu.vector_store %arg9[%c0, %c0_0, %c4], %0 {strides = array<i32>} : memref<18x18x128xf32, #tpu.memory_space<vmem>>, vector<18x18x124xf32>,
    %cst_1 = arith.constant 0.000000e+00 : f32
    %2 = vector.broadcast %cst_1 : f32 to vector<1x18x128xf32>
    %c0_2 = arith.constant 0 : index
    %c0_3 = arith.constant 0 : index
    %c0_4 = arith.constant 0 : index
    %3 = vector.load %arg9[%c0_2, %c0_3, %c0_4] : memref<18x18x128xf32, #tpu.memory_space<vmem>>, vector<1x18x128xf32>
    tpu.vector_store %arg9[%c0_2, %c0_3, %c0_4], %2 {strides = array<i32>} : memref<18x18x128xf32, #tpu.memory_space<vmem>>, vector<1x18x128xf32>,
    %cst_5 = arith.constant 0.000000e+00 : f32
    %4 = vector.broadcast %cst_5 : f32 to vector<1x18x128xf32>
    %c17 = arith.constant 17 : index
    %c0_6 = arith.constant 0 : index
    %c0_7 = arith.constant 0 : index
    %5 = vector.load %arg9[%c17, %c0_6, %c0_7] : memref<18x18x128xf32, #tpu.memory_space<vmem>>, vector<1x18x128xf32>
    tpu.vector_store %arg9[%c17, %c0_6, %c0_7], %4 {strides = array<i32>} : memref<18x18x128xf32, #tpu.memory_space<vmem>>, vector<1x18x128xf32>,
    %cst_8 = arith.constant 0.000000e+00 : f32
    %6 = vector.broadcast %cst_8 : f32 to vector<18x1x128xf32>
    %c0_9 = arith.constant 0 : index
    %c0_10 = arith.constant 0 : index
    %c0_11 = arith.constant 0 : index
    %7 = vector.load %arg9[%c0_9, %c0_10, %c0_11] : memref<18x18x128xf32, #tpu.memory_space<vmem>>, vector<18x1x128xf32>
    tpu.vector_store %arg9[%c0_9, %c0_10, %c0_11], %6 {strides = array<i32>} : memref<18x18x128xf32, #tpu.memory_space<vmem>>, vector<18x1x128xf32>,
    %cst_12 = arith.constant 0.000000e+00 : f32
    %8 = vector.broadcast %cst_12 : f32 to vector<18x1x128xf32>
    %c0_13 = arith.constant 0 : index
    %c17_14 = arith.constant 17 : index
    %c0_15 = arith.constant 0 : index
    %9 = vector.load %arg9[%c0_13, %c17_14, %c0_15] : memref<18x18x128xf32, #tpu.memory_space<vmem>>, vector<18x1x128xf32>
    tpu.vector_store %arg9[%c0_13, %c17_14, %c0_15], %8 {strides = array<i32>} : memref<18x18x128xf32, #tpu.memory_space<vmem>>, vector<18x1x128xf32>,
    %c0_16 = arith.constant 0 : index
    %c0_17 = arith.constant 0 : index
    %c0_18 = arith.constant 0 : index
    %c0_19 = arith.constant 0 : index
    %10 = vector.load %arg1[%c0_16, %c0_17, %c0_18, %c0_19] : memref<1x16x16x4xf32, #tpu.memory_space<vmem>>, vector<1x16x16x4xf32>
    %11 = vector.shape_cast %10 : vector<1x16x16x4xf32> to vector<16x16x4xf32>
    %c1 = arith.constant 1 : index
    %c1_20 = arith.constant 1 : index
    %c0_21 = arith.constant 0 : index
    %12 = vector.load %arg9[%c1, %c1_20, %c0_21] : memref<18x18x128xf32, #tpu.memory_space<vmem>>, vector<16x16x4xf32>
    tpu.vector_store %arg9[%c1, %c1_20, %c0_21], %11 {strides = array<i32>} : memref<18x18x128xf32, #tpu.memory_space<vmem>>, vector<16x16x4xf32>,
    %c0_22 = arith.constant 0 : index
    %c0_23 = arith.constant 0 : index
    %c0_24 = arith.constant 0 : index
    %13 = vector.load %arg9[%c0_22, %c0_23, %c0_24] : memref<18x18x128xf32, #tpu.memory_space<vmem>>, vector<18x16x128xf32>
    %c0_25 = arith.constant 0 : index
    %c0_26 = arith.constant 0 : index
    %c0_27 = arith.constant 0 : index
    %14 = vector.load %arg10[%c0_25, %c0_26, %c0_27] : memref<18x16x128xf32, #tpu.memory_space<vmem>>, vector<18x16x128xf32>
    tpu.vector_store %arg10[%c0_25, %c0_26, %c0_27], %13 {strides = array<i32>} : memref<18x16x128xf32, #tpu.memory_space<vmem>>, vector<18x16x128xf32>,
    %c0_28 = arith.constant 0 : index
    %c0_29 = arith.constant 0 : index
    %c0_30 = arith.constant 0 : index
    %15 = vector.load %arg10[%c0_28, %c0_29, %c0_30] : memref<18x16x128xf32, #tpu.memory_space<vmem>>, vector<16x16x128xf32>
    %16 = vector.shape_cast %15 : vector<16x16x128xf32> to vector<256x128xf32>
    %c0_31 = arith.constant 0 : index
    %c0_32 = arith.constant 0 : index
    %17 = vector.load %arg2[%c0_31, %c0_32] : memref<1152x128xf32, #tpu.memory_space<vmem>>, vector<128x128xf32>
    %cst_33 = arith.constant dense<0.000000e+00> : vector<256x128xf32>
    %18 = tpu.matmul %16, %17, %cst_33 {dimension_numbers = #tpu.dot_dimension_numbers<[1], [0], [0], [1], [0, 0, 1, 1], [], []>} : vector<256x128xf32>, vector<128x128xf32>, vector<256x128xf32> -> vector<256x128xf32>
    %c1_34 = arith.constant 1 : index
    %c0_35 = arith.constant 0 : index
    %c0_36 = arith.constant 0 : index
    %19 = vector.load %arg10[%c1_34, %c0_35, %c0_36] : memref<18x16x128xf32, #tpu.memory_space<vmem>>, vector<16x16x128xf32>
    %20 = vector.shape_cast %19 : vector<16x16x128xf32> to vector<256x128xf32>
    %c128 = arith.constant 128 : index
    %c0_37 = arith.constant 0 : index
    %21 = vector.load %arg2[%c128, %c0_37] : memref<1152x128xf32, #tpu.memory_space<vmem>>, vector<128x128xf32>
    %cst_38 = arith.constant dense<0.000000e+00> : vector<256x128xf32>
    %22 = tpu.matmul %20, %21, %cst_38 {dimension_numbers = #tpu.dot_dimension_numbers<[1], [0], [0], [1], [0, 0, 1, 1], [], []>} : vector<256x128xf32>, vector<128x128xf32>, vector<256x128xf32> -> vector<256x128xf32>
    %23 = arith.addf %18, %22 : vector<256x128xf32>
    %c2 = arith.constant 2 : index
    %c0_39 = arith.constant 0 : index
    %c0_40 = arith.constant 0 : index
    %24 = vector.load %arg10[%c2, %c0_39, %c0_40] : memref<18x16x128xf32, #tpu.memory_space<vmem>>, vector<16x16x128xf32>
    %25 = vector.shape_cast %24 : vector<16x16x128xf32> to vector<256x128xf32>
    %c256 = arith.constant 256 : index
    %c0_41 = arith.constant 0 : index
    %26 = vector.load %arg2[%c256, %c0_41] : memref<1152x128xf32, #tpu.memory_space<vmem>>, vector<128x128xf32>
    %cst_42 = arith.constant dense<0.000000e+00> : vector<256x128xf32>
    %27 = tpu.matmul %25, %26, %cst_42 {dimension_numbers = #tpu.dot_dimension_numbers<[1], [0], [0], [1], [0, 0, 1, 1], [], []>} : vector<256x128xf32>, vector<128x128xf32>, vector<256x128xf32> -> vector<256x128xf32>
    %28 = arith.addf %23, %27 : vector<256x128xf32>
    %c0_43 = arith.constant 0 : index
    %c1_44 = arith.constant 1 : index
    %c0_45 = arith.constant 0 : index
    %29 = vector.load %arg9[%c0_43, %c1_44, %c0_45] : memref<18x18x128xf32, #tpu.memory_space<vmem>>, vector<18x16x128xf32>
    %c0_46 = arith.constant 0 : index
    %c0_47 = arith.constant 0 : index
    %c0_48 = arith.constant 0 : index
    %30 = vector.load %arg10[%c0_46, %c0_47, %c0_48] : memref<18x16x128xf32, #tpu.memory_space<vmem>>, vector<18x16x128xf32>
    tpu.vector_store %arg10[%c0_46, %c0_47, %c0_48], %29 {strides = array<i32>} : memref<18x16x128xf32, #tpu.memory_space<vmem>>, vector<18x16x128xf32>,
    %c0_49 = arith.constant 0 : index
    %c0_50 = arith.constant 0 : index
    %c0_51 = arith.constant 0 : index
    %31 = vector.load %arg10[%c0_49, %c0_50, %c0_51] : memref<18x16x128xf32, #tpu.memory_space<vmem>>, vector<16x16x128xf32>
    %32 = vector.shape_cast %31 : vector<16x16x128xf32> to vector<256x128xf32>
    %c384 = arith.constant 384 : index
    %c0_52 = arith.constant 0 : index
    %33 = vector.load %arg2[%c384, %c0_52] : memref<1152x128xf32, #tpu.memory_space<vmem>>, vector<128x128xf32>
    %cst_53 = arith.constant dense<0.000000e+00> : vector<256x128xf32>
    %34 = tpu.matmul %32, %33, %cst_53 {dimension_numbers = #tpu.dot_dimension_numbers<[1], [0], [0], [1], [0, 0, 1, 1], [], []>} : vector<256x128xf32>, vector<128x128xf32>, vector<256x128xf32> -> vector<256x128xf32>
    %35 = arith.addf %28, %34 : vector<256x128xf32>
    %c1_54 = arith.constant 1 : index
    %c0_55 = arith.constant 0 : index
    %c0_56 = arith.constant 0 : index
    %36 = vector.load %arg10[%c1_54, %c0_55, %c0_56] : memref<18x16x128xf32, #tpu.memory_space<vmem>>, vector<16x16x128xf32>
    %37 = vector.shape_cast %36 : vector<16x16x128xf32> to vector<256x128xf32>
    %c512 = arith.constant 512 : index
    %c0_57 = arith.constant 0 : index
    %38 = vector.load %arg2[%c512, %c0_57] : memref<1152x128xf32, #tpu.memory_space<vmem>>, vector<128x128xf32>
    %cst_58 = arith.constant dense<0.000000e+00> : vector<256x128xf32>
    %39 = tpu.matmul %37, %38, %cst_58 {dimension_numbers = #tpu.dot_dimension_numbers<[1], [0], [0], [1], [0, 0, 1, 1], [], []>} : vector<256x128xf32>, vector<128x128xf32>, vector<256x128xf32> -> vector<256x128xf32>
    %40 = arith.addf %35, %39 : vector<256x128xf32>
    %c2_59 = arith.constant 2 : index
    %c0_60 = arith.constant 0 : index
    %c0_61 = arith.constant 0 : index
    %41 = vector.load %arg10[%c2_59, %c0_60, %c0_61] : memref<18x16x128xf32, #tpu.memory_space<vmem>>, vector<16x16x128xf32>
    %42 = vector.shape_cast %41 : vector<16x16x128xf32> to vector<256x128xf32>
    %c640 = arith.constant 640 : index
    %c0_62 = arith.constant 0 : index
    %43 = vector.load %arg2[%c640, %c0_62] : memref<1152x128xf32, #tpu.memory_space<vmem>>, vector<128x128xf32>
    %cst_63 = arith.constant dense<0.000000e+00> : vector<256x128xf32>
    %44 = tpu.matmul %42, %43, %cst_63 {dimension_numbers = #tpu.dot_dimension_numbers<[1], [0], [0], [1], [0, 0, 1, 1], [], []>} : vector<256x128xf32>, vector<128x128xf32>, vector<256x128xf32> -> vector<256x128xf32>
    %45 = arith.addf %40, %44 : vector<256x128xf32>
    %c0_64 = arith.constant 0 : index
    %c2_65 = arith.constant 2 : index
    %c0_66 = arith.constant 0 : index
    %46 = vector.load %arg9[%c0_64, %c2_65, %c0_66] : memref<18x18x128xf32, #tpu.memory_space<vmem>>, vector<18x16x128xf32>
    %c0_67 = arith.constant 0 : index
    %c0_68 = arith.constant 0 : index
    %c0_69 = arith.constant 0 : index
    %47 = vector.load %arg10[%c0_67, %c0_68, %c0_69] : memref<18x16x128xf32, #tpu.memory_space<vmem>>, vector<18x16x128xf32>
    tpu.vector_store %arg10[%c0_67, %c0_68, %c0_69], %46 {strides = array<i32>} : memref<18x16x128xf32, #tpu.memory_space<vmem>>, vector<18x16x128xf32>,
    %c0_70 = arith.constant 0 : index
    %c0_71 = arith.constant 0 : index
    %c0_72 = arith.constant 0 : index
    %48 = vector.load %arg10[%c0_70, %c0_71, %c0_72] : memref<18x16x128xf32, #tpu.memory_space<vmem>>, vector<16x16x128xf32>
    %49 = vector.shape_cast %48 : vector<16x16x128xf32> to vector<256x128xf32>
    %c768 = arith.constant 768 : index
    %c0_73 = arith.constant 0 : index
    %50 = vector.load %arg2[%c768, %c0_73] : memref<1152x128xf32, #tpu.memory_space<vmem>>, vector<128x128xf32>
    %cst_74 = arith.constant dense<0.000000e+00> : vector<256x128xf32>
    %51 = tpu.matmul %49, %50, %cst_74 {dimension_numbers = #tpu.dot_dimension_numbers<[1], [0], [0], [1], [0, 0, 1, 1], [], []>} : vector<256x128xf32>, vector<128x128xf32>, vector<256x128xf32> -> vector<256x128xf32>
    %52 = arith.addf %45, %51 : vector<256x128xf32>
    %c1_75 = arith.constant 1 : index
    %c0_76 = arith.constant 0 : index
    %c0_77 = arith.constant 0 : index
    %53 = vector.load %arg10[%c1_75, %c0_76, %c0_77] : memref<18x16x128xf32, #tpu.memory_space<vmem>>, vector<16x16x128xf32>
    %54 = vector.shape_cast %53 : vector<16x16x128xf32> to vector<256x128xf32>
    %c896 = arith.constant 896 : index
    %c0_78 = arith.constant 0 : index
    %55 = vector.load %arg2[%c896, %c0_78] : memref<1152x128xf32, #tpu.memory_space<vmem>>, vector<128x128xf32>
    %cst_79 = arith.constant dense<0.000000e+00> : vector<256x128xf32>
    %56 = tpu.matmul %54, %55, %cst_79 {dimension_numbers = #tpu.dot_dimension_numbers<[1], [0], [0], [1], [0, 0, 1, 1], [], []>} : vector<256x128xf32>, vector<128x128xf32>, vector<256x128xf32> -> vector<256x128xf32>
    %57 = arith.addf %52, %56 : vector<256x128xf32>
    %c2_80 = arith.constant 2 : index
    %c0_81 = arith.constant 0 : index
    %c0_82 = arith.constant 0 : index
    %58 = vector.load %arg10[%c2_80, %c0_81, %c0_82] : memref<18x16x128xf32, #tpu.memory_space<vmem>>, vector<16x16x128xf32>
    %59 = vector.shape_cast %58 : vector<16x16x128xf32> to vector<256x128xf32>
    %c1024 = arith.constant 1024 : index
    %c0_83 = arith.constant 0 : index
    %60 = vector.load %arg2[%c1024, %c0_83] : memref<1152x128xf32, #tpu.memory_space<vmem>>, vector<128x128xf32>
    %cst_84 = arith.constant dense<0.000000e+00> : vector<256x128xf32>
    %61 = tpu.matmul %59, %60, %cst_84 {dimension_numbers = #tpu.dot_dimension_numbers<[1], [0], [0], [1], [0, 0, 1, 1], [], []>} : vector<256x128xf32>, vector<128x128xf32>, vector<256x128xf32> -> vector<256x128xf32>
    %62 = arith.addf %57, %61 : vector<256x128xf32>
    %c0_85 = arith.constant 0 : index
    %c0_86 = arith.constant 0 : index
    %63 = vector.load %arg3[%c0_85, %c0_86] : memref<1x128xf32, #tpu.memory_space<vmem>>, vector<1x128xf32>
    %64 = vector.broadcast %63 : vector<1x128xf32> to vector<256x128xf32>
    %65 = arith.mulf %62, %64 : vector<256x128xf32>
    %c0_87 = arith.constant 0 : index
    %c0_88 = arith.constant 0 : index
    %66 = vector.load %arg4[%c0_87, %c0_88] : memref<1x128xf32, #tpu.memory_space<vmem>>, vector<1x128xf32>
    %67 = vector.broadcast %66 : vector<1x128xf32> to vector<256x128xf32>
    %68 = arith.addf %65, %67 : vector<256x128xf32>
    %cst_89 = arith.constant 0.000000e+00 : f32
    %69 = vector.broadcast %cst_89 : f32 to vector<256x128xf32>
    %70 = arith.maximumf %68, %69 : vector<256x128xf32>
    %c0_90 = arith.constant 0 : index
    %c0_91 = arith.constant 0 : index
    %71 = vector.load %arg11[%c0_90, %c0_91] : memref<256x128xf32, #tpu.memory_space<vmem>>, vector<256x128xf32>
    tpu.vector_store %arg11[%c0_90, %c0_91], %70 {strides = array<i32>} : memref<256x128xf32, #tpu.memory_space<vmem>>, vector<256x128xf32>,
    %cst_92 = arith.constant dense<0.000000e+00> : vector<128xf32>
    %72 = vector.multi_reduction <add>, %70, %cst_92 [0] : vector<256x128xf32> to vector<128xf32>
    %73 = vector.shape_cast %72 : vector<128xf32> to vector<1x128xf32>
    %cst_93 = arith.constant 3.906250e-03 : f32
    %74 = vector.broadcast %cst_93 : f32 to vector<1x128xf32>
    %75 = arith.mulf %73, %74 : vector<1x128xf32>
    %c0_94 = arith.constant 0 : index
    %c0_95 = arith.constant 0 : index
    %76 = vector.load %arg5[%c0_94, %c0_95] : memref<128x128xf32, #tpu.memory_space<vmem>>, vector<128x128xf32>
    %cst_96 = arith.constant dense<0.000000e+00> : vector<1x128xf32>
    %77 = tpu.matmul %75, %76, %cst_96 {dimension_numbers = #tpu.dot_dimension_numbers<[1], [0], [0], [1], [0, 0, 1, 1], [], []>} : vector<1x128xf32>, vector<128x128xf32>, vector<1x128xf32> -> vector<1x128xf32>
    %c0_97 = arith.constant 0 : index
    %c0_98 = arith.constant 0 : index
    %78 = vector.load %arg6[%c0_97, %c0_98] : memref<1x128xf32, #tpu.memory_space<vmem>>, vector<1x128xf32>
    %79 = arith.mulf %77, %78 : vector<1x128xf32>
    %c0_99 = arith.constant 0 : index
    %c0_100 = arith.constant 0 : index
    %80 = vector.load %arg7[%c0_99, %c0_100] : memref<1x128xf32, #tpu.memory_space<vmem>>, vector<1x128xf32>
    %81 = arith.addf %79, %80 : vector<1x128xf32>
    %82 = arith.negf %81 : vector<1x128xf32>
    %83 = math.exp %82 : vector<1x128xf32>
    %cst_101 = arith.constant 1.000000e+00 : f32
    %84 = vector.broadcast %cst_101 : f32 to vector<1x128xf32>
    %85 = arith.addf %84, %83 : vector<1x128xf32>
    %86 = arith.divf %84, %85 : vector<1x128xf32>
    %c0_102 = arith.constant 0 : index
    %c0_103 = arith.constant 0 : index
    %87 = vector.load %arg11[%c0_102, %c0_103] : memref<256x128xf32, #tpu.memory_space<vmem>>, vector<256x128xf32>
    %88 = vector.broadcast %86 : vector<1x128xf32> to vector<256x128xf32>
    %89 = arith.mulf %87, %88 : vector<256x128xf32>
    %90 = vector.shape_cast %89 : vector<256x128xf32> to vector<16x16x128xf32>
    %c0_104 = arith.constant 0 : index
    %c0_105 = arith.constant 0 : index
    %c0_106 = arith.constant 0 : index
    %c0_107 = arith.constant 0 : index
    %91 = vector.load %arg8[%c0_104, %c0_105, %c0_106, %c0_107] : memref<1x16x16x128xf32, #tpu.memory_space<vmem>>, vector<1x16x16x128xf32>
    %92 = vector.shape_cast %91 : vector<1x16x16x128xf32> to vector<16x16x128xf32>
    %93 = vector.shape_cast %90 : vector<16x16x128xf32> to vector<1x16x16x128xf32>
    tpu.vector_store %arg8[%c0_104, %c0_105, %c0_106, %c0_107], %93 {strides = array<i32>} : memref<1x16x16x128xf32, #tpu.memory_space<vmem>>, vector<1x16x16x128xf32>,
    return
  }
  func.func @transform_0(%arg0: i32) -> (i32, i32, i32, i32) {
    %c0_i32 = arith.constant 0 : i32
    %c0_i32_0 = arith.constant 0 : i32
    %c0_i32_1 = arith.constant 0 : i32
    %c0_i32_2 = arith.constant 0 : i32
    return %arg0, %c0_i32, %c0_i32_0, %c0_i32_1 : i32, i32, i32, i32
  }
  func.func @transform_1(%arg0: i32) -> (i32, i32) {
    %c0_i32 = arith.constant 0 : i32
    %c0_i32_0 = arith.constant 0 : i32
    %c0_i32_1 = arith.constant 0 : i32
    return %c0_i32, %c0_i32_0 : i32, i32
  }
  func.func @transform_2(%arg0: i32) -> (i32, i32) {
    %c0_i32 = arith.constant 0 : i32
    %c0_i32_0 = arith.constant 0 : i32
    %c0_i32_1 = arith.constant 0 : i32
    return %c0_i32, %c0_i32_0 : i32, i32
  }
  func.func @transform_3(%arg0: i32) -> (i32, i32) {
    %c0_i32 = arith.constant 0 : i32
    %c0_i32_0 = arith.constant 0 : i32
    %c0_i32_1 = arith.constant 0 : i32
    return %c0_i32, %c0_i32_0 : i32, i32
  }
  func.func @transform_4(%arg0: i32) -> (i32, i32) {
    %c0_i32 = arith.constant 0 : i32
    %c0_i32_0 = arith.constant 0 : i32
    %c0_i32_1 = arith.constant 0 : i32
    return %c0_i32, %c0_i32_0 : i32, i32
  }
  func.func @transform_5(%arg0: i32) -> (i32, i32) {
    %c0_i32 = arith.constant 0 : i32
    %c0_i32_0 = arith.constant 0 : i32
    %c0_i32_1 = arith.constant 0 : i32
    return %c0_i32, %c0_i32_0 : i32, i32
  }
  func.func @transform_6(%arg0: i32) -> (i32, i32) {
    %c0_i32 = arith.constant 0 : i32
    %c0_i32_0 = arith.constant 0 : i32
    %c0_i32_1 = arith.constant 0 : i32
    return %c0_i32, %c0_i32_0 : i32, i32
  }
  func.func @transform_7(%arg0: i32) -> (i32, i32, i32, i32) {
    %c0_i32 = arith.constant 0 : i32
    %c0_i32_0 = arith.constant 0 : i32
    %c0_i32_1 = arith.constant 0 : i32
    %c0_i32_2 = arith.constant 0 : i32
    return %arg0, %c0_i32, %c0_i32_0, %c0_i32_1 : i32, i32, i32, i32
  }
}

</mosaic_0001>

<bundles_post_ra>
// kernel: tpu_custom_call.1
= control target key start
LH: loop header
LB: loop body
LE: loop exit
PB: predicated region body
PF: predicated region fallthrough
CT: control target
= control target key end

     0   :  { %12 = vsyncpa [#allocation6], 0  ;;  %s4544_s0 = inlined_call_operand.vmem [shape: f32[2,16,16,4], index: 0, kind: input, shape index: {}]   ;;  %s4545_s1 = inlined_call_operand.hbm [shape: f32[1152,128], index: 1, kind: input, shape index: {}]   ;;  %s4546_s2 = inlined_call_operand.vmem [shape: f32[1,128], index: 2, kind: input, shape index: {}]   ;;  %s4547_s3 = inlined_call_operand.vmem [shape: f32[1,128], index: 3, kind: input, shape index: {}]   ;;  %s4548_s4 = inlined_call_operand.vmem [shape: f32[128,128], index: 4, kind: input, shape index: {}]   ;;  %s4549_s5 = inlined_call_operand.vmem [shape: f32[1,128], index: 5, kind: input, shape index: {}]   ;;  %s4550_s6 = inlined_call_operand.vmem [shape: f32[1,128], index: 6, kind: input, shape index: {}]   ;;  %s4551_s7 = inlined_call_operand.hbm [shape: f32[2,16,16,128], index: 7, kind: output, shape index: {}]  }
   0x1   :  { %13 = vsyncpa [#allocation7], 0 }
   0x2   :  { %15 = vsyncpa [#allocation7 + $0x1], 0  ;;  %s3041_s24 = smov 0   ;;  %s3043_s25 = smov 0  }
   0x3   :  { %s3045_s26 = smov 0   ;;  %s3047_s27 = smov 0  }
   0x4 LB: > { %s3062_s28 = sadd.s32 4294967295, %s2993_s27   ;;  %s2770_s29 = sadd.s32 4294967294, %s2993_s27   ;;  %s2993_s27 = sphi %s3047_s27, %s4631_s27   ;;  %s2989_s26 = sphi %s3045_s26, %s4630_s26   ;;  %s2985_s25 = sphi %s3043_s25, %s4629_s25   ;;  %s2981_s24 = sphi %s3041_s24, %s4628_s24  }
   0x5   : > { %s3066_s30 = sadd.s32 1, %s2993_s27   ;;  %s180_s8 = sadd.s32 1, %s2989_s26 }
   0x6   : > { %s177_s9 = ssub.s32 %s2993_s27, %s3066_s30  ;;  %p190_p0 = scmp.ne.s32.totalorder %s2989_s26, %s2985_s25 }
   0x7   : > { %p178_p1 = scmp.eq.s32.totalorder %s177_s9, 0  ;;  %p191_p2 = scmp.eq.s32.totalorder %s3062_s28, 1 }
   0x8   : > { %p196_p3 = scmp.ne.s32.totalorder %s2985_s25, %s2981_s24  ;;  %p197_p4 = scmp.eq.s32.totalorder %s2770_s29, 1 }
   0x9   : > { %s3077_s10 = scalar_select %p178_p1, %s2989_s26, %s180_s8  }
   0xa   : > { %p3079_p5 = por %p191_p2, %p190_p0  ;;  %p3083_p6 = por %p197_p4, %p196_p3 }
   0xb   : > { %p2771_p7 = scmp.ge.s32.totalorder %s2993_s27, 1  ;;  %p204_p8 = scmp.lt.s32.totalorder %s2993_s27, 3 }
   0xc   : > { %p2849_p9 = scmp.eq.s32.totalorder %s3062_s28, 0  ;;  %s215_s15 = sshll.u32 %s4545_s1, 4  ;;  %s216_s15 = int_to_ptr.hbm [resolvable:$true] %s215_s15 }
   0xd   : > { %p205_p10 = pnand %p2771_p7, %p204_p8  ;;  %s2995_s16 = smov [#allocation5]  }
   0xe   : > { %s217_s17 = sshll.u32 %s2995_s16, 4  ;;  %s2996_s18 = smov 128   ;;  %s218_s17 = int_to_ptr.vmem [resolvable:$true] %s217_s17 }
   0xf   : > { %p2841_p11 = pneg %p205_p10  ;;  %s2997_s19 = smov 8  }
  0x10   : > { %256 = sbr.rel (%p205_p10) target bundleno = 1062 (0x426), region = 48 }
  0x11   : > { %p2842_p12 = pnand %p2849_p9, %p2841_p11 }
  0x13   : > { %2844 = dma.hbm_to_vmem [thread:$0]  (!%p2842_p12), %s216_s15, 18432, %s218_s17, [#allocation6], %s2996_s18, %s2996_s18, %s2997_s19  }
  0x15   : > { %2972 = dma.done.wait (%p2849_p9), [#allocation6], 18432  }
  0x16   : > { %2974 = vsyncadd (%p2849_p9), [#allocation6], 4294948864  ;;  %p289_p13 = scmp.lt.s32.totalorder %s3062_s28, 1  ;;  %vm294_vm0 = vcmask 1047584   ;;  %vm297_vm1 = vcmask 1041440   ;;  %v2998_v0 = vmov 0.0  }
  0x17   : > { %311 = vst.msk [vmem:[#allocation2 + $0x78] sm:$0xff] %vm294_vm0, %v2998_v0  ;;  %v627_v1 = vld [vmem:[#allocation5 + $0xf8] sm:$0xff]  ;;  %v626_v2 = vld [vmem:[#allocation5 + $0xf0] sm:$0xff]  ;;  %v625_v3 = vld [vmem:[#allocation5 + $0xe8] sm:$0xff]  ;;  %vm426_vm2 = vcmask 31744   ;;  %s286_s23 = sand.u32 1, %s2985_s25  }
  0x18   : > { %s290_s20 = scalar_select %p289_p13, %s3062_s28, 1  ;;  %312 = vst.msk [vmem:[#allocation2 + $0x80] sm:$0xff] %vm294_vm0, %v2998_v0  ;;  %2787 = vmatpush.msra.mxu1 %v627_v1  ;;  %2788 = vmatpush.msra.mxu2 %v627_v1  ;;  %v624_v4 = vld [vmem:[#allocation5 + $0xe0] sm:$0xff]  ;;  %v623_v7 = vld [vmem:[#allocation5 + $0xd8] sm:$0xff]  ;;  %v622_v8 = vld [vmem:[#allocation5 + $0xd0] sm:$0xff] }
  0x19   : > { %313 = vst.msk [vmem:[#allocation2 + $0x88] sm:$0x3] %vm297_vm1, %v2998_v0  ;;  %2789 = vmatpush.msra.mxu3 %v627_v1  ;;  %628 = vmatpush.msra.mxu0 %v627_v1  ;;  %v621_v9 = vld [vmem:[#allocation5 + $0xc8] sm:$0xff]  ;;  %v620_v10 = vld [vmem:[#allocation5 + $0xc0] sm:$0xff]  ;;  %v619_v11 = vld [vmem:[#allocation5 + $0xb8] sm:$0xff]  ;;  %s2786_s9 = sshll.u32 %s3062_s28, 8 }
  0x1a   : > { %295 = vst.msk [vmem:[#allocation2] sm:$0xff] %vm294_vm0, %v2998_v0  ;;  %s2785_s21 = sshll.u32 %s290_s20, 8  ;;  %2790 = vmatpush.msra.mxu1 %v626_v2  ;;  %2791 = vmatpush.msra.mxu2 %v626_v2  ;;  %v618_v12 = vld [vmem:[#allocation5 + $0xb0] sm:$0xff]  ;;  %v617_v13 = vld [vmem:[#allocation5 + $0xa8] sm:$0xff]  ;;  %v616_v14 = vld [vmem:[#allocation5 + $0xa0] sm:$0xff]  ;;  %s2692_s14 = scalar_lea.hbm %s4551_s7, %s2786_s9 }
  0x1b   : > { %296 = vst.msk [vmem:[#allocation2 + $0x8] sm:$0xff] %vm294_vm0, %v2998_v0  ;;  %s3120_s29 = scalar_lea.vmem %s4544_s0, %s2785_s21  ;;  %2792 = vmatpush.msra.mxu3 %v626_v2  ;;  %629 = vmatpush.msra.mxu0 %v626_v2  ;;  %v615_v15 = vld [vmem:[#allocation5 + $0x98] sm:$0xff]  ;;  %v614_v16 = vld [vmem:[#allocation5 + $0x90] sm:$0xff]  ;;  %v613_v17 = vld [vmem:[#allocation5 + $0x88] sm:$0xff]  ;;  %s2695_s16 = sshll.u32 %s2692_s14, 4  ;;  %s2696_s16 = int_to_ptr.hbm [resolvable:$true] %s2695_s16 }
  0x1c   : > { %298 = vst.msk [vmem:[#allocation2 + $0x10] sm:$0x3] %vm297_vm1, %v2998_v0  ;;  %2793 = vmatpush.msra.mxu1 %v625_v3  ;;  %2794 = vmatpush.msra.mxu2 %v625_v3  ;;  %v401_v5 = vld [vmem:[%s3120_s29 + $0x40] sm:$0xff]  ;;  %v402_v6 = vld [vmem:[%s3120_s29 + $0x48] sm:$0xff]  ;;  %v612_v18 = vld [vmem:[#allocation5 + $0x80] sm:$0xff]  ;;  %s2681_s17 = scalar_lea.sflag [#allocation7], %s286_s23 }
  0x1d   : > { %299 = vst.msk [vmem:[#allocation2 + $0x18] sm:$0xff] %vm294_vm0, %v2998_v0  ;;  %2795 = vmatpush.msra.mxu3 %v625_v3  ;;  %630 = vmatpush.msra.mxu0 %v625_v3  ;;  %v407_v20 = vld [vmem:[%s3120_s29 + $0x70] sm:$0xff]  ;;  %v902_v21 = vld [vmem:[#allocation5 + $0x178] sm:$0xff]  ;;  %v901_v24 = vld [vmem:[#allocation5 + $0x170] sm:$0xff]  ;;  %s2941_s18 = sshra.s32 %s2696_s16, 4  ;;  %s2947_s22 = scalar_lea.hbm %s4551_s7, 512  ;;  %s2942_s18 = int_to_ptr.hbm [resolvable:$true] %s2941_s18 }
  0x1e   : > { %300 = vst.msk [vmem:[#allocation2 + $0x20] sm:$0xff] %vm294_vm0, %v2998_v0  ;;  %2796 = vmatpush.msra.mxu1 %v624_v4  ;;  %2797 = vmatpush.msra.mxu2 %v624_v4  ;;  %v1167_v23 = vld [vmem:[#allocation5 + $0x1f8] sm:$0xff]  ;;  %v1166_v25 = vld [vmem:[#allocation5 + $0x1f0] sm:$0xff]  ;;  %v900_v27 = vld [vmem:[#allocation5 + $0x168] sm:$0xff]  ;;  %s2943_s19 = scalar_lea.hbm %s2942_s18, 256  ;;  %p2948_p3 = scmp.lt.s32.totalorder %s2942_s18, %s4551_s7 }
  0x1f   : > { %301 = vst.msk [vmem:[#allocation2 + $0x28] sm:$0x3] %vm297_vm1, %v2998_v0  ;;  %2798 = vmatpush.msra.mxu3 %v624_v4  ;;  %631 = vmatpush.msra.mxu0 %v624_v4  ;;  %v578_v26 = vld [vmem:[#allocation5 + $0x78] sm:$0xff]  ;;  %v577_v29 = vld [vmem:[#allocation5 + $0x70] sm:$0xff]  ;;  %v1165_v30 = vld [vmem:[#allocation5 + $0x1e8] sm:$0xff]  ;;  %p2944_p0 = scmp.ne.s32.totalorder %s2942_s18, %s2943_s19  ;;  %p2949_p4 = scmp.lt.s32.totalorder %s2947_s22, %s2943_s19 }
  0x20   : > { %302 = vst.msk [vmem:[#allocation2 + $0x30] sm:$0xff] %vm294_vm0, %v2998_v0  ;;  %2799 = vmatpush.msra.mxu1 %v623_v7  ;;  %2800 = vmatpush.msra.mxu2 %v623_v7  ;;  %v1360_v28 = vld [vmem:[#allocation5 + $0x278] sm:$0xff]  ;;  %v576_v31 = vld [vmem:[#allocation5 + $0x68] sm:$0xff]  ;;  %v899_v32 = vld [vmem:[#allocation5 + $0x160] sm:$0xff] }
  0x21   : > { %303 = vst.msk [vmem:[#allocation2 + $0x38] sm:$0xff] %vm294_vm0, %v2998_v0  ;;  %2801 = vmatpush.msra.mxu3 %v623_v7  ;;  %632 = vmatpush.msra.mxu0 %v623_v7  ;;  %v575_v33 = vld [vmem:[#allocation5 + $0x60] sm:$0xff]  ;;  %v1359_v34 = vld [vmem:[#allocation5 + $0x270] sm:$0xff]  ;;  %v574_v36 = vld [vmem:[#allocation5 + $0x58] sm:$0xff]  ;;  %p2945_p1 = pnand %p2944_p0, %p3079_p5  ;;  %p2950_p7 = por %p2949_p4, %p2948_p3 }
  0x22   : > { %304 = vst.msk [vmem:[#allocation2 + $0x40] sm:$0x3] %vm297_vm1, %v2998_v0  ;;  %2802 = vmatpush.msra.mxu1 %v622_v8  ;;  %2803 = vmatpush.msra.mxu2 %v622_v8  ;;  %v1164_v35 = vld [vmem:[#allocation5 + $0x1e0] sm:$0xff]  ;;  %v898_v37 = vld [vmem:[#allocation5 + $0x158] sm:$0xff]  ;;  %v573_v38 = vld [vmem:[#allocation5 + $0x50] sm:$0xff] }
  0x23   : > { %435 = vst.msk [vmem:[#allocation2 + $0x79] sm:$0xff] %vm426_vm2, %v401_v5  ;;  %2804 = vmatpush.msra.mxu3 %v622_v8  ;;  %633 = vmatpush.msra.mxu0 %v622_v8  ;;  %v1358_v39 = vld [vmem:[#allocation5 + $0x268] sm:$0xff]  ;;  %v1163_v40 = vld [vmem:[#allocation5 + $0x1d8] sm:$0xff]  ;;  %v571_v42 = vld [vmem:[#allocation5 + $0x40] sm:$0xff]  ;;  %p2946_p2 = pneg %p2945_p1 }
  0x24   : > { %436 = vst.msk [vmem:[#allocation2 + $0x81] sm:$0xff] %vm426_vm2, %v402_v6  ;;  %2805 = vmatpush.msra.mxu1 %v621_v9  ;;  %2806 = vmatpush.msra.mxu2 %v621_v9  ;;  %v572_v41 = vld [vmem:[#allocation5 + $0x48] sm:$0xff]  ;;  %v897_v43 = vld [vmem:[#allocation5 + $0x150] sm:$0xff]  ;;  %v1357_v44 = vld [vmem:[#allocation5 + $0x260] sm:$0xff] }
  0x25   : > { %305 = vst.msk [vmem:[#allocation2 + $0x48] sm:$0xff] %vm294_vm0, %v2998_v0  ;;  %2807 = vmatpush.msra.mxu3 %v621_v9  ;;  %634 = vmatpush.msra.mxu0 %v621_v9  ;;  %v1162_v45 = vld [vmem:[#allocation5 + $0x1d0] sm:$0xff]  ;;  %v415_v46 = vld [vmem:[%s3120_s29 + $0xb0] sm:$0xff]  ;;  %v570_v47 = vld [vmem:[#allocation5 + $0x38] sm:$0xff]  ;;  %p2951_p8 = pnand %p2950_p7, %p2946_p2 }
  0x26   : > { %306 = vst.msk [vmem:[#allocation2 + $0x50] sm:$0xff] %vm294_vm0, %v2998_v0  ;;  %2808 = vmatpush.msra.mxu1 %v620_v10  ;;  %2809 = vmatpush.msra.mxu2 %v620_v10  ;;  %v416_v48 = vld [vmem:[%s3120_s29 + $0xb8] sm:$0xff]  ;;  %v403_v49 = vld [vmem:[%s3120_s29 + $0x50] sm:$0xff]  ;;  %v393_v51 = vld [vmem:[%s3120_s29] sm:$0xff] }
  0x27   : > { %307 = vst.msk [vmem:[#allocation2 + $0x58] sm:$0x3] %vm297_vm1, %v2998_v0  ;;  %2810 = vmatpush.msra.mxu3 %v620_v10  ;;  %635 = vmatpush.msra.mxu0 %v620_v10  ;;  %v408_v50 = vld [vmem:[%s3120_s29 + $0x78] sm:$0xff]  ;;  %v417_v52 = vld [vmem:[%s3120_s29 + $0xc0] sm:$0xff]  ;;  %v1356_v55 = vld [vmem:[#allocation5 + $0x258] sm:$0xff] }
  0x28   : > { %308 = vst.msk [vmem:[#allocation2 + $0x60] sm:$0xff] %vm294_vm0, %v2998_v0  ;;  %2811 = vmatpush.msra.mxu1 %v619_v11  ;;  %2812 = vmatpush.msra.mxu2 %v619_v11  ;;  %v569_v53 = vld [vmem:[#allocation5 + $0x30] sm:$0xff]  ;;  %v896_v54 = vld [vmem:[#allocation5 + $0x148] sm:$0xff]  ;;  %v567_v59 = vld [vmem:[#allocation5 + $0x20] sm:$0xff] }
  0x29   : > { %309 = vst.msk [vmem:[#allocation2 + $0x68] sm:$0xff] %vm294_vm0, %v2998_v0  ;;  %2813 = vmatpush.msra.mxu3 %v619_v11  ;;  %636 = vmatpush.msra.mxu0 %v619_v11  ;;  %v404_v56 = vld [vmem:[%s3120_s29 + $0x58] sm:$0xff]  ;;  %v895_v60 = vld [vmem:[#allocation5 + $0x140] sm:$0xff]  ;;  %v1355_v61 = vld [vmem:[#allocation5 + $0x250] sm:$0xff] }
  0x2a   : > { %310 = vst.msk [vmem:[#allocation2 + $0x70] sm:$0x3] %vm297_vm1, %v2998_v0  ;;  %2814 = vmatpush.msra.mxu1 %v618_v12  ;;  %2815 = vmatpush.msra.mxu2 %v618_v12  ;;  %v568_v57 = vld [vmem:[#allocation5 + $0x28] sm:$0xff]  ;;  %v409_v62 = vld [vmem:[%s3120_s29 + $0x80] sm:$0xff]  ;;  %v394_v63 = vld [vmem:[%s3120_s29 + $0x8] sm:$0xff] }
  0x2b   : > { %314 = vst.msk [vmem:[#allocation2 + $0x90] sm:$0xff] %vm294_vm0, %v2998_v0  ;;  %2816 = vmatpush.msra.mxu3 %v618_v12  ;;  %637 = vmatpush.msra.mxu0 %v618_v12  ;;  %v3176_v19 = vld [vmem:[#allocation2 + $0x80] sm:$0xff]  ;;  %v1161_v58 = vld [vmem:[#allocation5 + $0x1c8] sm:$0xff]  ;;  %v566_v1 = vld [vmem:[#allocation5 + $0x18] sm:$0xff] }
  0x2c   : > { %315 = vst.msk [vmem:[#allocation2 + $0x98] sm:$0xff] %vm294_vm0, %v2998_v0  ;;  %2817 = vmatpush.msra.mxu1 %v617_v13  ;;  %2818 = vmatpush.msra.mxu2 %v617_v13  ;;  %v418_v2 = vld [vmem:[%s3120_s29 + $0xc8] sm:$0xff]  ;;  %v405_v3 = vld [vmem:[%s3120_s29 + $0x60] sm:$0xff]  ;;  %v395_v6 = vld [vmem:[%s3120_s29 + $0x10] sm:$0xff] }
  0x2d   : > { %316 = vst.msk [vmem:[#allocation2 + $0xa0] sm:$0x3] %vm297_vm1, %v2998_v0  ;;  %2819 = vmatpush.msra.mxu3 %v617_v13  ;;  %638 = vmatpush.msra.mxu0 %v617_v13  ;;  %v410_v4 = vld [vmem:[%s3120_s29 + $0x88] sm:$0xff]  ;;  %v419_v7 = vld [vmem:[%s3120_s29 + $0xd0] sm:$0xff]  ;;  %v565_v11 = vld [vmem:[#allocation5 + $0x10] sm:$0xff] }
  0x2e   : > { %317 = vst.msk [vmem:[#allocation2 + $0xa8] sm:$0xff] %vm294_vm0, %v2998_v0  ;;  %2820 = vmatpush.msra.mxu1 %v616_v14  ;;  %2821 = vmatpush.msra.mxu2 %v616_v14  ;;  %v406_v9 = vld [vmem:[%s3120_s29 + $0x68] sm:$0xff]  ;;  %v1160_v10 = vld [vmem:[#allocation5 + $0x1c0] sm:$0xff] }
  0x2f   : > { %318 = vst.msk [vmem:[#allocation2 + $0xb0] sm:$0xff] %vm294_vm0, %v2998_v0  ;;  %2822 = vmatpush.msra.mxu3 %v616_v14  ;;  %639 = vmatpush.msra.mxu0 %v616_v14  ;;  %v894_v13 = vld [vmem:[#allocation5 + $0x138] sm:$0xff]  ;;  %v564_v14 = vld [vmem:[#allocation5 + $0x8] sm:$0xff] }
  0x30   : > { %319 = vst.msk [vmem:[#allocation2 + $0xb8] sm:$0x3] %vm297_vm1, %v2998_v0  ;;  %2823 = vmatpush.msra.mxu1 %v615_v15  ;;  %2824 = vmatpush.msra.mxu2 %v615_v15 }
  0x31   : > { %320 = vst.msk [vmem:[#allocation2 + $0xc0] sm:$0xff] %vm294_vm0, %v2998_v0  ;;  %2825 = vmatpush.msra.mxu3 %v615_v15  ;;  %640 = vmatpush.msra.mxu0 %v615_v15 }
  0x32   : > { %321 = vst.msk [vmem:[#allocation2 + $0xc8] sm:$0xff] %vm294_vm0, %v2998_v0  ;;  %2826 = vmatpush.msra.mxu1 %v614_v16  ;;  %2827 = vmatpush.msra.mxu2 %v614_v16 }
  0x33   : > { %322 = vst.msk [vmem:[#allocation2 + $0xd0] sm:$0x3] %vm297_vm1, %v2998_v0  ;;  %2828 = vmatpush.msra.mxu3 %v614_v16  ;;  %641 = vmatpush.msra.mxu0 %v614_v16  ;;  %v1354_v16 = vld [vmem:[#allocation5 + $0x248] sm:$0xff] }
  0x34   : > { %323 = vst.msk [vmem:[#allocation2 + $0xd8] sm:$0xff] %vm294_vm0, %v2998_v0  ;;  %2829 = vmatpush.msra.mxu1 %v613_v17  ;;  %2830 = vmatpush.msra.mxu2 %v613_v17 }
  0x35   : > { %324 = vst.msk [vmem:[#allocation2 + $0xe0] sm:$0xff] %vm294_vm0, %v2998_v0  ;;  %2831 = vmatpush.msra.mxu3 %v613_v17  ;;  %642 = vmatpush.msra.mxu0 %v613_v17  ;;  %v1159_v17 = vld [vmem:[#allocation5 + $0x1b8] sm:$0xff] }
  0x36   : > { %325 = vst.msk [vmem:[#allocation2 + $0xe8] sm:$0x3] %vm297_vm1, %v2998_v0  ;;  %2832 = vmatpush.msra.mxu1 %v612_v18  ;;  %2833 = vmatpush.msra.mxu2 %v612_v18 }
  0x37   : > { %326 = vst.msk [vmem:[#allocation2 + $0xf0] sm:$0xff] %vm294_vm0, %v2998_v0  ;;  %671 = vmatmul.f32.vlgmr.msra.gmra.mxu1 %v3176_v19  ;;  %2834 = vmatpush.msra.mxu3 %v612_v18 }
  0x38   : > { %327 = vst.msk [vmem:[#allocation2 + $0xf8] sm:$0xff] %vm294_vm0, %v2998_v0  ;;  %643 = vmatpush.msra.mxu0 %v612_v18  ;;  %903 = vmatpush.msrb.mxu2 %v902_v21  ;;  %v411_v18 = vld [vmem:[%s3120_s29 + $0x90] sm:$0xff]  ;;  %v396_v21 = vld [vmem:[%s3120_s29 + $0x18] sm:$0xff] }
  0x39   : > { %328 = vst.msk [vmem:[#allocation2 + $0x100] sm:$0x3] %vm297_vm1, %v2998_v0  ;;  %1168 = vmatpush.msrb.mxu3 %v1167_v23  ;;  %741 = vmatpush.msrb.mxu1 %v578_v26  ;;  %v893_v23 = vld [vmem:[#allocation5 + $0x130] sm:$0xff] }
  0x3a   : > { %329 = vst.msk [vmem:[#allocation2 + $0x108] sm:$0xff] %vm294_vm0, %v2998_v0  ;;  %904 = vmatpush.msrb.mxu2 %v901_v24  ;;  %1361 = vmatpush.msrb.mxu0 %v1360_v28 }
  0x3b   : > { %330 = vst.msk [vmem:[#allocation2 + $0x110] sm:$0xff] %vm294_vm0, %v2998_v0  ;;  %1169 = vmatpush.msrb.mxu3 %v1166_v25  ;;  %742 = vmatpush.msrb.mxu1 %v577_v29  ;;  %v420_v25 = vld [vmem:[%s3120_s29 + $0xd8] sm:$0xff]  ;;  %v397_v29 = vld [vmem:[%s3120_s29 + $0x20] sm:$0xff] }
  0x3c   : > { %331 = vst.msk [vmem:[#allocation2 + $0x118] sm:$0x3] %vm297_vm1, %v2998_v0  ;;  %905 = vmatpush.msrb.mxu2 %v900_v27  ;;  %1362 = vmatpush.msrb.mxu0 %v1359_v34  ;;  %v412_v27 = vld [vmem:[%s3120_s29 + $0x98] sm:$0xff] }
  0x3d   : > { %332 = vst.msk [vmem:[#allocation2 + $0x120] sm:$0xff] %vm294_vm0, %v2998_v0  ;;  %1170 = vmatpush.msrb.mxu3 %v1165_v30  ;;  %743 = vmatpush.msrb.mxu1 %v576_v31  ;;  %v421_v30 = vld [vmem:[%s3120_s29 + $0xe0] sm:$0xff]  ;;  %v892_v34 = vld [vmem:[#allocation5 + $0x128] sm:$0xff] }
  0x3e   : > { %333 = vst.msk [vmem:[#allocation2 + $0x128] sm:$0xff] %vm294_vm0, %v2998_v0  ;;  %906 = vmatpush.msrb.mxu2 %v899_v32  ;;  %1363 = vmatpush.msrb.mxu0 %v1358_v39  ;;  %v1353_v32 = vld [vmem:[#allocation5 + $0x240] sm:$0xff]  ;;  %v422_v39 = vld [vmem:[%s3120_s29 + $0xe8] sm:$0xff] }
  0x3f   : > { %334 = vst.msk [vmem:[#allocation2 + $0x130] sm:$0x3] %vm297_vm1, %v2998_v0  ;;  %1171 = vmatpush.msrb.mxu3 %v1164_v35  ;;  %744 = vmatpush.msrb.mxu1 %v575_v33  ;;  %v1158_v33 = vld [vmem:[#allocation5 + $0x1b0] sm:$0xff]  ;;  %v1352_v35 = vld [vmem:[#allocation5 + $0x238] sm:$0xff] }
  0x40   : > { %335 = vst.msk [vmem:[#allocation2 + $0x138] sm:$0xff] %vm294_vm0, %v2998_v0  ;;  %907 = vmatpush.msrb.mxu2 %v898_v37  ;;  %1364 = vmatpush.msrb.mxu0 %v1357_v44  ;;  %v1157_v37 = vld [vmem:[#allocation5 + $0x1a8] sm:$0xff]  ;;  %v399_v44 = vld [vmem:[%s3120_s29 + $0x30] sm:$0xff] }
  0x41   : > { %336 = vst.msk [vmem:[#allocation2 + $0x140] sm:$0xff] %vm294_vm0, %v2998_v0  ;;  %745 = vmatpush.msrb.mxu1 %v574_v36  ;;  %1172 = vmatpush.msrb.mxu3 %v1163_v40  ;;  %v413_v36 = vld [vmem:[%s3120_s29 + $0xa0] sm:$0xff] }
  0x42   : > { %337 = vst.msk [vmem:[#allocation2 + $0x148] sm:$0x3] %vm297_vm1, %v2998_v0  ;;  %908 = vmatpush.msrb.mxu2 %v897_v43  ;;  %1365 = vmatpush.msrb.mxu0 %v1356_v55 }
  0x43   : > { %338 = vst.msk [vmem:[#allocation2 + $0x150] sm:$0xff] %vm294_vm0, %v2998_v0  ;;  %746 = vmatpush.msrb.mxu1 %v573_v38  ;;  %1173 = vmatpush.msrb.mxu3 %v1162_v45  ;;  %v398_v38 = vld [vmem:[%s3120_s29 + $0x28] sm:$0xff]  ;;  %v423_v45 = vld [vmem:[%s3120_s29 + $0xf0] sm:$0xff] }
  0x44   : > { %339 = vst.msk [vmem:[#allocation2 + $0x158] sm:$0xff] %vm294_vm0, %v2998_v0  ;;  %909 = vmatpush.msrb.mxu2 %v896_v54  ;;  %1366 = vmatpush.msrb.mxu0 %v1355_v61  ;;  %v1154_v61 = vld [vmem:[#allocation5 + $0x190] sm:$0xff] }
  0x45   : > { %340 = vst.msk [vmem:[#allocation2 + $0x160] sm:$0x3] %vm297_vm1, %v2998_v0  ;;  %747 = vmatpush.msrb.mxu1 %v572_v41  ;;  %1174 = vmatpush.msrb.mxu3 %v1161_v58  ;;  %v414_v41 = vld [vmem:[%s3120_s29 + $0xa8] sm:$0xff] }
  0x46   : > { %341 = vst.msk [vmem:[#allocation2 + $0x168] sm:$0xff] %vm294_vm0, %v2998_v0  ;;  %910 = vmatpush.msrb.mxu2 %v895_v60  ;;  %1367 = vmatpush.msrb.mxu0 %v1354_v16  ;;  %v1349_v60 = vld [vmem:[#allocation5 + $0x220] sm:$0xff] }
  0x47   : > { %342 = vst.msk [vmem:[#allocation2 + $0x170] sm:$0xff] %vm294_vm0, %v2998_v0  ;;  %748 = vmatpush.msrb.mxu1 %v571_v42  ;;  %1175 = vmatpush.msrb.mxu3 %v1160_v10  ;;  %v1152_v10 = vld [vmem:[#allocation5 + $0x180] sm:$0xff] }
  0x48   : > { %343 = vst.msk [vmem:[#allocation2 + $0x178] sm:$0x3] %vm297_vm1, %v2998_v0  ;;  %911 = vmatpush.msrb.mxu2 %v894_v13  ;;  %1368 = vmatpush.msrb.mxu0 %v1353_v32  ;;  %v1346_v13 = vld [vmem:[#allocation5 + $0x208] sm:$0xff] }
  0x49   : > { %344 = vst.msk [vmem:[#allocation2 + $0x180] sm:$0xff] %vm294_vm0, %v2998_v0  ;;  %749 = vmatpush.msrb.mxu1 %v570_v47  ;;  %1176 = vmatpush.msrb.mxu3 %v1159_v17  ;;  %v891_v47 = vld [vmem:[#allocation5 + $0x120] sm:$0xff] }
  0x4a   : > { %345 = vst.msk [vmem:[#allocation2 + $0x188] sm:$0xff] %vm294_vm0, %v2998_v0  ;;  %912 = vmatpush.msrb.mxu2 %v893_v23  ;;  %1369 = vmatpush.msrb.mxu0 %v1352_v35  ;;  %v1552_v35 = vld [vmem:[#allocation5 + $0x2f0] sm:$0xff] }
  0x4b   : > { %346 = vst.msk [vmem:[#allocation2 + $0x190] sm:$0x3] %vm297_vm1, %v2998_v0  ;;  %750 = vmatpush.msrb.mxu1 %v569_v53  ;;  %1177 = vmatpush.msrb.mxu3 %v1158_v33 }
  0x4c   : > { %347 = vst.msk [vmem:[#allocation2 + $0x198] sm:$0xff] %vm294_vm0, %v2998_v0  ;;  %913 = vmatpush.msrb.mxu2 %v892_v34  ;;  %v2010_v34 = vld [vmem:[#allocation5 + $0x3f0] sm:$0xff] }
  0x4d   : > { %348 = vst.msk [vmem:[#allocation2 + $0x1a0] sm:$0xff] %vm294_vm0, %v2998_v0  ;;  %751 = vmatpush.msrb.mxu1 %v568_v57  ;;  %1178 = vmatpush.msrb.mxu3 %v1157_v37  ;;  %v424_v57 = vld [vmem:[%s3120_s29 + $0xf8] sm:$0xff]  ;;  %v2203_v37 = vld [vmem:[#allocation5 + $0x470] sm:$0xff] }
  0x4e   : > { %349 = vst.msk [vmem:[#allocation2 + $0x1a8] sm:$0x3] %vm297_vm1, %v2998_v0  ;;  %914 = vmatpush.msrb.mxu2 %v891_v47 }
  0x4f   : > { %362 = vst [vmem:[#allocation2 + $0x78] sm:$0x1] %v2998_v0  ;;  %752 = vmatpush.msrb.mxu1 %v567_v59  ;;  %v889_v59 = vld [vmem:[#allocation5 + $0x110] sm:$0xff] }
  0x50   : > { %380 = vst [vmem:[#allocation2 + $0x89] sm:$0x1] %v2998_v0 }
  0x51   : > { %365 = vst [vmem:[#allocation2 + $0xc0] sm:$0x1] %v2998_v0  ;;  %753 = vmatpush.msrb.mxu1 %v566_v1  ;;  %v1153_v1 = vld [vmem:[#allocation5 + $0x188] sm:$0xff] }
  0x52   : > { %441 = vst.msk [vmem:[#allocation2 + $0xc1] sm:$0xff] %vm426_vm2, %v407_v20  ;;  %v563_v20 = vld [vmem:[#allocation5] sm:$0xff] }
  0x53   : > { %350 = vst [vmem:[#allocation2] sm:$0xff] %v2998_v0  ;;  %754 = vmatpush.msrb.mxu1 %v565_v11  ;;  %v1818_v11 = vld [vmem:[#allocation5 + $0x378] sm:$0xff] }
  0x54   : > { %351 = vst [vmem:[#allocation2 + $0x8] sm:$0xff] %v2998_v0 }
  0x55   : > { %352 = vst [vmem:[#allocation2 + $0x10] sm:$0x3] %v2998_v0  ;;  %755 = vmatpush.msrb.mxu1 %v564_v14 }
  0x56   : > { %354 = vst [vmem:[#allocation2 + $0x198] sm:$0xff] %v2998_v0 }
  0x57   : > { %355 = vst [vmem:[#allocation2 + $0x1a0] sm:$0xff] %v2998_v0  ;;  %756 = vmatpush.msrb.mxu1 %v563_v20  ;;  %v1553_v20 = vld [vmem:[#allocation5 + $0x2f8] sm:$0xff] }
  0x58   : > { %356 = vst [vmem:[#allocation2 + $0x1a8] sm:$0x3] %v2998_v0 }
  0x59   : > { %v3232_v22 = vld [vmem:[#allocation2 + $0xc0] sm:$0xff]  ;;  %358 = vst [vmem:[#allocation2 + $0x18] sm:$0x1] %v2998_v0  ;;  %1554 = vmatpush.msra.mxu1 %v1553_v20 }
  0x5a   : > { %686 = vmatmul.f32.vlgmr.msra.gmra.mxu2 %v3232_v22  ;;  %359 = vst [vmem:[#allocation2 + $0x30] sm:$0x1] %v2998_v0 }
  0x5b   : > { %360 = vst [vmem:[#allocation2 + $0x48] sm:$0x1] %v2998_v0  ;;  %1555 = vmatpush.msra.mxu1 %v1552_v35 }
  0x5c   : > { %361 = vst [vmem:[#allocation2 + $0x60] sm:$0x1] %v2998_v0 }
  0x5d   : > { %363 = vst [vmem:[#allocation2 + $0x90] sm:$0x1] %v2998_v0 }
  0x5e   : > { %364 = vst [vmem:[#allocation2 + $0xa8] sm:$0x1] %v2998_v0 }
  0x5f   : > { %366 = vst [vmem:[#allocation2 + $0xd8] sm:$0x1] %v2998_v0 }
  0x60   : > { %367 = vst [vmem:[#allocation2 + $0xf0] sm:$0x1] %v2998_v0 }
  0x61   : > { %368 = vst [vmem:[#allocation2 + $0x108] sm:$0x1] %v2998_v0 }
  0x62   : > { %369 = vst [vmem:[#allocation2 + $0x120] sm:$0x1] %v2998_v0 }
  0x63   : > { %370 = vst [vmem:[#allocation2 + $0x138] sm:$0x1] %v2998_v0 }
  0x64   : > { %371 = vst [vmem:[#allocation2 + $0x150] sm:$0x1] %v2998_v0 }
  0x65   : > { %372 = vst [vmem:[#allocation2 + $0x168] sm:$0x1] %v2998_v0 }
  0x66   : > { %373 = vst [vmem:[#allocation2 + $0x180] sm:$0x1] %v2998_v0 }
  0x67   : > { %376 = vst [vmem:[#allocation2 + $0x29] sm:$0x1] %v2998_v0 }
  0x68   : > { %377 = vst [vmem:[#allocation2 + $0x41] sm:$0x1] %v2998_v0 }
  0x69   : > { %378 = vst [vmem:[#allocation2 + $0x59] sm:$0x1] %v2998_v0 }
  0x6a   : > { %379 = vst [vmem:[#allocation2 + $0x71] sm:$0x1] %v2998_v0 }
  0x6b   : > { %381 = vst [vmem:[#allocation2 + $0xa1] sm:$0x1] %v2998_v0 }
  0x6c   : > { %382 = vst [vmem:[#allocation2 + $0xb9] sm:$0x1] %v2998_v0 }
  0x6d   : > { %383 = vst [vmem:[#allocation2 + $0xd1] sm:$0x1] %v2998_v0 }
  0x6e   : > { %384 = vst [vmem:[#allocation2 + $0xe9] sm:$0x1] %v2998_v0 }
  0x6f   : > { %385 = vst [vmem:[#allocation2 + $0x101] sm:$0x1] %v2998_v0 }
  0x70   : > { %386 = vst [vmem:[#allocation2 + $0x119] sm:$0x1] %v2998_v0 }
  0x71   : > { %387 = vst [vmem:[#allocation2 + $0x131] sm:$0x1] %v2998_v0 }
  0x72   : > { %388 = vst [vmem:[#allocation2 + $0x149] sm:$0x1] %v2998_v0 }
  0x73   : > { %389 = vst [vmem:[#allocation2 + $0x161] sm:$0x1] %v2998_v0 }
  0x74   : > { %390 = vst [vmem:[#allocation2 + $0x179] sm:$0x1] %v2998_v0 }
  0x75   : > { %391 = vst [vmem:[#allocation2 + $0x191] sm:$0x1] %v2998_v0 }
  0x76   : > { %357 = vst [vmem:[#allocation2] sm:$0x1] %v2998_v0 }
  0x77   : > { %374 = vst [vmem:[#allocation2 + $0x198] sm:$0x1] %v2998_v0 }
  0x78   : > { %375 = vst [vmem:[#allocation2 + $0x11] sm:$0x1] %v2998_v0 }
  0x79   : > { %392 = vst [vmem:[#allocation2 + $0x1a9] sm:$0x1] %v2998_v0 }
  0x7a   : > { %449 = vst.msk [vmem:[#allocation2 + $0x121] sm:$0xff] %vm426_vm2, %v415_v46 }
  0x7b   : > { %450 = vst.msk [vmem:[#allocation2 + $0x129] sm:$0xff] %vm426_vm2, %v416_v48  ;;  %v1351_v48 = vld [vmem:[#allocation5 + $0x230] sm:$0xff] }
  0x7c   : > { %437 = vst.msk [vmem:[#allocation2 + $0x91] sm:$0xff] %vm426_vm2, %v403_v49  ;;  %v1156_v49 = vld [vmem:[#allocation5 + $0x1a0] sm:$0xff]  ;;  %1370 = vmatpush.msrb.mxu0 %v1351_v48  ;;  %v2202_v48 = vld [vmem:[#allocation5 + $0x468] sm:$0xff] }
  0x7d   : > { %442 = vst.msk [vmem:[#allocation2 + $0xc9] sm:$0xff] %vm426_vm2, %v408_v50  ;;  %v890_v50 = vld [vmem:[#allocation5 + $0x118] sm:$0xff]  ;;  %1179 = vmatpush.msrb.mxu3 %v1156_v49 }
  0x7e   : > { %427 = vst.msk [vmem:[#allocation2 + $0x19] sm:$0xff] %vm426_vm2, %v393_v51  ;;  %v1350_v51 = vld [vmem:[#allocation5 + $0x228] sm:$0xff]  ;;  %915 = vmatpush.msrb.mxu2 %v890_v50  ;;  %v2008_v50 = vld [vmem:[#allocation5 + $0x3e0] sm:$0xff] }
  0x7f   : > { %451 = vst.msk [vmem:[#allocation2 + $0x139] sm:$0xff] %vm426_vm2, %v417_v52  ;;  %v1155_v52 = vld [vmem:[#allocation5 + $0x198] sm:$0xff]  ;;  %1371 = vmatpush.msrb.mxu0 %v1350_v51  ;;  %v1550_v51 = vld [vmem:[#allocation5 + $0x2e0] sm:$0xff] }
  0x80   : > { %438 = vst.msk [vmem:[#allocation2 + $0x99] sm:$0xff] %vm426_vm2, %v404_v56  ;;  %1180 = vmatpush.msrb.mxu3 %v1155_v52  ;;  %v400_v56 = vld [vmem:[%s3120_s29 + $0x38] sm:$0xff]  ;;  %916 = vmatpush.msrb.mxu2 %v889_v59  ;;  %v2007_v59 = vld [vmem:[#allocation5 + $0x3d8] sm:$0xff]  ;;  %s2776_s29 = sshll.u32 %s286_s23, 8 }
  0x81   : > { %443 = vst.msk [vmem:[#allocation2 + $0xd9] sm:$0xff] %vm426_vm2, %v409_v62  ;;  %v888_v62 = vld [vmem:[#allocation5 + $0x108] sm:$0xff]  ;;  %1372 = vmatpush.msrb.mxu0 %v1349_v60  ;;  %v3402_v32 = vld [vmem:[#allocation2 + $0x120] sm:$0xff]  ;;  %v1549_v60 = vld [vmem:[#allocation5 + $0x2d8] sm:$0xff]  ;;  %s4395_s8 = scalar_lea.vmem [#allocation8], %s2776_s29 }
  0x82   : > { %v3288_v5 = vld [vmem:[#allocation2 + $0x128] sm:$0xff]  ;;  %428 = vst.msk [vmem:[#allocation2 + $0x21] sm:$0xff] %vm426_vm2, %v394_v63  ;;  %1181 = vmatpush.msrb.mxu3 %v1154_v61  ;;  %917 = vmatpush.msrb.mxu2 %v888_v62  ;;  %s2693_s15 = sshll.u32 %s4395_s8, 4  ;;  %s2694_s15 = int_to_ptr.vmem [resolvable:$true] %s2693_s15 }
  0x83   : > { %713 = vmatmul.f32.vlgmr.msra.gmra.mxu3 %v3288_v5  ;;  %v3294_v8 = vld [vmem:[#allocation2 + $0x90] sm:$0xff]  ;;  %452 = vst.msk [vmem:[#allocation2 + $0x141] sm:$0xff] %vm426_vm2, %v418_v2  ;;  %v1348_v63 = vld [vmem:[#allocation5 + $0x218] sm:$0xff] }
  0x84   : > { %674 = vmatmul.f32.gmra.mxu1 %v3294_v8  ;;  %v3299_v12 = vld [vmem:[#allocation2 + $0xc8] sm:$0xff]  ;;  %439 = vst.msk [vmem:[#allocation2 + $0xa9] sm:$0xff] %vm426_vm2, %v405_v3  ;;  %1373 = vmatpush.msrb.mxu0 %v1348_v63  ;;  %v459_v3 = vld [vmem:[#allocation2] sm:$0xff] }
  0x85   : > { %689 = vmatmul.f32.gmra.mxu2 %v3299_v12  ;;  %v3303_v15 = vld [vmem:[#allocation2 + $0x18] sm:$0xff]  ;;  %444 = vst.msk [vmem:[#allocation2 + $0xe1] sm:$0xff] %vm426_vm2, %v410_v4  ;;  %1182 = vmatpush.msrb.mxu3 %v1153_v1  ;;  %v2200_v62 = vld [vmem:[#allocation5 + $0x458] sm:$0xff]  ;;  %v1813_v63 = vld [vmem:[#allocation5 + $0x350] sm:$0xff] }
  0x86   : > { %644 = vmatmul.f32.vlgmr.msra.gmra.mxu0 %v3303_v15  ;;  %429 = vst.msk [vmem:[#allocation2 + $0x31] sm:$0xff] %vm426_vm2, %v395_v6  ;;  %v3311_v24 = vld [vmem:[#allocation2 + $0x138] sm:$0xff] }
  0x87   : > { %453 = vst.msk [vmem:[#allocation2 + $0x151] sm:$0xff] %vm426_vm2, %v419_v7  ;;  %v3315_v26 = vld [vmem:[#allocation2 + $0x98] sm:$0xff]  ;;  %v887_v7 = vld [vmem:[#allocation5 + $0x100] sm:$0xff]  ;;  %1183 = vmatpush.msrb.mxu3 %v1152_v10 }
  0x88   : > { %440 = vst.msk [vmem:[#allocation2 + $0xb1] sm:$0xff] %vm426_vm2, %v406_v9  ;;  %v3319_v28 = vld [vmem:[#allocation2 + $0xd8] sm:$0xff]  ;;  %v1347_v9 = vld [vmem:[#allocation5 + $0x210] sm:$0xff]  ;;  %918 = vmatpush.msrb.mxu2 %v887_v7 }
  0x89   : > { %445 = vst.msk [vmem:[#allocation2 + $0xf1] sm:$0xff] %vm426_vm2, %v411_v18  ;;  %v3325_v31 = vld [vmem:[#allocation2 + $0x20] sm:$0xff]  ;;  %1374 = vmatpush.msrb.mxu0 %v1347_v9  ;;  %v2011_v18 = vld [vmem:[#allocation5 + $0x3f8] sm:$0xff] }
  0x8a   : > { %430 = vst.msk [vmem:[#allocation2 + $0x39] sm:$0xff] %vm426_vm2, %v396_v21  ;;  %v3338_v40 = vld [vmem:[#allocation2 + $0x140] sm:$0xff]  ;;  %1819 = vmatpush.msra.mxu2 %v1818_v11  ;;  %2012 = vmatpush.msra.mxu3 %v2011_v18  ;;  %v1345_v21 = vld [vmem:[#allocation5 + $0x200] sm:$0xff]  ;;  %v1812_v18 = vld [vmem:[#allocation5 + $0x348] sm:$0xff] }
  0x8b   : > { %716 = vmatmul.f32.gmra.mxu3 %v3311_v24  ;;  %454 = vst.msk [vmem:[#allocation2 + $0x159] sm:$0xff] %vm426_vm2, %v420_v25  ;;  %v3342_v42 = vld [vmem:[#allocation2 + $0xa8] sm:$0xff]  ;;  %1375 = vmatpush.msrb.mxu0 %v1346_v13  ;;  %v1548_v7 = vld [vmem:[#allocation5 + $0x2d0] sm:$0xff] }
  0x8c   : > { %677 = vmatmul.f32.gmra.mxu1 %v3315_v26  ;;  %446 = vst.msk [vmem:[#allocation2 + $0xf9] sm:$0xff] %vm426_vm2, %v412_v27  ;;  %v3345_v43 = vld [vmem:[#allocation2 + $0xe0] sm:$0xff]  ;;  %2013 = vmatpush.msra.mxu3 %v2010_v34 }
  0x8d   : > { %692 = vmatmul.f32.gmra.mxu2 %v3319_v28  ;;  %431 = vst.msk [vmem:[#allocation2 + $0x49] sm:$0xff] %vm426_vm2, %v397_v29  ;;  %v3351_v46 = vld [vmem:[#allocation2 + $0x30] sm:$0xff]  ;;  %1376 = vmatpush.msrb.mxu0 %v1345_v21  ;;  %v2204_v29 = vld [vmem:[#allocation5 + $0x478] sm:$0xff] }
  0x8e   : > { %647 = vmatmul.f32.gmra.mxu0 %v3325_v31  ;;  %455 = vst.msk [vmem:[#allocation2 + $0x169] sm:$0xff] %vm426_vm2, %v421_v30  ;;  %v3358_v53 = vld [vmem:[#allocation2 + $0x150] sm:$0xff]  ;;  %v1051_v47 = vld [vmem:[#allocation2 + $0x21] sm:$0xff] }
  0x8f   : > { %447 = vst.msk [vmem:[#allocation2 + $0x109] sm:$0xff] %vm426_vm2, %v413_v36  ;;  %v3360_v54 = vld [vmem:[#allocation2 + $0xb0] sm:$0xff]  ;;  %2205 = vmatpush.msra.mxu0 %v2204_v29  ;;  %v469_v36 = vld [vmem:[#allocation2 + $0x78] sm:$0xff] }
  0x90   : > { %432 = vst.msk [vmem:[#allocation2 + $0x51] sm:$0xff] %vm426_vm2, %v398_v38  ;;  %v3362_v55 = vld [vmem:[#allocation2 + $0xf0] sm:$0xff]  ;;  %v1816_v38 = vld [vmem:[#allocation5 + $0x368] sm:$0xff] }
  0x91   : > { %456 = vst.msk [vmem:[#allocation2 + $0x171] sm:$0xff] %vm426_vm2, %v422_v39  ;;  %v3367_v58 = vld [vmem:[#allocation2 + $0x38] sm:$0xff]  ;;  %2206 = vmatpush.msra.mxu0 %v2203_v37  ;;  %v3475_v37 = vld [vmem:[#allocation2 + $0x81] sm:$0xff] }
  0x92   : > { %448 = vst.msk [vmem:[#allocation2 + $0x111] sm:$0xff] %vm426_vm2, %v414_v41  ;;  %v3374_v2 = vld [vmem:[#allocation2 + $0x158] sm:$0xff] }
  0x93   : > { %719 = vmatmul.f32.gmra.mxu3 %v3338_v40  ;;  %433 = vst.msk [vmem:[#allocation2 + $0x61] sm:$0xff] %vm426_vm2, %v399_v44  ;;  %v3376_v4 = vld [vmem:[#allocation2 + $0xf8] sm:$0xff]  ;;  %2207 = vmatpush.msra.mxu0 %v2202_v48  ;;  %v1546_v48 = vld [vmem:[#allocation5 + $0x2c0] sm:$0xff] }
  0x94   : > { %680 = vmatmul.f32.gmra.mxu1 %v3342_v42  ;;  %457 = vst.msk [vmem:[#allocation2 + $0x181] sm:$0xff] %vm426_vm2, %v423_v45  ;;  %v3379_v6 = vld [vmem:[#allocation2 + $0x48] sm:$0xff]  ;;  %v1050_v39 = vld [vmem:[#allocation2 + $0x19] sm:$0xff]  ;;  %v3416_v49 = vld [vmem:[#allocation2 + $0x31] sm:$0xff] }
  0x95   : > { %695 = vmatmul.f32.gmra.mxu2 %v3345_v43  ;;  %434 = vst.msk [vmem:[#allocation2 + $0x69] sm:$0xff] %vm426_vm2, %v400_v56  ;;  %v3383_v14 = vld [vmem:[#allocation2 + $0x168] sm:$0xff]  ;;  %v2009_v41 = vld [vmem:[#allocation5 + $0x3e8] sm:$0xff]  ;;  %v2201_v56 = vld [vmem:[#allocation5 + $0x460] sm:$0xff] }
  0x96   : > { %650 = vmatmul.f32.gmra.mxu0 %v3351_v46  ;;  %458 = vst.msk [vmem:[#allocation2 + $0x189] sm:$0xff] %vm426_vm2, %v424_v57  ;;  %v3385_v16 = vld [vmem:[#allocation2 + $0x108] sm:$0xff]  ;;  %v1551_v44 = vld [vmem:[#allocation5 + $0x2e8] sm:$0xff]  ;;  %2014 = vmatpush.msra.mxu3 %v2009_v41 }
  0x97   : > { %v3388_v17 = vld [vmem:[#allocation2 + $0x50] sm:$0xff]  ;;  %1556 = vmatpush.msra.mxu1 %v1551_v44  ;;  %v3421_v52 = vld [vmem:[#allocation2 + $0x39] sm:$0xff]  ;;  %2208 = vmatpush.msra.mxu0 %v2201_v56  ;;  %v1814_v57 = vld [vmem:[#allocation5 + $0x358] sm:$0xff] }
  0x98   : > { %v3393_v23 = vld [vmem:[#allocation2 + $0x170] sm:$0xff]  ;;  %2015 = vmatpush.msra.mxu3 %v2008_v50  ;;  %v3461_v29 = vld [vmem:[#allocation2 + $0x79] sm:$0xff] }
  0x99   : > { %v3395_v25 = vld [vmem:[#allocation2 + $0x110] sm:$0xff]  ;;  %1557 = vmatpush.msra.mxu1 %v1550_v51  ;;  %2209 = vmatpush.msra.mxu0 %v2200_v62  ;;  %v3501_v56 = vld [vmem:[#allocation2 + $0x99] sm:$0xff] }
  0x9a   : > { %v467_v27 = vld [vmem:[#allocation2 + $0x60] sm:$0xff]  ;;  %v1049_v45 = vld [vmem:[#allocation2 + $0x9] sm:$0xff]  ;;  %2016 = vmatpush.msra.mxu3 %v2007_v59  ;;  %v3429_v61 = vld [vmem:[#allocation2 + $0x51] sm:$0xff] }
  0x9b   : > { %722 = vmatmul.f32.gmra.mxu3 %v3358_v53  ;;  %v3400_v30 = vld [vmem:[#allocation2 + $0x180] sm:$0xff]  ;;  %1558 = vmatpush.msra.mxu1 %v1549_v60  ;;  %v1810_v59 = vld [vmem:[#allocation5 + $0x338] sm:$0xff] }
  0x9c   : > { %683 = vmatmul.f32.gmra.mxu1 %v3360_v54  ;;  %v468_v33 = vld [vmem:[#allocation2 + $0x68] sm:$0xff] }
  0x9d   : > { %698 = vmatmul.f32.gmra.mxu2 %v3362_v55  ;;  %1559 = vmatpush.msra.mxu1 %v1548_v7  ;;  %v3447_v13 = vld [vmem:[#allocation2 + $0x69] sm:$0xff] }
  0x9e   : > { %653 = vmatmul.f32.gmra.mxu0 %v3367_v58  ;;  %v2003_v7 = vld [vmem:[#allocation5 + $0x3b8] sm:$0xff] }
  0xa3   : > { %725 = vmatmul.f32.gmra.mxu3 %v3374_v2 }
  0xa4   : > { %757 = vmatmul.f32.vlgmr.msrb.gmra.mxu1 %v459_v3  ;;  %v3435_v3 = vld [vmem:[#allocation2 + $0x61] sm:$0xff] }
  0xa5   : > { %701 = vmatmul.f32.gmra.mxu2 %v3376_v4 }
  0xa6   : > { %656 = vmatmul.f32.gmra.mxu0 %v3379_v6 }
  0xab   : > { %728 = vmatmul.f32.gmra.mxu3 %v3383_v14 }
  0xac   : > { %760 = vmatmul.f32.gmra.mxu1 %v2998_v0  ;;  %v1817_v0 = vld [vmem:[#allocation5 + $0x370] sm:$0xff] }
  0xad   : > { %704 = vmatmul.f32.gmra.mxu2 %v3385_v16 }
  0xae   : > { %659 = vmatmul.f32.gmra.mxu0 %v3388_v17  ;;  %1820 = vmatpush.msra.mxu2 %v1817_v0  ;;  %v2005_v0 = vld [vmem:[#allocation5 + $0x3c8] sm:$0xff] }
  0xb0   : > { %1821 = vmatpush.msra.mxu2 %v1816_v38  ;;  %v2198_v38 = vld [vmem:[#allocation5 + $0x448] sm:$0xff] }
  0xb3   : > { %731 = vmatmul.f32.gmra.mxu3 %v3393_v23 }
  0xb4   : > { %763 = vmatmul.f32.gmra.mxu1 %v3303_v15  ;;  %v3407_v15 = vld [vmem:[#allocation2 + $0x188] sm:$0xff]  ;;  %v3432_v1 = vpop.f32.mrf.mxu1 }
  0xb5   : > { %707 = vmatmul.f32.gmra.mxu2 %v3395_v25 }
  0xb6   : > { %662 = vmatmul.f32.gmra.mxu0 %v467_v27 }
  0xbb   : > { %734 = vmatmul.f32.gmra.mxu3 %v3400_v30 }
  0xbc   : > { %766 = vmatmul.f32.gmra.mxu1 %v3325_v31  ;;  %v1048_v31 = vld [vmem:[#allocation2 + $0x1] sm:$0xff] }
  0xbd   : > { %710 = vmatmul.f32.gmra.mxu2 %v3402_v32 }
  0xbe   : > { %665 = vmatmul.f32.gmra.mxu0 %v468_v33 }
  0xc3   : > { %737 = vmatmul.f32.gmra.mxu3 %v3407_v15 }
  0xc4   : > { %769 = vmatmul.f32.gmra.mxu1 %v3351_v46 }
  0xc5   : > { %919 = vmatmul.f32.vlgmr.msrb.gmra.mxu2 %v3351_v46  ;;  %v1815_v46 = vld [vmem:[#allocation5 + $0x360] sm:$0xff] }
  0xc6   : > { %668 = vmatmul.f32.gmra.mxu0 %v469_v36  ;;  %1822 = vmatpush.msra.mxu2 %v1815_v46 }
  0xc8   : > { %1823 = vmatpush.msra.mxu2 %v1814_v57  ;;  %v2197_v57 = vld [vmem:[#allocation5 + $0x440] sm:$0xff] }
  0xca   : > { %1824 = vmatpush.msra.mxu2 %v1813_v63 }
  0xcb   : > { %1184 = vmatmul.f32.vlgmr.msrb.gmra.mxu3 %v1048_v31  ;;  %v1811_v31 = vld [vmem:[#allocation5 + $0x340] sm:$0xff] }
  0xcc   : > { %772 = vmatmul.f32.gmra.mxu1 %v3367_v58  ;;  %1825 = vmatpush.msra.mxu2 %v1812_v18 }
  0xcd   : > { %922 = vmatmul.f32.gmra.mxu2 %v3367_v58  ;;  %v3425_v58 = vld [vmem:[#allocation2 + $0x49] sm:$0xff] }
  0xce   : > { %1377 = vmatmul.f32.vlgmr.msrb.gmra.mxu0 %v1050_v39  ;;  %1826 = vmatpush.msra.mxu2 %v1811_v31  ;;  %v2196_v31 = vld [vmem:[#allocation5 + $0x438] sm:$0xff] }
  0xd0   : > { %1827 = vmatpush.msra.mxu2 %v1810_v59 }
  0xd3   : > { %1187 = vmatmul.f32.gmra.mxu3 %v1049_v45  ;;  %v3489_v45 = vld [vmem:[#allocation2 + $0x91] sm:$0xff] }
  0xd4   : > { %775 = vmatmul.f32.gmra.mxu1 %v3379_v6 }
  0xd5   : > { %925 = vmatmul.f32.gmra.mxu2 %v3379_v6  ;;  %v2006_v6 = vld [vmem:[#allocation5 + $0x3d0] sm:$0xff] }
  0xd6   : > { %1380 = vmatmul.f32.gmra.mxu0 %v1051_v47  ;;  %2017 = vmatpush.msra.mxu3 %v2006_v6  ;;  %v3515_v6 = vld [vmem:[#allocation2 + $0xa9] sm:$0xff] }
  0xd8   : > { %2018 = vmatpush.msra.mxu3 %v2005_v0 }
  0xdb   : > { %1190 = vmatmul.f32.gmra.mxu3 %v1050_v39 }
  0xdc   : > { %778 = vmatmul.f32.gmra.mxu1 %v3388_v17 }
  0xdd   : > { %928 = vmatmul.f32.gmra.mxu2 %v3388_v17  ;;  %v3440_v9 = vpop.f32.mrf.mxu2  ;;  %v2199_v17 = vld [vmem:[#allocation5 + $0x450] sm:$0xff] }
  0xde   : > { %1383 = vmatmul.f32.gmra.mxu0 %v3416_v49 }
  0xdf   : > { %2210 = vmatpush.msra.mxu0 %v2199_v17  ;;  %v1545_v17 = vld [vmem:[#allocation5 + $0x2b8] sm:$0xff] }
  0xe1   : > { %2211 = vmatpush.msra.mxu0 %v2198_v38  ;;  %v3529_v38 = vld [vmem:[#allocation2 + $0xb1] sm:$0xff] }
  0xe2   : > { %4580 = vst [vmem:[#allocation17_spill] sm:$0xff] %v3529_v38 }
  0xe3   : > { %1193 = vmatmul.f32.gmra.mxu3 %v1051_v47  ;;  %v2004_v47 = vld [vmem:[#allocation5 + $0x3c0] sm:$0xff]  ;;  %2212 = vmatpush.msra.mxu0 %v2197_v57  ;;  %v1809_v57 = vld [vmem:[#allocation5 + $0x330] sm:$0xff] }
  0xe4   : > { %781 = vmatmul.f32.gmra.mxu1 %v467_v27  ;;  %2019 = vmatpush.msra.mxu3 %v2004_v47 }
  0xe5   : > { %931 = vmatmul.f32.gmra.mxu2 %v467_v27  ;;  %2213 = vmatpush.msra.mxu0 %v2196_v31  ;;  %v1544_v31 = vld [vmem:[#allocation5 + $0x2b0] sm:$0xff] }
  0xe6   : > { %1386 = vmatmul.f32.gmra.mxu0 %v3421_v52  ;;  %2020 = vmatpush.msra.mxu3 %v2003_v7  ;;  %v3543_v7 = vld [vmem:[#allocation2 + $0xc1] sm:$0xff] }
  0xe7   : > { %1828 = vmatpush.msra.mxu2 %v1809_v57  ;;  %4582 = vst [vmem:[#allocation19_spill] sm:$0xff] %v3543_v7 }
  0xeb   : > { %1196 = vmatmul.f32.gmra.mxu3 %v3416_v49 }
  0xec   : > { %784 = vmatmul.f32.gmra.mxu1 %v468_v33 }
  0xed   : > { %934 = vmatmul.f32.gmra.mxu2 %v468_v33  ;;  %v1547_v33 = vld [vmem:[#allocation5 + $0x2c8] sm:$0xff] }
  0xee   : > { %1389 = vmatmul.f32.gmra.mxu0 %v3425_v58  ;;  %1560 = vmatpush.msra.mxu1 %v1547_v33 }
  0xf0   : > { %1561 = vmatpush.msra.mxu1 %v1546_v48 }
  0xf2   : > { %1562 = vmatpush.msra.mxu1 %v1545_v17  ;;  %v2002_v17 = vld [vmem:[#allocation5 + $0x3b0] sm:$0xff] }
  0xf3   : > { %1199 = vmatmul.f32.gmra.mxu3 %v3421_v52 }
  0xf4   : > { %787 = vmatmul.f32.gmra.mxu1 %v469_v36  ;;  %2021 = vmatpush.msra.mxu3 %v2002_v17 }
  0xf5   : > { %937 = vmatmul.f32.gmra.mxu2 %v469_v36  ;;  %1563 = vmatpush.msra.mxu1 %v1544_v31 }
  0xf6   : > { %1392 = vmatmul.f32.gmra.mxu0 %v3429_v61 }
  0xfb   : > { %1202 = vmatmul.f32.gmra.mxu3 %v3425_v58 }
  0xfc   : > { %790 = vmatmul.f32.gmra.mxu1 %v3176_v19 }
  0xfd   : > { %940 = vmatmul.f32.gmra.mxu2 %v3176_v19 }
  0xfe   : > { %1395 = vmatmul.f32.gmra.mxu0 %v3435_v3 }
 0x101   : > { %v3442_v10 = vpop.f32.mrf.mxu1 }
 0x103   : > { %1205 = vmatmul.f32.gmra.mxu3 %v3429_v61  ;;  %v3445_v11 = vpop.f32.mrf.mxu0 }
 0x104   : > { %793 = vmatmul.f32.gmra.mxu1 %v3294_v8 }
 0x105   : > { %943 = vmatmul.f32.gmra.mxu2 %v3294_v8 }
 0x106   : > { %v3451_v19 = vpop.f32.mrf.mxu3  ;;  %1398 = vmatmul.f32.gmra.mxu0 %v3447_v13 }
 0x107   : > { %4574 = vst [vmem:[#allocation11_spill] sm:$0xff] %v3451_v19 }
 0x108   : > { %v3454_v20 = vpop.f32.mrf.mxu2 }
 0x109   : > { %v3456_v21 = vpop.f32.mrf.mxu1 }
 0x10b   : > { %1208 = vmatmul.f32.gmra.mxu3 %v3435_v3  ;;  %v3459_v27 = vpop.f32.mrf.mxu0 }
 0x10c   : > { %796 = vmatmul.f32.gmra.mxu1 %v3315_v26 }
 0x10d   : > { %946 = vmatmul.f32.gmra.mxu2 %v3315_v26 }
 0x10e   : > { %v3465_v8 = vpop.f32.mrf.mxu3  ;;  %1401 = vmatmul.f32.gmra.mxu0 %v3461_v29 }
 0x10f   : > { %4575 = vst [vmem:[#allocation12_spill] sm:$0xff] %v3465_v8  ;;  %v1808_v8 = vld [vmem:[#allocation5 + $0x328] sm:$0xff] }
 0x110   : > { %v3468_v34 = vpop.f32.mrf.mxu2  ;;  %1829 = vmatpush.msra.mxu2 %v1808_v8 }
 0x111   : > { %v3470_v35 = vpop.f32.mrf.mxu1 }
 0x113   : > { %1211 = vmatmul.f32.gmra.mxu3 %v3447_v13  ;;  %v3473_v36 = vpop.f32.mrf.mxu0 }
 0x114   : > { %799 = vmatmul.f32.gmra.mxu1 %v3342_v42 }
 0x115   : > { %949 = vmatmul.f32.gmra.mxu2 %v3342_v42 }
 0x116   : > { %v3479_v26 = vpop.f32.mrf.mxu3  ;;  %1404 = vmatmul.f32.gmra.mxu0 %v3475_v37 }
 0x117   : > { %4576 = vst [vmem:[#allocation13_spill] sm:$0xff] %v3479_v26 }
 0x118   : > { %v3482_v39 = vpop.f32.mrf.mxu2 }
 0x119   : > { %v3484_v41 = vpop.f32.mrf.mxu1 }
 0x11b   : > { %1214 = vmatmul.f32.gmra.mxu3 %v3461_v29  ;;  %v3487_v44 = vpop.f32.mrf.mxu0 }
 0x11c   : > { %802 = vmatmul.f32.gmra.mxu1 %v3360_v54 }
 0x11d   : > { %952 = vmatmul.f32.gmra.mxu2 %v3360_v54 }
 0x11e   : > { %v3493_v42 = vpop.f32.mrf.mxu3  ;;  %1407 = vmatmul.f32.gmra.mxu0 %v3489_v45 }
 0x11f   : > { %4577 = vst [vmem:[#allocation14_spill] sm:$0xff] %v3493_v42  ;;  %v2195_v42 = vld [vmem:[#allocation5 + $0x430] sm:$0xff] }
 0x120   : > { %v3496_v46 = vpop.f32.mrf.mxu2  ;;  %2214 = vmatpush.msra.mxu0 %v2195_v42  ;;  %v2001_v42 = vld [vmem:[#allocation5 + $0x3a8] sm:$0xff] }
 0x121   : > { %v758_v50 = vpop.f32.mrf.mxu1  ;;  %2022 = vmatpush.msra.mxu3 %v2001_v42  ;;  %v3580_v42 = vld [vmem:[#allocation2 + $0xe1] sm:$0xff] }
 0x122   : > { %v759_v17 = vadd.f32 %v758_v50, %v3445_v11 }
 0x123   : > { %1217 = vmatmul.f32.gmra.mxu3 %v3475_v37  ;;  %v3499_v51 = vpop.f32.mrf.mxu0 }
 0x124   : > { %805 = vmatmul.f32.gmra.mxu1 %v3232_v22 }
 0x125   : > { %955 = vmatmul.f32.gmra.mxu2 %v3232_v22 }
 0x126   : > { %v3505_v54 = vpop.f32.mrf.mxu3  ;;  %1410 = vmatmul.f32.gmra.mxu0 %v3501_v56 }
 0x127   : > { %4578 = vst [vmem:[#allocation15_spill] sm:$0xff] %v3505_v54  ;;  %v3557_v54 = vld [vmem:[#allocation2 + $0xc9] sm:$0xff] }
 0x128   : > { %v3508_v60 = vpop.f32.mrf.mxu2 }
 0x129   : > { %v3510_v62 = vpop.f32.mrf.mxu1 }
 0x12a   : > { %v762_v11 = vadd.f32 %v3510_v62, %v3459_v27 }
 0x12b   : > { %1220 = vmatmul.f32.gmra.mxu3 %v3489_v45  ;;  %v3513_v63 = vpop.f32.mrf.mxu0 }
 0x12c   : > { %808 = vmatmul.f32.gmra.mxu1 %v3299_v12 }
 0x12d   : > { %958 = vmatmul.f32.gmra.mxu2 %v3299_v12 }
 0x12e   : > { %v3519_v22 = vpop.f32.mrf.mxu3  ;;  %1413 = vmatmul.f32.gmra.mxu0 %v3515_v6 }
 0x12f   : > { %4579 = vst [vmem:[#allocation16_spill] sm:$0xff] %v3519_v22 }
 0x130   : > { %v3522_v18 = vpop.f32.mrf.mxu2 }
 0x131   : > { %v3524_v0 = vpop.f32.mrf.mxu1 }
 0x133   : > { %1223 = vmatmul.f32.gmra.mxu3 %v3501_v56  ;;  %v3527_v33 = vpop.f32.mrf.mxu0 }
 0x134   : > { %811 = vmatmul.f32.gmra.mxu1 %v3319_v28 }
 0x135   : > { %961 = vmatmul.f32.gmra.mxu2 %v3319_v28 }
 0x136   : > { %v3533_v12 = vpop.f32.mrf.mxu3  ;;  %1416 = vmatmul.f32.gmra.mxu0 %v3529_v38 }
 0x137   : > { %4581 = vst [vmem:[#allocation18_spill] sm:$0xff] %v3533_v12 }
 0x138   : > { %v3536_v47 = vpop.f32.mrf.mxu2 }
 0x139   : > { %v3538_v48 = vpop.f32.mrf.mxu1 }
 0x13b   : > { %1226 = vmatmul.f32.gmra.mxu3 %v3515_v6  ;;  %v3541_v59 = vpop.f32.mrf.mxu0 }
 0x13c   : > { %814 = vmatmul.f32.gmra.mxu1 %v3345_v43 }
 0x13d   : > { %964 = vmatmul.f32.gmra.mxu2 %v3345_v43 }
 0x13e   : > { %v3547_v28 = vpop.f32.mrf.mxu3  ;;  %1419 = vmatmul.f32.gmra.mxu0 %v3543_v7 }
 0x13f   : > { %4583 = vst [vmem:[#allocation20_spill] sm:$0xff] %v3547_v28 }
 0x140   : > { %v3550_v12 = vpop.f32.mrf.mxu2 }
 0x141   : > { %4584 = vst [vmem:[#allocation21_spill] sm:$0xff] %v3550_v12  ;;  %v3552_v57 = vpop.f32.mrf.mxu1  ;;  %v1543_v12 = vld [vmem:[#allocation5 + $0x2a8] sm:$0xff] }
 0x142   : > { %1564 = vmatpush.msra.mxu1 %v1543_v12 }
 0x143   : > { %1229 = vmatmul.f32.gmra.mxu3 %v3529_v38  ;;  %v3555_v22 = vpop.f32.mrf.mxu0  ;;  %v3568_v38 = vld [vmem:[#allocation2 + $0xd9] sm:$0xff] }
 0x144   : > { %817 = vmatmul.f32.gmra.mxu1 %v3362_v55 }
 0x145   : > { %967 = vmatmul.f32.gmra.mxu2 %v3362_v55 }
 0x146   : > { %v3561_v43 = vpop.f32.mrf.mxu3  ;;  %1422 = vmatmul.f32.gmra.mxu0 %v3557_v54 }
 0x147   : > { %4585 = vst [vmem:[#allocation22_spill] sm:$0xff] %v3561_v43 }
 0x148   : > { %v920_v31 = vpop.f32.mrf.mxu2 }
 0x149   : > { %v1016_v28 = vadd.f32 %v920_v31, %v759_v17  ;;  %v3565_v26 = vpop.f32.mrf.mxu1 }
 0x14b   : > { %1232 = vmatmul.f32.gmra.mxu3 %v3543_v7  ;;  %v1378_v19 = vpop.f32.mrf.mxu0 }
 0x14c   : > { %820 = vmatmul.f32.gmra.mxu1 %v3376_v4 }
 0x14d   : > { %970 = vmatmul.f32.gmra.mxu2 %v3376_v4  ;;  %v2194_v4 = vld [vmem:[#allocation5 + $0x428] sm:$0xff] }
 0x14e   : > { %v1185_v55 = vpop.f32.mrf.mxu3  ;;  %1425 = vmatmul.f32.gmra.mxu0 %v3568_v38 }
 0x14f   : > { %v1281_v8 = vadd.f32 %v1185_v55, %v1016_v28  ;;  %2215 = vmatpush.msra.mxu0 %v2194_v4  ;;  %v3592_v4 = vld [vmem:[#allocation2 + $0xf1] sm:$0xff] }
 0x150   : > { %v923_v50 = vpop.f32.mrf.mxu2 }
 0x151   : > { %v3575_v17 = vadd.f32 %v1378_v19, %v1281_v8  ;;  %v1017_v31 = vadd.f32 %v923_v50, %v762_v11  ;;  %v3577_v43 = vpop.f32.mrf.mxu1  ;;  %v765_v19 = vadd.f32 %v3524_v0, %v3473_v36  ;;  %v1807_v8 = vld [vmem:[#allocation5 + $0x320] sm:$0xff]  ;;  %v768_v0 = vadd.f32 %v3538_v48, %v3487_v44 }
 0x152   : > { %1830 = vmatpush.msra.mxu2 %v1807_v8  ;;  %v3604_v8 = vld [vmem:[#allocation2 + $0xf9] sm:$0xff]  ;;  %v771_v44 = vadd.f32 %v3552_v57, %v3499_v51  ;;  %v774_v57 = vadd.f32 %v3565_v26, %v3513_v63  ;;  %v777_v26 = vadd.f32 %v3577_v43, %v3527_v33 }
 0x153   : > { %4586 = vst [vmem:[#allocation23_spill] sm:$0xff] %v3575_v17  ;;  %1235 = vmatmul.f32.gmra.mxu3 %v3557_v54  ;;  %v1381_v7 = vpop.f32.mrf.mxu0  ;;  %v1542_v17 = vld [vmem:[#allocation5 + $0x2a0] sm:$0xff] }
 0x154   : > { %823 = vmatmul.f32.gmra.mxu1 %v3385_v16 }
 0x155   : > { %973 = vmatmul.f32.gmra.mxu2 %v3385_v16  ;;  %v2000_v16 = vld [vmem:[#allocation5 + $0x3a0] sm:$0xff]  ;;  %1565 = vmatpush.msra.mxu1 %v1542_v17 }
 0x156   : > { %v1188_v12 = vpop.f32.mrf.mxu3  ;;  %1428 = vmatmul.f32.gmra.mxu0 %v3580_v42  ;;  %2023 = vmatpush.msra.mxu3 %v2000_v16 }
 0x157   : > { %v1282_v27 = vadd.f32 %v1188_v12, %v1017_v31 }
 0x158   : > { %v926_v62 = vpop.f32.mrf.mxu2 }
 0x159   : > { %v3587_v28 = vadd.f32 %v1381_v7, %v1282_v27  ;;  %v1018_v55 = vadd.f32 %v926_v62, %v765_v19  ;;  %v3589_v11 = vpop.f32.mrf.mxu1 }
 0x15a   : > { %v780_v43 = vadd.f32 %v3589_v11, %v3541_v59 }
 0x15b   : > { %1238 = vmatmul.f32.gmra.mxu3 %v3568_v38  ;;  %v1384_v50 = vpop.f32.mrf.mxu0 }
 0x15c   : > { %826 = vmatmul.f32.gmra.mxu1 %v3395_v25 }
 0x15d   : > { %976 = vmatmul.f32.gmra.mxu2 %v3395_v25  ;;  %v2193_v25 = vld [vmem:[#allocation5 + $0x420] sm:$0xff] }
 0x15e   : > { %v1191_v36 = vpop.f32.mrf.mxu3  ;;  %1431 = vmatmul.f32.gmra.mxu0 %v3592_v4 }
 0x15f   : > { %v1283_v7 = vadd.f32 %v1191_v36, %v1018_v55  ;;  %2216 = vmatpush.msra.mxu0 %v2193_v25  ;;  %v1541_v25 = vld [vmem:[#allocation5 + $0x298] sm:$0xff] }
 0x160   : > { %v929_v31 = vpop.f32.mrf.mxu2  ;;  %1566 = vmatpush.msra.mxu1 %v1541_v25 }
 0x161   : > { %v3599_v12 = vadd.f32 %v1384_v50, %v1283_v7  ;;  %v1019_v19 = vadd.f32 %v929_v31, %v768_v0  ;;  %v3601_v27 = vpop.f32.mrf.mxu1  ;;  %v1806_v0 = vld [vmem:[#allocation5 + $0x318] sm:$0xff] }
 0x162   : > { %1831 = vmatpush.msra.mxu2 %v1806_v0  ;;  %v3616_v31 = vld [vmem:[#allocation2 + $0x109] sm:$0xff]  ;;  %v3628_v0 = vld [vmem:[#allocation2 + $0x111] sm:$0xff]  ;;  %v783_v11 = vadd.f32 %v3601_v27, %v3555_v22 }
 0x163   : > { %1241 = vmatmul.f32.gmra.mxu3 %v3580_v42  ;;  %v1387_v62 = vpop.f32.mrf.mxu0 }
 0x164   : > { %829 = vmatmul.f32.gmra.mxu1 %v3402_v32 }
 0x165   : > { %979 = vmatmul.f32.gmra.mxu2 %v3402_v32  ;;  %v1999_v32 = vld [vmem:[#allocation5 + $0x398] sm:$0xff] }
 0x166   : > { %v1194_v17 = vpop.f32.mrf.mxu3  ;;  %1434 = vmatmul.f32.gmra.mxu0 %v3604_v8  ;;  %2024 = vmatpush.msra.mxu3 %v1999_v32 }
 0x167   : > { %v1284_v48 = vadd.f32 %v1194_v17, %v1019_v19 }
 0x168   : > { %v932_v55 = vpop.f32.mrf.mxu2 }
 0x169   : > { %v3611_v50 = vadd.f32 %v1387_v62, %v1284_v48  ;;  %v1020_v16 = vadd.f32 %v932_v55, %v771_v44  ;;  %v3613_v36 = vpop.f32.mrf.mxu1 }
 0x16b   : > { %1244 = vmatmul.f32.gmra.mxu3 %v3592_v4  ;;  %v1390_v7 = vpop.f32.mrf.mxu0 }
 0x16c   : > { %832 = vmatmul.f32.gmra.mxu1 %v3288_v5 }
 0x16d   : > { %982 = vmatmul.f32.gmra.mxu2 %v3288_v5  ;;  %v2192_v5 = vld [vmem:[#allocation5 + $0x418] sm:$0xff] }
 0x16e   : > { %v1197_v51 = vpop.f32.mrf.mxu3  ;;  %1437 = vmatmul.f32.gmra.mxu0 %v3616_v31 }
 0x16f   : > { %v1285_v19 = vadd.f32 %v1197_v51, %v1020_v16  ;;  %2217 = vmatpush.msra.mxu0 %v2192_v5  ;;  %v1540_v5 = vld [vmem:[#allocation5 + $0x290] sm:$0xff] }
 0x170   : > { %v935_v62 = vpop.f32.mrf.mxu2  ;;  %1567 = vmatpush.msra.mxu1 %v1540_v5 }
 0x171   : > { %v3623_v17 = vadd.f32 %v1390_v7, %v1285_v19  ;;  %v1021_v44 = vadd.f32 %v935_v62, %v774_v57  ;;  %v3625_v48 = vpop.f32.mrf.mxu1  ;;  %v1805_v57 = vld [vmem:[#allocation5 + $0x310] sm:$0xff] }
 0x172   : > { %1832 = vmatpush.msra.mxu2 %v1805_v57  ;;  %v3640_v62 = vld [vmem:[#allocation2 + $0x121] sm:$0xff]  ;;  %v3652_v57 = vld [vmem:[#allocation2 + $0x129] sm:$0xff] }
 0x173   : > { %1247 = vmatmul.f32.gmra.mxu3 %v3604_v8  ;;  %v1393_v55 = vpop.f32.mrf.mxu0 }
 0x174   : > { %835 = vmatmul.f32.gmra.mxu1 %v3311_v24 }
 0x175   : > { %985 = vmatmul.f32.gmra.mxu2 %v3311_v24  ;;  %v1998_v24 = vld [vmem:[#allocation5 + $0x390] sm:$0xff] }
 0x176   : > { %v1200_v32 = vpop.f32.mrf.mxu3  ;;  %1440 = vmatmul.f32.gmra.mxu0 %v3628_v0  ;;  %2025 = vmatpush.msra.mxu3 %v1998_v24  ;;  %v1539_v24 = vld [vmem:[#allocation5 + $0x288] sm:$0xff] }
 0x177   : > { %v1286_v63 = vadd.f32 %v1200_v32, %v1021_v44  ;;  %1568 = vmatpush.msra.mxu1 %v1539_v24  ;;  %v1997_v24 = vld [vmem:[#allocation5 + $0x388] sm:$0xff] }
 0x178   : > { %v938_v16 = vpop.f32.mrf.mxu2  ;;  %2026 = vmatpush.msra.mxu3 %v1997_v24 }
 0x179   : > { %v3635_v7 = vadd.f32 %v1393_v55, %v1286_v63  ;;  %v1022_v25 = vadd.f32 %v938_v16, %v777_v26  ;;  %v3637_v51 = vpop.f32.mrf.mxu1 }
 0x17b   : > { %1250 = vmatmul.f32.gmra.mxu3 %v3616_v31  ;;  %v1396_v19 = vpop.f32.mrf.mxu0 }
 0x17c   : > { %838 = vmatmul.f32.gmra.mxu1 %v3338_v40 }
 0x17d   : > { %988 = vmatmul.f32.gmra.mxu2 %v3338_v40  ;;  %v2191_v40 = vld [vmem:[#allocation5 + $0x410] sm:$0xff] }
 0x17e   : > { %v1203_v33 = vpop.f32.mrf.mxu3  ;;  %1443 = vmatmul.f32.gmra.mxu0 %v3640_v62 }
 0x17f   : > { %v1287_v44 = vadd.f32 %v1203_v33, %v1022_v25  ;;  %2218 = vmatpush.msra.mxu0 %v2191_v40  ;;  %v3664_v40 = vld [vmem:[#allocation2 + $0x139] sm:$0xff] }
 0x180   : > { %v941_v55 = vpop.f32.mrf.mxu2 }
 0x181   : > { %v3647_v32 = vadd.f32 %v1396_v19, %v1287_v44  ;;  %v1023_v26 = vadd.f32 %v941_v55, %v780_v43  ;;  %v3649_v63 = vpop.f32.mrf.mxu1  ;;  %v1538_v19 = vld [vmem:[#allocation5 + $0x280] sm:$0xff]  ;;  %v1804_v55 = vld [vmem:[#allocation5 + $0x308] sm:$0xff] }
 0x182   : > { %1569 = vmatpush.msra.mxu1 %v1538_v19  ;;  %1833 = vmatpush.msra.mxu2 %v1804_v55  ;;  %v2190_v55 = vld [vmem:[#allocation5 + $0x408] sm:$0xff] }
 0x183   : > { %1253 = vmatmul.f32.gmra.mxu3 %v3628_v0  ;;  %v1399_v16 = vpop.f32.mrf.mxu0  ;;  %2219 = vmatpush.msra.mxu0 %v2190_v55 }
 0x184   : > { %841 = vmatmul.f32.gmra.mxu1 %v3358_v53 }
 0x185   : > { %991 = vmatmul.f32.gmra.mxu2 %v3358_v53 }
 0x186   : > { %v1206_v59 = vpop.f32.mrf.mxu3  ;;  %1446 = vmatmul.f32.gmra.mxu0 %v3652_v57 }
 0x187   : > { %v1288_v25 = vadd.f32 %v1206_v59, %v1023_v26 }
 0x188   : > { %v944_v5 = vpop.f32.mrf.mxu2 }
 0x189   : > { %v3659_v33 = vadd.f32 %v1399_v16, %v1288_v25  ;;  %v1024_v43 = vadd.f32 %v944_v5, %v783_v11  ;;  %v3661_v44 = vpop.f32.mrf.mxu1  ;;  %v786_v16 = vadd.f32 %v3613_v36, %v3432_v1  ;;  %v3676_v5 = vld [vmem:[#allocation2 + $0x141] sm:$0xff] }
 0x18b   : > { %1256 = vmatmul.f32.gmra.mxu3 %v3640_v62  ;;  %v1402_v53 = vpop.f32.mrf.mxu0 }
 0x18c   : > { %844 = vmatmul.f32.gmra.mxu1 %v3374_v2 }
 0x18d   : > { %994 = vmatmul.f32.gmra.mxu2 %v3374_v2 }
 0x18e   : > { %v1209_v22 = vpop.f32.mrf.mxu3  ;;  %1449 = vmatmul.f32.gmra.mxu0 %v3664_v40 }
 0x18f   : > { %v1289_v27 = vadd.f32 %v1209_v22, %v1024_v43  ;;  %v789_v43 = vadd.f32 %v3625_v48, %v3442_v10  ;;  %v1803_v22 = vld [vmem:[#allocation5 + $0x300] sm:$0xff] }
 0x190   : > { %v947_v26 = vpop.f32.mrf.mxu2  ;;  %1834 = vmatpush.msra.mxu2 %v1803_v22  ;;  %v2189_v22 = vld [vmem:[#allocation5 + $0x400] sm:$0xff] }
 0x191   : > { %v3671_v59 = vadd.f32 %v1402_v53, %v1289_v27  ;;  %v3673_v11 = vpop.f32.mrf.mxu1  ;;  %v1025_v25 = vadd.f32 %v947_v26, %v786_v16  ;;  %v3688_v16 = vld [vmem:[#allocation2 + $0x151] sm:$0xff]  ;;  %2220 = vmatpush.msra.mxu0 %v2189_v22 }
 0x193   : > { %1259 = vmatmul.f32.gmra.mxu3 %v3652_v57  ;;  %v1405_v19 = vpop.f32.mrf.mxu0 }
 0x194   : > { %847 = vmatmul.f32.gmra.mxu1 %v3383_v14 }
 0x195   : > { %997 = vmatmul.f32.gmra.mxu2 %v3383_v14  ;;  %v1996_v14 = vld [vmem:[#allocation5 + $0x380] sm:$0xff] }
 0x196   : > { %v1212_v2 = vpop.f32.mrf.mxu3  ;;  %1452 = vmatmul.f32.gmra.mxu0 %v3676_v5  ;;  %2027 = vmatpush.msra.mxu3 %v1996_v14 }
 0x197   : > { %v1290_v1 = vadd.f32 %v1212_v2, %v1025_v25 }
 0x198   : > { %v950_v36 = vpop.f32.mrf.mxu2 }
 0x199   : > { %v3683_v53 = vadd.f32 %v1405_v19, %v1290_v1  ;;  %v3685_v24 = vpop.f32.mrf.mxu1  ;;  %v1026_v27 = vadd.f32 %v950_v36, %v789_v43  ;;  %v792_v19 = vadd.f32 %v3637_v51, %v3456_v21  ;;  %v3700_v43 = vld [vmem:[#allocation2 + $0x159] sm:$0xff] }
 0x19b   : > { %1262 = vmatmul.f32.gmra.mxu3 %v3664_v40  ;;  %v1408_v26 = vpop.f32.mrf.mxu0 }
 0x19c   : > { %850 = vmatmul.f32.gmra.mxu1 %v3393_v23 }
 0x19d   : > { %1000 = vmatmul.f32.gmra.mxu2 %v3393_v23 }
 0x19e   : > { %v1215_v25 = vpop.f32.mrf.mxu3  ;;  %1455 = vmatmul.f32.gmra.mxu0 %v3688_v16 }
 0x19f   : > { %v1291_v10 = vadd.f32 %v1215_v25, %v1026_v27  ;;  %v795_v27 = vadd.f32 %v3649_v63, %v3470_v35  ;;  %v798_v35 = vadd.f32 %v3661_v44, %v3484_v41  ;;  %v801_v41 = vadd.f32 %v3673_v11, %v3440_v9 }
 0x1a0   : > { %v953_v48 = vpop.f32.mrf.mxu2  ;;  %v804_v9 = vadd.f32 %v3685_v24, %v3454_v20 }
 0x1a1   : > { %v3695_v55 = vadd.f32 %v1408_v26, %v1291_v10  ;;  %v3697_v2 = vpop.f32.mrf.mxu1  ;;  %v1027_v1 = vadd.f32 %v953_v48, %v792_v19 }
 0x1a2   : > { %v807_v24 = vadd.f32 %v3697_v2, %v3468_v34 }
 0x1a3   : > { %1265 = vmatmul.f32.gmra.mxu3 %v3676_v5  ;;  %v1411_v36 = vpop.f32.mrf.mxu0 }
 0x1a4   : > { %1570 = vmatmul.f32.vlgmr.msra.gmra.mxu1 %v3416_v49  ;;  %v3712_v49 = vld [vmem:[#allocation2 + $0x169] sm:$0xff] }
 0x1a5   : > { %1003 = vmatmul.f32.gmra.mxu2 %v3400_v30 }
 0x1a6   : > { %v1218_v23 = vpop.f32.mrf.mxu3  ;;  %1458 = vmatmul.f32.gmra.mxu0 %v3700_v43 }
 0x1a7   : > { %v1292_v21 = vadd.f32 %v1218_v23, %v1027_v1 }
 0x1a8   : > { %v956_v51 = vpop.f32.mrf.mxu2 }
 0x1a9   : > { %v3707_v26 = vadd.f32 %v1411_v36, %v1292_v21  ;;  %v3709_v14 = vpop.f32.mrf.mxu1  ;;  %v1028_v25 = vadd.f32 %v956_v51, %v795_v27  ;;  %v493_v36 = vld [vmem:[#allocation2 + $0x198] sm:$0xff] }
 0x1aa   : > { %v810_v34 = vadd.f32 %v3709_v14, %v3482_v39 }
 0x1ab   : > { %1268 = vmatmul.f32.gmra.mxu3 %v3688_v16  ;;  %v1414_v10 = vpop.f32.mrf.mxu0 }
 0x1ac   : > { %1573 = vmatmul.f32.gmra.mxu1 %v3421_v52  ;;  %v3724_v52 = vld [vmem:[#allocation2 + $0x171] sm:$0xff] }
 0x1ad   : > { %1006 = vmatmul.f32.gmra.mxu2 %v3407_v15 }
 0x1ae   : > { %v1221_v30 = vpop.f32.mrf.mxu3  ;;  %1461 = vmatmul.f32.gmra.mxu0 %v3712_v49 }
 0x1af   : > { %v1293_v48 = vadd.f32 %v1221_v30, %v1028_v25  ;;  %v3735_v30 = vld [vmem:[#allocation2 + $0x181] sm:$0xff] }
 0x1b0   : > { %v959_v19 = vpop.f32.mrf.mxu2 }
 0x1b1   : > { %v3719_v63 = vadd.f32 %v1414_v10, %v1293_v48  ;;  %v3721_v1 = vpop.f32.mrf.mxu1  ;;  %v1029_v22 = vadd.f32 %v959_v19, %v798_v35 }
 0x1b3   : > { %1271 = vmatmul.f32.gmra.mxu3 %v3700_v43  ;;  %v1417_v23 = vpop.f32.mrf.mxu0 }
 0x1b4   : > { %1576 = vmatmul.f32.gmra.mxu1 %v3425_v58  ;;  %v2896_v58 = vld [vmem:[#allocation2 + $0x8] sm:$0xff] }
 0x1b5   : > { %1009 = vmatmul.f32.gmra.mxu2 %v493_v36 }
 0x1b6   : > { %v1224_v15 = vpop.f32.mrf.mxu3  ;;  %1464 = vmatmul.f32.gmra.mxu0 %v3724_v52 }
 0x1b7   : > { %v1294_v21 = vadd.f32 %v1224_v15, %v1029_v22  ;;  %v1699_v22 = vld [vmem:[#allocation2 + $0x2] sm:$0xff] }
 0x1b8   : > { %v962_v51 = vpop.f32.mrf.mxu2 }
 0x1b9   : > { %v3730_v44 = vadd.f32 %v1417_v23, %v1294_v21  ;;  %v3732_v27 = vpop.f32.mrf.mxu1  ;;  %v1030_v25 = vadd.f32 %v962_v51, %v801_v41  ;;  %v1701_v41 = vld [vmem:[#allocation2 + $0x1a] sm:$0xff] }
 0x1bb   : > { %1274 = vmatmul.f32.gmra.mxu3 %v3712_v49  ;;  %v1420_v10 = vpop.f32.mrf.mxu0 }
 0x1bc   : > { %1579 = vmatmul.f32.gmra.mxu1 %v3429_v61  ;;  %v3746_v61 = vld [vmem:[#allocation2 + $0x189] sm:$0xff] }
 0x1bd   : > { %1012 = vmatmul.f32.gmra.mxu2 %v2896_v58  ;;  %v1700_v58 = vld [vmem:[#allocation2 + $0xa] sm:$0xff] }
 0x1be   : > { %v1227_v48 = vpop.f32.mrf.mxu3  ;;  %1467 = vmatmul.f32.gmra.mxu0 %v3735_v30 }
 0x1bf   : > { %v1295_v19 = vadd.f32 %v1227_v48, %v1030_v25 }
 0x1c0   : > { %v965_v35 = vpop.f32.mrf.mxu2 }
 0x1c1   : > { %v3741_v11 = vadd.f32 %v1420_v10, %v1295_v19  ;;  %v3743_v36 = vpop.f32.mrf.mxu1  ;;  %v1031_v23 = vadd.f32 %v965_v35, %v804_v9  ;;  %v1703_v35 = vld [vmem:[#allocation2 + $0x32] sm:$0xff] }
 0x1c3   : > { %1277 = vmatmul.f32.gmra.mxu3 %v3724_v52  ;;  %v1423_v15 = vpop.f32.mrf.mxu0 }
 0x1c4   : > { %1582 = vmatmul.f32.gmra.mxu1 %v3435_v3 }
 0x1c5   : > { %1835 = vmatmul.f32.vlgmr.msra.gmra.mxu2 %v1699_v22  ;;  %v1702_v22 = vld [vmem:[#allocation2 + $0x22] sm:$0xff] }
 0x1c6   : > { %v1230_v21 = vpop.f32.mrf.mxu3  ;;  %1470 = vmatmul.f32.gmra.mxu0 %v3746_v61 }
 0x1c7   : > { %v1296_v51 = vadd.f32 %v1230_v21, %v1031_v23 }
 0x1c8   : > { %v968_v20 = vpop.f32.mrf.mxu2 }
 0x1c9   : > { %v3752_v25 = vadd.f32 %v1423_v15, %v1296_v51  ;;  %v3754_v10 = vpop.f32.mrf.mxu1  ;;  %v1032_v48 = vadd.f32 %v968_v20, %v807_v24  ;;  %v1704_v20 = vld [vmem:[#allocation2 + $0x3a] sm:$0xff] }
 0x1cb   : > { %2028 = vmatmul.f32.vlgmr.msra.gmra.mxu3 %v1701_v41  ;;  %v1426_v19 = vpop.f32.mrf.mxu0 }
 0x1cc   : > { %1585 = vmatmul.f32.gmra.mxu1 %v3447_v13 }
 0x1cd   : > { %1838 = vmatmul.f32.gmra.mxu2 %v1700_v58 }
 0x1ce   : > { %v1233_v3 = vpop.f32.mrf.mxu3  ;;  %2221 = vmatmul.f32.vlgmr.msra.gmra.mxu0 %v1703_v35 }
 0x1cf   : > { %v1297_v9 = vadd.f32 %v1233_v3, %v1032_v48  ;;  %v813_v48 = vadd.f32 %v3721_v1, %v3496_v46 }
 0x1d0   : > { %v971_v23 = vpop.f32.mrf.mxu2 }
 0x1d1   : > { %v3759_v2 = vadd.f32 %v1426_v19, %v1297_v9  ;;  %v3761_v15 = vpop.f32.mrf.mxu1  ;;  %v1033_v21 = vadd.f32 %v971_v23, %v810_v34  ;;  %v1705_v9 = vld [vmem:[#allocation2 + $0x4a] sm:$0xff]  ;;  %v816_v34 = vadd.f32 %v3732_v27, %v3508_v60 }
 0x1d3   : > { %2031 = vmatmul.f32.gmra.mxu3 %v1702_v22  ;;  %v1429_v51 = vpop.f32.mrf.mxu0 }
 0x1d4   : > { %1588 = vmatmul.f32.gmra.mxu1 %v3461_v29 }
 0x1d5   : > { %1841 = vmatmul.f32.gmra.mxu2 %v1701_v41 }
 0x1d6   : > { %v1236_v13 = vpop.f32.mrf.mxu3  ;;  %2224 = vmatmul.f32.gmra.mxu0 %v1704_v20 }
 0x1d7   : > { %v1298_v24 = vadd.f32 %v1236_v13, %v1033_v21  ;;  %v1706_v13 = vld [vmem:[#allocation2 + $0x52] sm:$0xff] }
 0x1d8   : > { %v974_v58 = vpop.f32.mrf.mxu2 }
 0x1d9   : > { %v3766_v3 = vadd.f32 %v1429_v51, %v1298_v24  ;;  %v3768_v39 = vpop.f32.mrf.mxu1  ;;  %v1034_v14 = vadd.f32 %v974_v58, %v813_v48  ;;  %v819_v58 = vadd.f32 %v3743_v36, %v3522_v18 }
 0x1db   : > { %2034 = vmatmul.f32.gmra.mxu3 %v1703_v35  ;;  %v1432_v19 = vpop.f32.mrf.mxu0 }
 0x1dc   : > { %1591 = vmatmul.f32.gmra.mxu1 %v3475_v37 }
 0x1dd   : > { %1844 = vmatmul.f32.gmra.mxu2 %v1702_v22 }
 0x1de   : > { %v1239_v29 = vpop.f32.mrf.mxu3  ;;  %2227 = vmatmul.f32.gmra.mxu0 %v1705_v9 }
 0x1df   : > { %v1299_v41 = vadd.f32 %v1239_v29, %v1034_v14 }
 0x1e0   : > { %v977_v23 = vpop.f32.mrf.mxu2 }
 0x1e1   : > { %v3773_v21 = vadd.f32 %v1432_v19, %v1299_v41  ;;  %v3775_v46 = vpop.f32.mrf.mxu1  ;;  %v1035_v1 = vadd.f32 %v977_v23, %v816_v34  ;;  %v1707_v19 = vld [vmem:[#allocation2 + $0x62] sm:$0xff]  ;;  %v822_v41 = vadd.f32 %v3754_v10, %v3536_v47 }
 0x1e3   : > { %2037 = vmatmul.f32.gmra.mxu3 %v1704_v20  ;;  %v1435_v51 = vpop.f32.mrf.mxu0 }
 0x1e4   : > { %1594 = vmatmul.f32.gmra.mxu1 %v3489_v45 }
 0x1e5   : > { %1847 = vmatmul.f32.gmra.mxu2 %v1703_v35 }
 0x1e6   : > { %v1242_v37 = vpop.f32.mrf.mxu3  ;;  %2230 = vmatmul.f32.gmra.mxu0 %v1706_v13 }
 0x1e7   : > { %v1300_v22 = vadd.f32 %v1242_v37, %v1035_v1  ;;  %v1708_v1 = vld [vmem:[#allocation2 + $0x6a] sm:$0xff]  ;;  %v4587_v37 = vld [vmem:[#allocation21_spill] sm:$0xff] }
 0x1e8   : > { %v980_v24 = vpop.f32.mrf.mxu2 }
 0x1e9   : > { %v3780_v48 = vadd.f32 %v1435_v51, %v1300_v22  ;;  %v3782_v60 = vpop.f32.mrf.mxu1  ;;  %v1036_v27 = vadd.f32 %v980_v24, %v819_v58  ;;  %v825_v22 = vadd.f32 %v3761_v15, %v4587_v37 }
 0x1eb   : > { %2040 = vmatmul.f32.gmra.mxu3 %v1705_v9  ;;  %v1438_v14 = vpop.f32.mrf.mxu0 }
 0x1ec   : > { %1597 = vmatmul.f32.gmra.mxu1 %v3501_v56 }
 0x1ed   : > { %1850 = vmatmul.f32.gmra.mxu2 %v1704_v20 }
 0x1ee   : > { %v1245_v45 = vpop.f32.mrf.mxu3  ;;  %2233 = vmatmul.f32.gmra.mxu0 %v1707_v19 }
 0x1ef   : > { %v1301_v35 = vadd.f32 %v1245_v45, %v1036_v27  ;;  %v1709_v27 = vld [vmem:[#allocation2 + $0x7a] sm:$0xff] }
 0x1f0   : > { %v983_v29 = vpop.f32.mrf.mxu2 }
 0x1f1   : > { %v3787_v23 = vadd.f32 %v1438_v14, %v1301_v35  ;;  %v3789_v18 = vpop.f32.mrf.mxu1  ;;  %v1037_v36 = vadd.f32 %v983_v29, %v822_v41  ;;  %v4588_v14 = vld [vmem:[#allocation17_spill] sm:$0xff]  ;;  %v4589_v35 = vld [vmem:[#allocation11_spill] sm:$0xff] }
 0x1f2   : > { %v828_v29 = vadd.f32 %v3768_v39, %v4589_v35 }
 0x1f3   : > { %2043 = vmatmul.f32.gmra.mxu3 %v1706_v13  ;;  %v1441_v34 = vpop.f32.mrf.mxu0 }
 0x1f4   : > { %1600 = vmatmul.f32.gmra.mxu1 %v3515_v6 }
 0x1f5   : > { %1853 = vmatmul.f32.gmra.mxu2 %v1705_v9 }
 0x1f6   : > { %v1248_v56 = vpop.f32.mrf.mxu3  ;;  %2236 = vmatmul.f32.gmra.mxu0 %v1708_v1 }
 0x1f7   : > { %v1302_v20 = vadd.f32 %v1248_v56, %v1037_v36  ;;  %v1710_v56 = vld [vmem:[#allocation2 + $0x82] sm:$0xff] }
 0x1f8   : > { %v986_v51 = vpop.f32.mrf.mxu2 }
 0x1f9   : > { %v3794_v24 = vadd.f32 %v1441_v34, %v1302_v20  ;;  %v3796_v47 = vpop.f32.mrf.mxu1  ;;  %v1038_v10 = vadd.f32 %v986_v51, %v825_v22  ;;  %v4590_v20 = vld [vmem:[#allocation19_spill] sm:$0xff]  ;;  %v4591_v22 = vld [vmem:[#allocation12_spill] sm:$0xff] }
 0x1fb   : > { %2046 = vmatmul.f32.gmra.mxu3 %v1707_v19  ;;  %v1444_v58 = vpop.f32.mrf.mxu0 }
 0x1fc   : > { %1603 = vmatmul.f32.gmra.mxu1 %v4588_v14 }
 0x1fd   : > { %1856 = vmatmul.f32.gmra.mxu2 %v1706_v13 }
 0x1fe   : > { %v1251_v6 = vpop.f32.mrf.mxu3  ;;  %2239 = vmatmul.f32.gmra.mxu0 %v1709_v27 }
 0x1ff   : > { %v1303_v9 = vadd.f32 %v1251_v6, %v1038_v10  ;;  %v831_v10 = vadd.f32 %v3775_v46, %v4591_v22  ;;  %v4593_v22 = vld [vmem:[#allocation14_spill] sm:$0xff] }
 0x200   : > { %v989_v45 = vpop.f32.mrf.mxu2 }
 0x201   : > { %v3801_v41 = vadd.f32 %v1444_v58, %v1303_v9  ;;  %v3803_v15 = vpop.f32.mrf.mxu1  ;;  %v1039_v36 = vadd.f32 %v989_v45, %v828_v29  ;;  %v1711_v9 = vld [vmem:[#allocation2 + $0x92] sm:$0xff]  ;;  %v4592_v29 = vld [vmem:[#allocation13_spill] sm:$0xff] }
 0x203   : > { %2049 = vmatmul.f32.gmra.mxu3 %v1708_v1  ;;  %v1447_v34 = vpop.f32.mrf.mxu0 }
 0x204   : > { %1606 = vmatmul.f32.gmra.mxu1 %v4590_v20 }
 0x205   : > { %1859 = vmatmul.f32.gmra.mxu2 %v1707_v19 }
 0x206   : > { %v1254_v51 = vpop.f32.mrf.mxu3  ;;  %2242 = vmatmul.f32.gmra.mxu0 %v1710_v56 }
 0x207   : > { %v1304_v13 = vadd.f32 %v1254_v51, %v1039_v36  ;;  %v834_v36 = vadd.f32 %v3782_v60, %v4592_v29  ;;  %v4594_v29 = vld [vmem:[#allocation15_spill] sm:$0xff] }
 0x208   : > { %v992_v37 = vpop.f32.mrf.mxu2 }
 0x209   : > { %v3808_v14 = vadd.f32 %v1447_v34, %v1304_v13  ;;  %v3810_v39 = vpop.f32.mrf.mxu1  ;;  %v1040_v58 = vadd.f32 %v992_v37, %v831_v10  ;;  %v1712_v13 = vld [vmem:[#allocation2 + $0x9a] sm:$0xff]  ;;  %v837_v10 = vadd.f32 %v3789_v18, %v4593_v22 }
 0x20a   : > { %v4595_v22 = vld [vmem:[#allocation16_spill] sm:$0xff] }
 0x20b   : > { %2052 = vmatmul.f32.gmra.mxu3 %v1709_v27  ;;  %v1450_v6 = vpop.f32.mrf.mxu0 }
 0x20c   : > { %1609 = vmatmul.f32.gmra.mxu1 %v3557_v54 }
 0x20d   : > { %1862 = vmatmul.f32.gmra.mxu2 %v1708_v1 }
 0x20e   : > { %v1257_v45 = vpop.f32.mrf.mxu3  ;;  %2245 = vmatmul.f32.gmra.mxu0 %v1711_v9 }
 0x20f   : > { %v1305_v19 = vadd.f32 %v1257_v45, %v1040_v58 }
 0x210   : > { %v995_v35 = vpop.f32.mrf.mxu2 }
 0x211   : > { %v3815_v20 = vadd.f32 %v1450_v6, %v1305_v19  ;;  %v3817_v46 = vpop.f32.mrf.mxu1  ;;  %v1041_v34 = vadd.f32 %v995_v35, %v834_v36  ;;  %v1713_v19 = vld [vmem:[#allocation2 + $0xaa] sm:$0xff]  ;;  %v840_v36 = vadd.f32 %v3796_v47, %v4594_v29 }
 0x212   : > { %v4596_v29 = vld [vmem:[#allocation18_spill] sm:$0xff] }
 0x213   : > { %2055 = vmatmul.f32.gmra.mxu3 %v1710_v56  ;;  %v1453_v51 = vpop.f32.mrf.mxu0 }
 0x214   : > { %1612 = vmatmul.f32.gmra.mxu1 %v3568_v38 }
 0x215   : > { %1865 = vmatmul.f32.gmra.mxu2 %v1709_v27 }
 0x216   : > { %v1260_v54 = vpop.f32.mrf.mxu3  ;;  %2248 = vmatmul.f32.gmra.mxu0 %v1712_v13 }
 0x217   : > { %v1306_v1 = vadd.f32 %v1260_v54, %v1041_v34 }
 0x218   : > { %v998_v37 = vpop.f32.mrf.mxu2 }
 0x219   : > { %v3822_v58 = vadd.f32 %v1453_v51, %v1306_v1  ;;  %v3824_v60 = vpop.f32.mrf.mxu1  ;;  %v1042_v6 = vadd.f32 %v998_v37, %v837_v10  ;;  %v1714_v1 = vld [vmem:[#allocation2 + $0xb2] sm:$0xff]  ;;  %v843_v10 = vadd.f32 %v3803_v15, %v4595_v22 }
 0x21a   : > { %v4597_v22 = vld [vmem:[#allocation20_spill] sm:$0xff] }
 0x21b   : > { %2058 = vmatmul.f32.gmra.mxu3 %v1711_v9  ;;  %v1456_v45 = vpop.f32.mrf.mxu0 }
 0x21c   : > { %1615 = vmatmul.f32.gmra.mxu1 %v3580_v42 }
 0x21d   : > { %1868 = vmatmul.f32.gmra.mxu2 %v1710_v56 }
 0x21e   : > { %v1263_v38 = vpop.f32.mrf.mxu3  ;;  %2251 = vmatmul.f32.gmra.mxu0 %v1713_v19 }
 0x21f   : > { %v1307_v27 = vadd.f32 %v1263_v38, %v1042_v6 }
 0x220   : > { %v1001_v35 = vpop.f32.mrf.mxu2 }
 0x221   : > { %v3829_v34 = vadd.f32 %v1456_v45, %v1307_v27  ;;  %v1571_v18 = vpop.f32.mrf.mxu1  ;;  %v1043_v51 = vadd.f32 %v1001_v35, %v840_v36  ;;  %v1715_v27 = vld [vmem:[#allocation2 + $0xc2] sm:$0xff]  ;;  %v846_v36 = vadd.f32 %v3810_v39, %v4596_v29 }
 0x222   : > { %v4598_v29 = vld [vmem:[#allocation22_spill] sm:$0xff] }
 0x223   : > { %2061 = vmatmul.f32.gmra.mxu3 %v1712_v13  ;;  %v1459_v54 = vpop.f32.mrf.mxu0 }
 0x224   : > { %1618 = vmatmul.f32.gmra.mxu1 %v3592_v4 }
 0x225   : > { %1871 = vmatmul.f32.gmra.mxu2 %v1711_v9 }
 0x226   : > { %v1266_v37 = vpop.f32.mrf.mxu3  ;;  %2254 = vmatmul.f32.gmra.mxu0 %v1714_v1 }
 0x227   : > { %v1308_v42 = vadd.f32 %v1266_v37, %v1043_v51 }
 0x228   : > { %v1004_v56 = vpop.f32.mrf.mxu2 }
 0x229   : > { %v3834_v6 = vadd.f32 %v1459_v54, %v1308_v42  ;;  %v3836_v47 = vpop.f32.mrf.mxu1  ;;  %v1044_v45 = vadd.f32 %v1004_v56, %v843_v10  ;;  %v1716_v42 = vld [vmem:[#allocation2 + $0xca] sm:$0xff]  ;;  %v849_v10 = vadd.f32 %v3817_v46, %v4597_v22 }
 0x22b   : > { %2064 = vmatmul.f32.gmra.mxu3 %v1713_v19  ;;  %v1462_v38 = vpop.f32.mrf.mxu0 }
 0x22c   : > { %1621 = vmatmul.f32.gmra.mxu1 %v3604_v8 }
 0x22d   : > { %1874 = vmatmul.f32.gmra.mxu2 %v1712_v13 }
 0x22e   : > { %v1269_v4 = vpop.f32.mrf.mxu3  ;;  %2257 = vmatmul.f32.gmra.mxu0 %v1715_v27 }
 0x22f   : > { %v1309_v9 = vadd.f32 %v1269_v4, %v1044_v45 }
 0x230   : > { %v1007_v35 = vpop.f32.mrf.mxu2 }
 0x231   : > { %v3841_v51 = vadd.f32 %v1462_v38, %v1309_v9  ;;  %v3843_v15 = vpop.f32.mrf.mxu1  ;;  %v1045_v54 = vadd.f32 %v1007_v35, %v846_v36  ;;  %v1717_v9 = vld [vmem:[#allocation2 + $0xda] sm:$0xff]  ;;  %v852_v36 = vadd.f32 %v3824_v60, %v4598_v29 }
 0x233   : > { %2067 = vmatmul.f32.gmra.mxu3 %v1714_v1  ;;  %v1465_v37 = vpop.f32.mrf.mxu0 }
 0x234   : > { %1624 = vmatmul.f32.gmra.mxu1 %v3616_v31 }
 0x235   : > { %1877 = vmatmul.f32.gmra.mxu2 %v1713_v19 }
 0x236   : > { %v1272_v8 = vpop.f32.mrf.mxu3  ;;  %2260 = vmatmul.f32.gmra.mxu0 %v1716_v42 }
 0x237   : > { %v1310_v13 = vadd.f32 %v1272_v8, %v1045_v54 }
 0x238   : > { %v1010_v56 = vpop.f32.mrf.mxu2 }
 0x239   : > { %v3848_v45 = vadd.f32 %v1465_v37, %v1310_v13  ;;  %v3850_v39 = vpop.f32.mrf.mxu1  ;;  %v1046_v38 = vadd.f32 %v1010_v56, %v849_v10  ;;  %v1718_v13 = vld [vmem:[#allocation2 + $0xe2] sm:$0xff] }
 0x23b   : > { %2070 = vmatmul.f32.gmra.mxu3 %v1715_v27  ;;  %v1468_v4 = vpop.f32.mrf.mxu0 }
 0x23c   : > { %1627 = vmatmul.f32.gmra.mxu1 %v3628_v0 }
 0x23d   : > { %1880 = vmatmul.f32.gmra.mxu2 %v1714_v1  ;;  %v4599_v1 = vld [vmem:[#allocation23_spill] sm:$0xff] }
 0x23e   : > { %v1275_v31 = vpop.f32.mrf.mxu3  ;;  %2263 = vmatmul.f32.gmra.mxu0 %v1717_v9  ;;  %v1667_v56 = vadd.f32 %v1571_v18, %v4599_v1  ;;  %v1668_v18 = vadd.f32 %v3836_v47, %v3587_v28  ;;  %v1720_v1 = vld [vmem:[#allocation2 + $0xfa] sm:$0xff] }
 0x23f   : > { %v1311_v19 = vadd.f32 %v1275_v31, %v1046_v38  ;;  %v2539_v31 = vld [vmem:[%s4548_s4 + $0x78] sm:$0xff] }
 0x240   : > { %v1013_v35 = vpop.f32.mrf.mxu2  ;;  %2540 = vmatpush.msrb.mxu1 %v2539_v31 }
 0x241   : > { %v3855_v54 = vadd.f32 %v1468_v4, %v1311_v19  ;;  %v3857_v46 = vpop.f32.mrf.mxu1  ;;  %v1047_v37 = vadd.f32 %v1013_v35, %v852_v36 }
 0x243   : > { %2073 = vmatmul.f32.gmra.mxu3 %v1716_v42  ;;  %v1471_v8 = vpop.f32.mrf.mxu0 }
 0x244   : > { %1630 = vmatmul.f32.gmra.mxu1 %v3640_v62  ;;  %v1719_v62 = vld [vmem:[#allocation2 + $0xf2] sm:$0xff] }
 0x245   : > { %1883 = vmatmul.f32.gmra.mxu2 %v1715_v27 }
 0x246   : > { %v1278_v0 = vpop.f32.mrf.mxu3  ;;  %2266 = vmatmul.f32.gmra.mxu0 %v1718_v13 }
 0x247   : > { %v1312_v22 = vadd.f32 %v1278_v0, %v1047_v37 }
 0x248   : > { %v1836_v10 = vpop.f32.mrf.mxu2 }
 0x249   : > { %v3861_v38 = vadd.f32 %v1471_v8, %v1312_v22  ;;  %v1932_v60 = vadd.f32 %v1836_v10, %v1667_v56  ;;  %v3863_v4 = vpop.f32.mrf.mxu1 }
 0x24b   : > { %2076 = vmatmul.f32.gmra.mxu3 %v1717_v9  ;;  %v2222_v19 = vpop.f32.mrf.mxu0 }
 0x24c   : > { %1633 = vmatmul.f32.gmra.mxu1 %v3652_v57 }
 0x24d   : > { %1886 = vmatmul.f32.gmra.mxu2 %v1716_v42  ;;  %v1669_v42 = vadd.f32 %v3843_v15, %v3599_v12  ;;  %v1670_v12 = vadd.f32 %v3850_v39, %v3611_v50 }
 0x24e   : > { %v2029_v27 = vpop.f32.mrf.mxu3  ;;  %2269 = vmatmul.f32.gmra.mxu0 %v1719_v62 }
 0x24f   : > { %v2125_v35 = vadd.f32 %v2029_v27, %v1932_v60  ;;  %v2538_v60 = vld [vmem:[%s4548_s4 + $0x70] sm:$0xff] }
 0x250   : > { %v1839_v29 = vpop.f32.mrf.mxu2  ;;  %2541 = vmatpush.msrb.mxu1 %v2538_v60 }
 0x251   : > { %v3871_v36 = vadd.f32 %v2222_v19, %v2125_v35  ;;  %v1933_v37 = vadd.f32 %v1839_v29, %v1668_v18  ;;  %v3873_v8 = vpop.f32.mrf.mxu1 }
 0x253   : > { %2079 = vmatmul.f32.gmra.mxu3 %v1718_v13  ;;  %v2225_v0 = vpop.f32.mrf.mxu0 }
 0x254   : > { %1636 = vmatmul.f32.gmra.mxu1 %v3664_v40 }
 0x255   : > { %1889 = vmatmul.f32.gmra.mxu2 %v1717_v9  ;;  %v1721_v9 = vld [vmem:[#allocation2 + $0x10a] sm:$0xff] }
 0x256   : > { %v2032_v57 = vpop.f32.mrf.mxu3  ;;  %2272 = vmatmul.f32.gmra.mxu0 %v1720_v1 }
 0x257   : > { %v2126_v56 = vadd.f32 %v2032_v57, %v1933_v37  ;;  %v1722_v37 = vld [vmem:[#allocation2 + $0x112] sm:$0xff] }
 0x258   : > { %v1842_v28 = vpop.f32.mrf.mxu2 }
 0x259   : > { %v3878_v47 = vadd.f32 %v2225_v0, %v2126_v56  ;;  %v1934_v22 = vadd.f32 %v1842_v28, %v1669_v42  ;;  %v3880_v10 = vpop.f32.mrf.mxu1  ;;  %v2537_v56 = vld [vmem:[%s4548_s4 + $0x68] sm:$0xff] }
 0x25a   : > { %2542 = vmatpush.msrb.mxu1 %v2537_v56 }
 0x25b   : > { %2082 = vmatmul.f32.gmra.mxu3 %v1719_v62  ;;  %v2228_v40 = vpop.f32.mrf.mxu0 }
 0x25c   : > { %1639 = vmatmul.f32.gmra.mxu1 %v3676_v5 }
 0x25d   : > { %1892 = vmatmul.f32.gmra.mxu2 %v1718_v13  ;;  %v1671_v13 = vadd.f32 %v3857_v46, %v3623_v17  ;;  %v1672_v46 = vadd.f32 %v3863_v4, %v3635_v7  ;;  %v1673_v7 = vadd.f32 %v3873_v8, %v3647_v32  ;;  %v1674_v8 = vadd.f32 %v3880_v10, %v3659_v33 }
 0x25e   : > { %v2035_v31 = vpop.f32.mrf.mxu3  ;;  %2275 = vmatmul.f32.gmra.mxu0 %v1721_v9 }
 0x25f   : > { %v2127_v15 = vadd.f32 %v2035_v31, %v1934_v22 }
 0x260   : > { %v1845_v19 = vpop.f32.mrf.mxu2 }
 0x261   : > { %v3888_v27 = vadd.f32 %v2228_v40, %v2127_v15  ;;  %v1935_v18 = vadd.f32 %v1845_v19, %v1670_v12  ;;  %v3890_v35 = vpop.f32.mrf.mxu1  ;;  %v1724_v19 = vld [vmem:[#allocation2 + $0x12a] sm:$0xff] }
 0x262   : > { %v1675_v33 = vadd.f32 %v3890_v35, %v3671_v59 }
 0x263   : > { %2085 = vmatmul.f32.gmra.mxu3 %v1720_v1  ;;  %v2231_v29 = vpop.f32.mrf.mxu0 }
 0x264   : > { %1642 = vmatmul.f32.gmra.mxu1 %v3688_v16 }
 0x265   : > { %1895 = vmatmul.f32.gmra.mxu2 %v1719_v62  ;;  %v1723_v62 = vld [vmem:[#allocation2 + $0x122] sm:$0xff] }
 0x266   : > { %v2038_v5 = vpop.f32.mrf.mxu3  ;;  %2278 = vmatmul.f32.gmra.mxu0 %v1722_v37 }
 0x267   : > { %v2128_v0 = vadd.f32 %v2038_v5, %v1935_v18 }
 0x268   : > { %v1848_v50 = vpop.f32.mrf.mxu2 }
 0x269   : > { %v3895_v39 = vadd.f32 %v2231_v29, %v2128_v0  ;;  %v1936_v57 = vadd.f32 %v1848_v50, %v1671_v13  ;;  %v1598_v42 = vpop.f32.mrf.mxu1 }
 0x26a   : > { %v3901_v28 = vadd.f32 %v1598_v42, %v3683_v53 }
 0x26b   : > { %2088 = vmatmul.f32.gmra.mxu3 %v1721_v9  ;;  %v2234_v16 = vpop.f32.mrf.mxu0 }
 0x26c   : > { %1645 = vmatmul.f32.gmra.mxu1 %v3700_v43 }
 0x26d   : > { %1898 = vmatmul.f32.gmra.mxu2 %v1720_v1 }
 0x26e   : > { %v2041_v17 = vpop.f32.mrf.mxu3  ;;  %2281 = vmatmul.f32.gmra.mxu0 %v1723_v62 }
 0x26f   : > { %v2129_v22 = vadd.f32 %v2041_v17, %v1936_v57  ;;  %v1726_v17 = vld [vmem:[#allocation2 + $0x142] sm:$0xff] }
 0x270   : > { %v1851_v60 = vpop.f32.mrf.mxu2 }
 0x271   : > { %v3906_v40 = vadd.f32 %v2234_v16, %v2129_v22  ;;  %v1937_v31 = vadd.f32 %v1851_v60, %v1672_v46  ;;  %v1601_v12 = vpop.f32.mrf.mxu1 }
 0x272   : > { %v3909_v53 = vadd.f32 %v1601_v12, %v3695_v55  ;;  %v2536_v55 = vld [vmem:[%s4548_s4 + $0x60] sm:$0xff] }
 0x273   : > { %2091 = vmatmul.f32.gmra.mxu3 %v1722_v37  ;;  %v2237_v15 = vpop.f32.mrf.mxu0  ;;  %2543 = vmatpush.msrb.mxu1 %v2536_v55 }
 0x274   : > { %1648 = vmatmul.f32.gmra.mxu1 %v3712_v49 }
 0x275   : > { %1901 = vmatmul.f32.gmra.mxu2 %v1721_v9  ;;  %v1725_v9 = vld [vmem:[#allocation2 + $0x13a] sm:$0xff] }
 0x276   : > { %v2044_v43 = vpop.f32.mrf.mxu3  ;;  %2284 = vmatmul.f32.gmra.mxu0 %v1724_v19 }
 0x277   : > { %v2130_v4 = vadd.f32 %v2044_v43, %v1937_v31 }
 0x278   : > { %v1854_v1 = vpop.f32.mrf.mxu2 }
 0x279   : > { %v3914_v18 = vadd.f32 %v2237_v15, %v2130_v4  ;;  %v1938_v29 = vadd.f32 %v1854_v1, %v1673_v7  ;;  %v1604_v5 = vpop.f32.mrf.mxu1  ;;  %v1082_v4 = vld [vmem:[#allocation2 + $0x199] sm:$0xff] }
 0x27a   : > { %v3920_v13 = vadd.f32 %v1604_v5, %v3707_v26 }
 0x27b   : > { %2094 = vmatmul.f32.gmra.mxu3 %v1723_v62  ;;  %v2240_v49 = vpop.f32.mrf.mxu0 }
 0x27c   : > { %1651 = vmatmul.f32.gmra.mxu1 %v3724_v52 }
 0x27d   : > { %1904 = vmatmul.f32.gmra.mxu2 %v1722_v37 }
 0x27e   : > { %v2047_v32 = vpop.f32.mrf.mxu3  ;;  %2287 = vmatmul.f32.gmra.mxu0 %v1725_v9 }
 0x27f   : > { %v2131_v0 = vadd.f32 %v2047_v32, %v1938_v29  ;;  %v1728_v29 = vld [vmem:[#allocation2 + $0x15a] sm:$0xff] }
 0x280   : > { %v1857_v50 = vpop.f32.mrf.mxu2 }
 0x281   : > { %v3925_v57 = vadd.f32 %v2240_v49, %v2131_v0  ;;  %v1939_v42 = vadd.f32 %v1857_v50, %v1674_v8  ;;  %v1607_v56 = vpop.f32.mrf.mxu1  ;;  %v1729_v0 = vld [vmem:[#allocation2 + $0x16a] sm:$0xff] }
 0x282   : > { %v3928_v26 = vadd.f32 %v1607_v56, %v3719_v63  ;;  %v2535_v63 = vld [vmem:[%s4548_s4 + $0x58] sm:$0xff] }
 0x283   : > { %2097 = vmatmul.f32.gmra.mxu3 %v1724_v19  ;;  %v2243_v16 = vpop.f32.mrf.mxu0  ;;  %2544 = vmatpush.msrb.mxu1 %v2535_v63 }
 0x284   : > { %1654 = vmatmul.f32.gmra.mxu1 %v3735_v30 }
 0x285   : > { %1907 = vmatmul.f32.gmra.mxu2 %v1723_v62  ;;  %v1727_v62 = vld [vmem:[#allocation2 + $0x152] sm:$0xff] }
 0x286   : > { %v2050_v52 = vpop.f32.mrf.mxu3  ;;  %2290 = vmatmul.f32.gmra.mxu0 %v1726_v17 }
 0x287   : > { %v2132_v10 = vadd.f32 %v2050_v52, %v1939_v42 }
 0x288   : > { %v1860_v37 = vpop.f32.mrf.mxu2 }
 0x289   : > { %v3933_v46 = vadd.f32 %v2243_v16, %v2132_v10  ;;  %v1940_v22 = vadd.f32 %v1860_v37, %v1675_v33  ;;  %v1610_v60 = vpop.f32.mrf.mxu1  ;;  %v1730_v10 = vld [vmem:[#allocation2 + $0x172] sm:$0xff] }
 0x28a   : > { %v3939_v31 = vadd.f32 %v1610_v60, %v3730_v44 }
 0x28b   : > { %2100 = vmatmul.f32.gmra.mxu3 %v1725_v9  ;;  %v2246_v30 = vpop.f32.mrf.mxu0 }
 0x28c   : > { %1657 = vmatmul.f32.gmra.mxu1 %v3746_v61 }
 0x28d   : > { %1910 = vmatmul.f32.gmra.mxu2 %v1724_v19 }
 0x28e   : > { %v2053_v59 = vpop.f32.mrf.mxu3  ;;  %2293 = vmatmul.f32.gmra.mxu0 %v1727_v62 }
 0x28f   : > { %v2133_v35 = vadd.f32 %v2053_v59, %v1940_v22 }
 0x290   : > { %v1863_v12 = vpop.f32.mrf.mxu2 }
 0x291   : > { %v3942_v15 = vadd.f32 %v2246_v30, %v2133_v35  ;;  %v1941_v43 = vadd.f32 %v1863_v12, %v3901_v28  ;;  %v1613_v7 = vpop.f32.mrf.mxu1  ;;  %v1083_v28 = vld [vmem:[#allocation2 + $0x1a1] sm:$0xff] }
 0x292   : > { %v3946_v44 = vadd.f32 %v1613_v7, %v3741_v11  ;;  %v2534_v11 = vld [vmem:[%s4548_s4 + $0x50] sm:$0xff]  ;;  %v1731_v35 = vld [vmem:[#allocation2 + $0x182] sm:$0xff] }
 0x293   : > { %2103 = vmatmul.f32.gmra.mxu3 %v1726_v17  ;;  %v2249_v1 = vpop.f32.mrf.mxu0  ;;  %2545 = vmatpush.msrb.mxu1 %v2534_v11 }
 0x294   : > { %1660 = vmatmul.f32.gmra.mxu1 %v1082_v4 }
 0x295   : > { %1913 = vmatmul.f32.gmra.mxu2 %v1725_v9 }
 0x296   : > { %v2056_v61 = vpop.f32.mrf.mxu3  ;;  %2296 = vmatmul.f32.gmra.mxu0 %v1728_v29 }
 0x297   : > { %v2134_v19 = vadd.f32 %v2056_v61, %v1941_v43 }
 0x298   : > { %v1866_v5 = vpop.f32.mrf.mxu2 }
 0x299   : > { %v3948_v55 = vadd.f32 %v2249_v1, %v2134_v19  ;;  %v1942_v49 = vadd.f32 %v1866_v5, %v3909_v53  ;;  %v1616_v32 = vpop.f32.mrf.mxu1  ;;  %v1732_v19 = vld [vmem:[#allocation2 + $0x18a] sm:$0xff] }
 0x29a   : > { %v3955_v8 = vadd.f32 %v1616_v32, %v3752_v25 }
 0x29b   : > { %2106 = vmatmul.f32.gmra.mxu3 %v1727_v62  ;;  %v2252_v9 = vpop.f32.mrf.mxu0 }
 0x29c   : > { %1663 = vmatmul.f32.gmra.mxu1 %v1083_v28 }
 0x29d   : > { %1916 = vmatmul.f32.gmra.mxu2 %v1726_v17 }
 0x29e   : > { %v2059_v50 = vpop.f32.mrf.mxu3  ;;  %2299 = vmatmul.f32.gmra.mxu0 %v1729_v0 }
 0x29f   : > { %v2135_v42 = vadd.f32 %v2059_v50, %v1942_v49 }
 0x2a0   : > { %v1869_v56 = vpop.f32.mrf.mxu2 }
 0x2a1   : > { %v3957_v53 = vadd.f32 %v2252_v9, %v2135_v42  ;;  %v1943_v16 = vadd.f32 %v1869_v56, %v3920_v13  ;;  %v1619_v52 = vpop.f32.mrf.mxu1  ;;  %v2533_v13 = vld [vmem:[%s4548_s4 + $0x48] sm:$0xff]  ;;  %v1733_v9 = vld [vmem:[#allocation2 + $0x19a] sm:$0xff] }
 0x2a2   : > { %v1683_v33 = vadd.f32 %v1619_v52, %v3759_v2  ;;  %2546 = vmatpush.msrb.mxu1 %v2533_v13 }
 0x2a3   : > { %2109 = vmatmul.f32.gmra.mxu3 %v1728_v29  ;;  %v2255_v25 = vpop.f32.mrf.mxu0 }
 0x2a5   : > { %1919 = vmatmul.f32.gmra.mxu2 %v1727_v62 }
 0x2a6   : > { %v2062_v37 = vpop.f32.mrf.mxu3  ;;  %2302 = vmatmul.f32.gmra.mxu0 %v1730_v10 }
 0x2a7   : > { %v2136_v22 = vadd.f32 %v2062_v37, %v1943_v16  ;;  %v1734_v37 = vld [vmem:[#allocation2 + $0x1a2] sm:$0xff] }
 0x2a8   : > { %v1872_v60 = vpop.f32.mrf.mxu2 }
 0x2a9   : > { %v3961_v17 = vadd.f32 %v2255_v25, %v2136_v22  ;;  %v1944_v63 = vadd.f32 %v1872_v60, %v3928_v26  ;;  %v1622_v30 = vpop.f32.mrf.mxu1 }
 0x2aa   : > { %v1684_v59 = vadd.f32 %v1622_v30, %v3766_v3  ;;  %v2531_v30 = vld [vmem:[%s4548_s4 + $0x38] sm:$0xff] }
 0x2ab   : > { %2112 = vmatmul.f32.gmra.mxu3 %v1729_v0  ;;  %v2258_v2 = vpop.f32.mrf.mxu0 }
 0x2ad   : > { %1922 = vmatmul.f32.gmra.mxu2 %v1728_v29 }
 0x2ae   : > { %v2065_v62 = vpop.f32.mrf.mxu3  ;;  %2305 = vmatmul.f32.gmra.mxu0 %v1731_v35 }
 0x2af   : > { %v2137_v12 = vadd.f32 %v2065_v62, %v1944_v63 }
 0x2b0   : > { %v1875_v43 = vpop.f32.mrf.mxu2 }
 0x2b1   : > { %v3968_v7 = vadd.f32 %v2258_v2, %v2137_v12  ;;  %v1945_v26 = vadd.f32 %v1875_v43, %v3939_v31  ;;  %v1625_v4 = vpop.f32.mrf.mxu1  ;;  %v2532_v31 = vld [vmem:[%s4548_s4 + $0x40] sm:$0xff] }
 0x2b2   : > { %v1685_v1 = vadd.f32 %v1625_v4, %v3773_v21  ;;  %2547 = vmatpush.msrb.mxu1 %v2532_v31 }
 0x2b3   : > { %2115 = vmatmul.f32.gmra.mxu3 %v1730_v10  ;;  %v2261_v61 = vpop.f32.mrf.mxu0 }
 0x2b4   : > { %2548 = vmatpush.msrb.mxu1 %v2531_v30 }
 0x2b5   : > { %1925 = vmatmul.f32.gmra.mxu2 %v1729_v0 }
 0x2b6   : > { %v2068_v3 = vpop.f32.mrf.mxu3  ;;  %2308 = vmatmul.f32.gmra.mxu0 %v1732_v19 }
 0x2b7   : > { %v2138_v5 = vadd.f32 %v2068_v3, %v1945_v26  ;;  %v2530_v3 = vld [vmem:[%s4548_s4 + $0x30] sm:$0xff] }
 0x2b8   : > { %v1878_v49 = vpop.f32.mrf.mxu2  ;;  %2549 = vmatpush.msrb.mxu1 %v2530_v3 }
 0x2b9   : > { %v3972_v29 = vadd.f32 %v2261_v61, %v2138_v5  ;;  %v1946_v32 = vadd.f32 %v1878_v49, %v3946_v44  ;;  %v1628_v28 = vpop.f32.mrf.mxu1 }
 0x2ba   : > { %v1686_v11 = vadd.f32 %v1628_v28, %v3780_v48 }
 0x2bb   : > { %2118 = vmatmul.f32.gmra.mxu3 %v1731_v35  ;;  %v2264_v21 = vpop.f32.mrf.mxu0 }
 0x2bd   : > { %1928 = vmatmul.f32.gmra.mxu2 %v1730_v10 }
 0x2be   : > { %v2071_v0 = vpop.f32.mrf.mxu3  ;;  %2311 = vmatmul.f32.gmra.mxu0 %v1733_v9 }
 0x2bf   : > { %v2139_v50 = vadd.f32 %v2071_v0, %v1946_v32 }
 0x2c0   : > { %v1881_v42 = vpop.f32.mrf.mxu2 }
 0x2c1   : > { %v3979_v56 = vadd.f32 %v2264_v21, %v2139_v50  ;;  %v1947_v44 = vadd.f32 %v1881_v42, %v3955_v8  ;;  %v1631_v16 = vpop.f32.mrf.mxu1 }
 0x2c2   : > { %v1687_v52 = vadd.f32 %v1631_v16, %v3787_v23  ;;  %v2529_v16 = vld [vmem:[%s4548_s4 + $0x28] sm:$0xff] }
 0x2c3   : > { %2121 = vmatmul.f32.gmra.mxu3 %v1732_v19  ;;  %v2267_v25 = vpop.f32.mrf.mxu0  ;;  %2550 = vmatpush.msrb.mxu1 %v2529_v16 }
 0x2c6   : > { %v2074_v48 = vpop.f32.mrf.mxu3  ;;  %2314 = vmatmul.f32.gmra.mxu0 %v1734_v37 }
 0x2c7   : > { %v2140_v22 = vadd.f32 %v2074_v48, %v1947_v44 }
 0x2c8   : > { %v1884_v60 = vpop.f32.mrf.mxu2 }
 0x2c9   : > { %v3983_v63 = vadd.f32 %v2267_v25, %v2140_v22  ;;  %v1948_v10 = vadd.f32 %v1884_v60, %v1683_v33  ;;  %v3990_v61 = vpop.f32.mrf.mxu1 }
 0x2cb   : > { %v2270_v13 = vpop.f32.mrf.mxu0 }
 0x2ce   : > { %v2077_v8 = vpop.f32.mrf.mxu3 }
 0x2cf   : > { %v2141_v2 = vadd.f32 %v2077_v8, %v1948_v10  ;;  %v2528_v8 = vld [vmem:[%s4548_s4 + $0x20] sm:$0xff] }
 0x2d0   : > { %v1887_v35 = vpop.f32.mrf.mxu2  ;;  %2551 = vmatpush.msrb.mxu1 %v2528_v8 }
 0x2d1   : > { %v3988_v23 = vadd.f32 %v2270_v13, %v2141_v2  ;;  %v1949_v62 = vadd.f32 %v1887_v35, %v1684_v59  ;;  %v3999_v21 = vpop.f32.mrf.mxu1 }
 0x2d3   : > { %v2273_v12 = vpop.f32.mrf.mxu0 }
 0x2d6   : > { %v2080_v43 = vpop.f32.mrf.mxu3 }
 0x2d7   : > { %v2142_v26 = vadd.f32 %v2080_v43, %v1949_v62 }
 0x2d8   : > { %v1890_v4 = vpop.f32.mrf.mxu2 }
 0x2d9   : > { %v3992_v19 = vadd.f32 %v2273_v12, %v2142_v26  ;;  %v1950_v33 = vadd.f32 %v1890_v4, %v1685_v1  ;;  %v4006_v37 = vpop.f32.mrf.mxu1  ;;  %v4036_v26 = vld [vmem:[%s4546_s2] ss:$0 sm:$0xff] }
 0x2db   : > { %v2276_v5 = vpop.f32.mrf.mxu0 }
 0x2de   : > { %v2083_v49 = vpop.f32.mrf.mxu3 }
 0x2df   : > { %v2143_v32 = vadd.f32 %v2083_v49, %v1950_v33  ;;  %v2355_v33 = vmul.f32 %v4036_v26, %v3878_v47  ;;  %v4049_v49 = vld [vmem:[%s4547_s3] ss:$0 sm:$0xff] }
 0x2e0   : > { %v1893_v28 = vpop.f32.mrf.mxu2 }
 0x2e1   : > { %v3997_v31 = vadd.f32 %v2276_v5, %v2143_v32  ;;  %v1951_v59 = vadd.f32 %v1893_v28, %v1686_v11  ;;  %v4016_v13 = vpop.f32.mrf.mxu1  ;;  %v2354_v5 = vmul.f32 %v4036_v26, %v3871_v36  ;;  %v2356_v32 = vmul.f32 %v4036_v26, %v3888_v27  ;;  %v2527_v28 = vld [vmem:[%s4548_s4 + $0x18] sm:$0xff] }
 0x2e2   : > { %2552 = vmatpush.msrb.mxu1 %v2527_v28  ;;  %v4057_v47 = vadd.f32 %v4049_v49, %v2355_v33 }
 0x2e3   : > { %v2279_v9 = vpop.f32.mrf.mxu0  ;;  %v4069_v27 = vadd.f32 %v4049_v49, %v2356_v32  ;;  %v2361_v32 = vmul.f32 %v4036_v26, %v3933_v46 }
 0x2e4   : > { %4600 = vst [vmem:[#allocation21_spill] sm:$0xff] %v4057_v47 }
 0x2e5   : > { %4602 = vst [vmem:[#allocation11_spill] sm:$0xff] %v4069_v27 }
 0x2e6   : > { %v2086_v0 = vpop.f32.mrf.mxu3 }
 0x2e7   : > { %v2144_v50 = vadd.f32 %v2086_v0, %v1951_v59  ;;  %v2357_v59 = vmul.f32 %v4036_v26, %v3895_v39  ;;  %v4066_v0 = vadd.f32 %v4049_v49, %v2354_v5  ;;  %v2359_v39 = vmul.f32 %v4036_v26, %v3914_v18 }
 0x2e8   : > { %v1896_v42 = vpop.f32.mrf.mxu2 }
 0x2e9   : > { %v4001_v44 = vadd.f32 %v2279_v9, %v2144_v50  ;;  %v1952_v1 = vadd.f32 %v1896_v42, %v1687_v52  ;;  %v4029_v12 = vpop.f32.mrf.mxu1  ;;  %4601 = vst [vmem:[#allocation17_spill] sm:$0xff] %v4066_v0  ;;  %v2358_v50 = vmul.f32 %v4036_v26, %v3906_v40  ;;  %v4077_v16 = vadd.f32 %v4049_v49, %v2357_v59 }
 0x2ea   : > { %v2360_v40 = vmul.f32 %v4036_v26, %v3925_v57  ;;  %v4096_v18 = vadd.f32 %v4049_v49, %v2359_v39 }
 0x2eb   : > { %v2282_v25 = vpop.f32.mrf.mxu0  ;;  %4603 = vst [vmem:[#allocation19_spill] sm:$0xff] %v4077_v16  ;;  %v4086_v8 = vadd.f32 %v4049_v49, %v2358_v50  ;;  %v4560_v5 = vmax.f32 %v4077_v16, 0.0 }
 0x2ec   : > { %4605 = vst [vmem:[#allocation13_spill] sm:$0xff] %v4096_v18  ;;  %v4106_v50 = vadd.f32 %v4049_v49, %v2360_v40 }
 0x2ed   : > { %4604 = vst [vmem:[#allocation12_spill] sm:$0xff] %v4086_v8  ;;  %v4561_v57 = vmax.f32 %v4086_v8, 0.0 }
 0x2ee   : > { %v2089_v48 = vpop.f32.mrf.mxu3  ;;  %4606 = vst [vmem:[#allocation14_spill] sm:$0xff] %v4106_v50 }
 0x2ef   : > { %v2145_v22 = vadd.f32 %v2089_v48, %v1952_v1  ;;  %v4554_v1 = vmax.f32 %v4057_v47, 0.0  ;;  %v4555_v48 = vmax.f32 %v4066_v0, 0.0  ;;  %v4563_v47 = vmax.f32 %v4096_v18, 0.0 }
 0x2f0   : > { %v4008_v11 = vpop.f32.mrf.mxu2 }
 0x2f1   : > { %v4010_v60 = vadd.f32 %v2282_v25, %v2145_v22  ;;  %v4061_v36 = vpop.f32.mrf.mxu1  ;;  %v4558_v22 = vmax.f32 %v4069_v27, 0.0  ;;  %v2486_v33 = vadd.f32 %v4554_v1, %v4555_v48  ;;  %v2362_v1 = vmul.f32 %v4036_v26, %v3942_v15 }
 0x2f2   : > { %v4118_v27 = vadd.f32 %v4049_v49, %v2361_v32  ;;  %v2526_v32 = vld [vmem:[%s4548_s4 + $0x10] sm:$0xff] }
 0x2f3   : > { %v4012_v10 = vpop.f32.mrf.mxu0  ;;  %v2487_v59 = vadd.f32 %v2486_v33, %v4558_v22  ;;  %v2363_v33 = vmul.f32 %v4036_v26, %v3948_v55  ;;  %v4565_v22 = vmax.f32 %v4106_v50, 0.0  ;;  %v4128_v0 = vadd.f32 %v4049_v49, %v2362_v1  ;;  %2553 = vmatpush.msrb.mxu1 %v2526_v32 }
 0x2f4   : > { %4607 = vst [vmem:[#allocation15_spill] sm:$0xff] %v4118_v27  ;;  %v2365_v1 = vmul.f32 %v4036_v26, %v3961_v17 }
 0x2f5   : > { %v2488_v46 = vadd.f32 %v2487_v59, %v4560_v5  ;;  %v2364_v59 = vmul.f32 %v4036_v26, %v3957_v53  ;;  %v4568_v5 = vmax.f32 %v4118_v27, 0.0  ;;  %v4570_v8 = vmax.f32 %v4128_v0, 0.0 }
 0x2f6   : > { %v4014_v30 = vpop.f32.mrf.mxu3  ;;  %v4159_v18 = vadd.f32 %v4049_v49, %v2365_v1  ;;  %v1688_v1 = vadd.f32 %v3990_v61, %v3794_v24 }
 0x2f7   : > { %v2489_v15 = vadd.f32 %v2488_v46, %v4561_v57  ;;  %v4139_v46 = vadd.f32 %v4049_v49, %v2363_v33  ;;  %v4149_v32 = vadd.f32 %v4049_v49, %v2364_v59 }
 0x2f8   : > { %v4018_v52 = vpop.f32.mrf.mxu2 }
 0x2f9   : > { %v4110_v48 = vpop.f32.mrf.mxu1  ;;  %v2490_v55 = vadd.f32 %v2489_v15, %v4563_v47  ;;  %v2366_v15 = vmul.f32 %v4036_v26, %v3968_v7  ;;  %v4571_v17 = vmax.f32 %v4139_v46, 0.0  ;;  %v2432_v50 = vmax.f32 %v4149_v32, 0.0 }
 0x2fb   : > { %v4023_v2 = vpop.f32.mrf.mxu0  ;;  %v2491_v53 = vadd.f32 %v2490_v55, %v4565_v22  ;;  %v2367_v55 = vmul.f32 %v4036_v26, %v3972_v29  ;;  %v4171_v27 = vadd.f32 %v4049_v49, %v2366_v15  ;;  %v1689_v15 = vadd.f32 %v3999_v21, %v3801_v41 }
 0x2fc   : > { %v4608_v41 = vmax.f32 %v4159_v18, 0.0 }
 0x2fd   : > { %v2492_v33 = vadd.f32 %v2491_v53, %v4568_v5  ;;  %v2368_v53 = vmul.f32 %v4036_v26, %v3979_v56  ;;  %v4181_v16 = vadd.f32 %v4049_v49, %v2367_v55  ;;  %v1953_v56 = vadd.f32 %v4008_v11, %v1688_v1 }
 0x2fe   : > { %v4025_v35 = vpop.f32.mrf.mxu3  ;;  %v2434_v61 = vmax.f32 %v4171_v27, 0.0  ;;  %v2370_v55 = vmul.f32 %v4036_v26, %v3988_v23  ;;  %v1691_v23 = vadd.f32 %v4016_v13, %v3815_v20  ;;  %v2372_v20 = vmul.f32 %v4036_v26, %v3997_v31 }
 0x2ff   : > { %v2493_v7 = vadd.f32 %v2492_v33, %v4570_v8  ;;  %v2369_v33 = vmul.f32 %v4036_v26, %v3983_v63  ;;  %v1690_v63 = vadd.f32 %v4006_v37, %v3808_v14  ;;  %v2435_v11 = vmax.f32 %v4181_v16, 0.0 }
 0x300   : > { %v4027_v62 = vpop.f32.mrf.mxu2  ;;  %v2373_v31 = vmul.f32 %v4036_v26, %v4001_v44  ;;  %v2374_v44 = vmul.f32 %v4036_v26, %v4010_v60 }
 0x301   : > { %v4163_v22 = vpop.f32.mrf.mxu1  ;;  %v2494_v29 = vadd.f32 %v2493_v7, %v4571_v17  ;;  %v4194_v7 = vadd.f32 %v4049_v49, %v2368_v53  ;;  %v1954_v17 = vadd.f32 %v4018_v52, %v1689_v15  ;;  %v4205_v1 = vadd.f32 %v4049_v49, %v2369_v33 }
 0x302   : > { %v2371_v53 = vmul.f32 %v4036_v26, %v3992_v19  ;;  %v1955_v14 = vadd.f32 %v4027_v62, %v1690_v63  ;;  %v2525_v19 = vld [vmem:[%s4548_s4 + $0x8] sm:$0xff] }
 0x303   : > { %v4031_v43 = vpop.f32.mrf.mxu0  ;;  %v2495_v24 = vadd.f32 %v2494_v29, %v2432_v50  ;;  %v2146_v29 = vadd.f32 %v4014_v30, %v1953_v56  ;;  %v2436_v15 = vmax.f32 %v4194_v7, 0.0  ;;  %v2147_v30 = vadd.f32 %v4025_v35, %v1954_v17  ;;  %2554 = vmatpush.msrb.mxu1 %v2525_v19 }
 0x304   : > { %v2437_v56 = vmax.f32 %v4205_v1, 0.0  ;;  %v1695_v19 = vadd.f32 %v4163_v22, %v3841_v51 }
 0x305   : > { %v2496_v21 = vadd.f32 %v2495_v24, %v4608_v41  ;;  %v4217_v24 = vadd.f32 %v4049_v49, %v2370_v55  ;;  %v1692_v55 = vadd.f32 %v4029_v12, %v3822_v58  ;;  %v4232_v41 = vadd.f32 %v4049_v49, %v2371_v53 }
 0x306   : > { %v4038_v4 = vpop.f32.mrf.mxu3  ;;  %v2339_v35 = vadd.f32 %v4012_v10, %v2146_v29  ;;  %v4245_v12 = vadd.f32 %v4049_v49, %v2372_v20  ;;  %v2340_v10 = vadd.f32 %v4023_v2, %v2147_v30  ;;  %v4270_v20 = vadd.f32 %v4049_v49, %v2374_v44 }
 0x307   : > { %v2497_v52 = vadd.f32 %v2496_v21, %v2434_v61  ;;  %v2438_v21 = vmax.f32 %v4217_v24, 0.0 }
 0x308   : > { %v4042_v3 = vpop.f32.mrf.mxu2  ;;  %v2375_v60 = vmul.f32 %v4036_v26, %v2339_v35  ;;  %v2376_v30 = vmul.f32 %v4036_v26, %v2340_v10 }
 0x309   : > { %v1658_v33 = vpop.f32.mrf.mxu1  ;;  %v1956_v13 = vadd.f32 %v4042_v3, %v1691_v23  ;;  %v2498_v62 = vadd.f32 %v2497_v52, %v2435_v11  ;;  %v2148_v3 = vadd.f32 %v4038_v4, %v1955_v14  ;;  %v1693_v23 = vadd.f32 %v4061_v36, %v3829_v34 }
 0x30a   : > { %v1694_v14 = vadd.f32 %v4110_v48, %v3834_v6  ;;  %v2439_v36 = vmax.f32 %v4232_v41, 0.0 }
 0x30b   : > { %v4063_v9 = vpop.f32.mrf.mxu0  ;;  %v2499_v17 = vadd.f32 %v2498_v62, %v2436_v15  ;;  %v2341_v2 = vadd.f32 %v4031_v43, %v2148_v3 }
 0x30d   : > { %v2500_v29 = vadd.f32 %v2499_v17, %v2437_v56  ;;  %v2377_v35 = vmul.f32 %v4036_v26, %v2341_v2 }
 0x30e   : > { %v4073_v42 = vpop.f32.mrf.mxu3 }
 0x30f   : > { %v2149_v4 = vadd.f32 %v4073_v42, %v1956_v13  ;;  %v2501_v42 = vadd.f32 %v2500_v29, %v2438_v21  ;;  %v1696_v13 = vadd.f32 %v1658_v33, %v3848_v45 }
 0x310   : > { %v4081_v25 = vpop.f32.mrf.mxu2 }
 0x311   : > { %v1957_v58 = vadd.f32 %v4081_v25, %v1692_v55  ;;  %v4258_v25 = vadd.f32 %v4049_v49, %v2373_v31  ;;  %v2342_v43 = vadd.f32 %v4063_v9, %v2149_v4  ;;  %v1661_v62 = vpop.f32.mrf.mxu1  ;;  %v2502_v22 = vadd.f32 %v2501_v42, %v2439_v36 }
 0x312   : > { %v1697_v29 = vadd.f32 %v1661_v62, %v3855_v54  ;;  %v2524_v54 = vld [vmem:[%s4548_s4] sm:$0xff] }
 0x313   : > { %v4100_v28 = vpop.f32.mrf.mxu0  ;;  %v2378_v33 = vmul.f32 %v4036_v26, %v2342_v43  ;;  %2555 = vmatpush.msrb.mxu1 %v2524_v54 }
 0x315   : > { %v4305_v2 = vadd.f32 %v4049_v49, %v2378_v33 }
 0x316   : > { %v4112_v39 = vpop.f32.mrf.mxu3 }
 0x317   : > { %v2150_v6 = vadd.f32 %v4112_v39, %v1957_v58  ;;  %v2441_v39 = vmax.f32 %v4258_v25, 0.0 }
 0x318   : > { %v4122_v40 = vpop.f32.mrf.mxu2 }
 0x319   : > { %v1958_v34 = vadd.f32 %v4122_v40, %v1693_v23  ;;  %v2440_v40 = vmax.f32 %v4245_v12, 0.0  ;;  %v2343_v3 = vadd.f32 %v4100_v28, %v2150_v6  ;;  %v4296_v28 = vadd.f32 %v4049_v49, %v2377_v35  ;;  %v1664_v43 = vpop.f32.mrf.mxu1 }
 0x31b   : > { %v4143_v57 = vpop.f32.mrf.mxu0  ;;  %v2503_v45 = vadd.f32 %v2502_v22, %v2440_v40  ;;  %v2445_v6 = vmax.f32 %v4296_v28, 0.0 }
 0x31d   : > { %v2504_v10 = vadd.f32 %v2503_v45, %v2441_v39 }
 0x31e   : > { %v4153_v47 = vpop.f32.mrf.mxu3 }
 0x31f   : > { %v2151_v55 = vadd.f32 %v4153_v47, %v1958_v34  ;;  %v2442_v47 = vmax.f32 %v4270_v20, 0.0 }
 0x320   : > { %v4165_v59 = vpop.f32.mrf.mxu2 }
 0x321   : > { %v1959_v48 = vadd.f32 %v4165_v59, %v1694_v14  ;;  %v4280_v59 = vadd.f32 %v4049_v49, %v2375_v60  ;;  %v2344_v58 = vadd.f32 %v4143_v57, %v2151_v55  ;;  %v2379_v14 = vmul.f32 %v4036_v26, %v2343_v3 }
 0x322   : > { %v2505_v57 = vadd.f32 %v2504_v10, %v2442_v47  ;;  %v2446_v55 = vmax.f32 %v4305_v2, 0.0 }
 0x323   : > { %v4185_v8 = vpop.f32.mrf.mxu0 }
 0x326   : > { %v2110_v5 = vpop.f32.mrf.mxu3 }
 0x327   : > { %v2152_v9 = vadd.f32 %v2110_v5, %v1959_v48  ;;  %v2443_v5 = vmax.f32 %v4280_v59, 0.0 }
 0x328   : > { %v1920_v37 = vpop.f32.mrf.mxu2 }
 0x329   : > { %v1960_v31 = vadd.f32 %v1920_v37, %v1695_v19  ;;  %v4288_v37 = vadd.f32 %v4049_v49, %v2376_v30  ;;  %v2345_v34 = vadd.f32 %v4185_v8, %v2152_v9  ;;  %v2506_v8 = vadd.f32 %v2505_v57, %v2443_v5 }
 0x32a   : > { %v4315_v30 = vadd.f32 %v4049_v49, %v2379_v14 }
 0x32b   : > { %v2306_v63 = vpop.f32.mrf.mxu0 }
 0x32e   : > { %v2113_v53 = vpop.f32.mrf.mxu3 }
 0x32f   : > { %v2153_v44 = vadd.f32 %v2113_v53, %v1960_v31  ;;  %v2444_v53 = vmax.f32 %v4288_v37, 0.0 }
 0x330   : > { %v1923_v52 = vpop.f32.mrf.mxu2 }
 0x331   : > { %v1961_v17 = vadd.f32 %v1923_v52, %v1696_v13  ;;  %v2380_v52 = vmul.f32 %v4036_v26, %v2344_v58  ;;  %v2346_v42 = vadd.f32 %v2306_v63, %v2153_v44  ;;  %v2381_v13 = vmul.f32 %v4036_v26, %v2345_v34 }
 0x332   : > { %v2507_v63 = vadd.f32 %v2506_v8, %v2444_v53 }
 0x333   : > { %v2309_v51 = vpop.f32.mrf.mxu0  ;;  %v4322_v22 = vadd.f32 %v4049_v49, %v2380_v52  ;;  %v2382_v35 = vmul.f32 %v4036_v26, %v2346_v42  ;;  %v4330_v33 = vadd.f32 %v4049_v49, %v2381_v13 }
 0x334   : > { %v2508_v9 = vadd.f32 %v2507_v63, %v2445_v6 }
 0x335   : > { %v2448_v10 = vmax.f32 %v4322_v22, 0.0  ;;  %v2449_v34 = vmax.f32 %v4330_v33, 0.0 }
 0x336   : > { %v2116_v23 = vpop.f32.mrf.mxu3  ;;  %v2509_v44 = vadd.f32 %v2508_v9, %v2446_v55 }
 0x337   : > { %v2154_v60 = vadd.f32 %v2116_v23, %v1961_v17  ;;  %v1698_v17 = vadd.f32 %v1664_v43, %v3861_v38 }
 0x338   : > { %v1926_v4 = vpop.f32.mrf.mxu2 }
 0x339   : > { %v1962_v19 = vadd.f32 %v1926_v4, %v1697_v29  ;;  %v2347_v62 = vadd.f32 %v2309_v51, %v2154_v60  ;;  %v2447_v51 = vmax.f32 %v4315_v30, 0.0  ;;  %v4337_v4 = vadd.f32 %v4049_v49, %v2382_v35 }
 0x33b   : > { %v2312_v48 = vpop.f32.mrf.mxu0  ;;  %v2383_v23 = vmul.f32 %v4036_v26, %v2347_v62  ;;  %v2510_v14 = vadd.f32 %v2509_v44, %v2447_v51 }
 0x33d   : > { %v4344_v60 = vadd.f32 %v4049_v49, %v2383_v23  ;;  %v2511_v42 = vadd.f32 %v2510_v14, %v2448_v10 }
 0x33e   : > { %v2119_v31 = vpop.f32.mrf.mxu3 }
 0x33f   : > { %v2155_v3 = vadd.f32 %v2119_v31, %v1962_v19  ;;  %v2450_v19 = vmax.f32 %v4337_v4, 0.0  ;;  %v2451_v43 = vmax.f32 %v4344_v60, 0.0 }
 0x340   : > { %v1929_v45 = vpop.f32.mrf.mxu2 }
 0x341   : > { %v2348_v58 = vadd.f32 %v2312_v48, %v2155_v3  ;;  %v1963_v38 = vadd.f32 %v1929_v45, %v1698_v17  ;;  %v2512_v48 = vadd.f32 %v2511_v42, %v2449_v34 }
 0x343   : > { %v2384_v29 = vmul.f32 %v4036_v26, %v2348_v58  ;;  %v2315_v52 = vpop.f32.mrf.mxu0  ;;  %v2513_v62 = vadd.f32 %v2512_v48, %v2450_v19 }
 0x345   : > { %v4350_v54 = vadd.f32 %v4049_v49, %v2384_v29  ;;  %v2514_v35 = vadd.f32 %v2513_v62, %v2451_v43 }
 0x346   : > { %v2122_v57 = vpop.f32.mrf.mxu3 }
 0x347   : > { %v2156_v8 = vadd.f32 %v2122_v57, %v1963_v38  ;;  %v2452_v63 = vmax.f32 %v4350_v54, 0.0 }
 0x349   : > { %v2349_v13 = vadd.f32 %v2315_v52, %v2156_v8  ;;  %v2515_v9 = vadd.f32 %v2514_v35, %v2452_v63  ;;  %v2562_v52 = vld [vmem:[%s4550_s6] sm:$0x1] }
 0x34b   : > { %v2385_v31 = vmul.f32 %v4036_v26, %v2349_v13 }
 0x34d   : > { %v4362_v3 = vadd.f32 %v4049_v49, %v2385_v31  ;;  %v2560_v49 = vld [vmem:[%s4549_s5] sm:$0x1] }
 0x34f   : > { %v2453_v17 = vmax.f32 %v4362_v3, 0.0 }
 0x351   : > { %v2516_v45 = vadd.f32 %v2515_v9, %v2453_v17 }
 0x353   : > { %v2517_v23 = vrot.slane %v2516_v45, 4 }
 0x355   : > { %v2518_v58 = vadd.f32 %v2517_v23, %v2516_v45 }
 0x357   : > { %v2519_v44 = vrot.slane %v2518_v58, 2 }
 0x359   : > { %v2520_v29 = vadd.f32 %v2519_v44, %v2518_v58 }
 0x35b   : > { %v2521_v38 = vrot.slane %v2520_v29, 1 }
 0x35d   : > { %v2522_v26 = vadd.f32 %v2521_v38, %v2520_v29 }
 0x35f   : > { %v2523_v14 = vmul.f32 0.00390625, %v2522_v26 }
 0x361   : > { %2556 = vmatmul.f32.vlgmr.msrb.gmra.mxu1 %v2523_v14 }
 0x3de   : > { %v2557_v57 = vpop.f32.mrf.mxu1 }
 0x3df   : > { %v2561_v42 = vmul.f32 %v2560_v49, %v2557_v57  ;;  %v4609_v49 = vld [vmem:[#allocation17_spill] sm:$0xff] }
 0x3e0   : > { %v4610_v57 = vmax.f32 %v4609_v49, 0.0  ;;  %v4621_v49 = vld [vmem:[#allocation14_spill] sm:$0xff] }
 0x3e1   : > { %v2563_v8 = vadd.f32 %v2562_v52, %v2561_v42  ;;  %v4611_v42 = vld [vmem:[#allocation21_spill] sm:$0xff] }
 0x3e3   : > { %v2779_v48 = vmul.f32 -1.442695, %v2563_v8  ;;  %v4612_v8 = vmax.f32 %v4611_v42, 0.0 }
 0x3e5   : > { %2892 = vpow2.f32 %v2779_v48 }
 0x3eb   : > { %v2893_v13 = vpop.eup %2892 }
 0x3ec   : > { %v2567_v62 = vadd.f32 1.0, %v2893_v13  ;;  %v4613_v13 = vld [vmem:[#allocation11_spill] sm:$0xff] }
 0x3ee   : > { %2894 = vrcp.f32 %v2567_v62  ;;  %v2579_v45 = vand.u32 2147483648, %v2567_v62  ;;  %v2577_v58 = vand.u32 2147483647, %v2567_v62  ;;  %vm2573_vm4 = vweird.f32 %v2567_v62 }
 0x3f0   : > { %v2580_v29 = vor.u32 1.1754944e-38, %v2579_v45  ;;  %vm2578_vm6 = vcmp.eq.f32.partialorder %v2577_v58, 8.507059e+37 }
 0x3f4   : > { %v2895_v31 = vpop.eup %2894 }
 0x3f5   : > { %v2569_v35 = vmul.f32 %v2895_v31, %v2567_v62  ;;  %vm2574_vm3 = vweird.f32 %v2895_v31 }
 0x3f6   : > { %vm2575_vm5 = vmor %vm2573_vm4, %vm2574_vm3 }
 0x3f7   : > { %v2570_v9 = vsub.f32 1.0, %v2569_v35  ;;  %v4614_v35 = vmax.f32 %v4613_v13, 0.0 }
 0x3f9   : > { %v2571_v23 = vmul.f32 %v2895_v31, %v2570_v9  ;;  %v4615_v9 = vld [vmem:[#allocation19_spill] sm:$0xff] }
 0x3fa   : > { %v4616_v45 = vmax.f32 %v4615_v9, 0.0 }
 0x3fb   : > { %v2572_v44 = vadd.f32 %v2895_v31, %v2571_v23  ;;  %v4617_v23 = vld [vmem:[#allocation12_spill] sm:$0xff] }
 0x3fc   : > { %v4618_v58 = vmax.f32 %v4617_v23, 0.0 }
 0x3fd   : > { %v2576_v38 = vsel %vm2575_vm5, %v2895_v31, %v2572_v44 }
 0x3fe   : > { %v2581_v26 = vsel %vm2578_vm6, %v2580_v29, %v2576_v38  ;;  %v4619_v29 = vld [vmem:[#allocation13_spill] sm:$0xff] }
 0x3ff   : > { %v4378_v14 = vperm.slane %v2581_v26, 0  ;;  %v4620_v38 = vmax.f32 %v4619_v29, 0.0 }
 0x401   : > { %v2616_v52 = vmul.f32 %v4378_v14, %v4610_v57  ;;  %v2617_v48 = vmul.f32 %v4378_v14, %v4612_v8  ;;  %v2618_v62 = vmul.f32 %v4378_v14, %v4614_v35  ;;  %v2619_v31 = vmul.f32 %v4378_v14, %v4616_v45  ;;  %v4623_v8 = vld [vmem:[#allocation15_spill] sm:$0xff] }
 0x402   : > { %v2620_v44 = vmul.f32 %v4378_v14, %v4618_v58  ;;  %v2621_v26 = vmul.f32 %v4378_v14, %v4620_v38  ;;  %v4622_v57 = vmax.f32 %v4621_v49, 0.0  ;;  %v4624_v13 = vmax.f32 %v4623_v8, 0.0 }
 0x403   : > { %2648 = vst [vmem:[%s4395_s8] sm:$0xff] %v2616_v52  ;;  %v4625_v52 = vmax.f32 %v4128_v0, 0.0  ;;  %v2629_v32 = vmul.f32 %v4378_v14, %v2435_v11  ;;  %v2631_v27 = vmul.f32 %v4378_v14, %v2437_v56  ;;  %v2632_v16 = vmul.f32 %v4378_v14, %v2438_v21 }
 0x404   : > { %2649 = vst [vmem:[%s4395_s8 + $0x8] sm:$0xff] %v2617_v48  ;;  %v2622_v42 = vmul.f32 %v4378_v14, %v4622_v57  ;;  %v2623_v35 = vmul.f32 %v4378_v14, %v4624_v13  ;;  %v4626_v48 = vmax.f32 %v4139_v46, 0.0  ;;  %v2628_v46 = vmul.f32 %v4378_v14, %v2434_v61 }
 0x405   : > { %2650 = vst [vmem:[%s4395_s8 + $0x10] sm:$0xff] %v2618_v62  ;;  %v2624_v9 = vmul.f32 %v4378_v14, %v4625_v52  ;;  %v2626_v62 = vmul.f32 %v4378_v14, %v2432_v50  ;;  %v2633_v50 = vmul.f32 %v4378_v14, %v2439_v36  ;;  %v2634_v61 = vmul.f32 %v4378_v14, %v2440_v40 }
 0x406   : > { %2651 = vst [vmem:[%s4395_s8 + $0x18] sm:$0xff] %v2619_v31  ;;  %v2625_v45 = vmul.f32 %v4378_v14, %v4626_v48  ;;  %v4627_v31 = vmax.f32 %v4159_v18, 0.0  ;;  %v2630_v18 = vmul.f32 %v4378_v14, %v2436_v15  ;;  %v2635_v7 = vmul.f32 %v4378_v14, %v2441_v39 }
 0x407   : > { %2652 = vst [vmem:[%s4395_s8 + $0x20] sm:$0xff] %v2620_v44  ;;  %v2636_v11 = vmul.f32 %v4378_v14, %v2442_v47  ;;  %v2637_v1 = vmul.f32 %v4378_v14, %v2443_v5  ;;  %v2638_v15 = vmul.f32 %v4378_v14, %v2444_v53  ;;  %v2639_v24 = vmul.f32 %v4378_v14, %v2445_v6 }
 0x408   : > { %2653 = vst [vmem:[%s4395_s8 + $0x28] sm:$0xff] %v2621_v26  ;;  %v2627_v0 = vmul.f32 %v4378_v14, %v4627_v31  ;;  %v2640_v56 = vmul.f32 %v4378_v14, %v2446_v55  ;;  %v2641_v41 = vmul.f32 %v4378_v14, %v2447_v51  ;;  %v2642_v21 = vmul.f32 %v4378_v14, %v2448_v10 }
 0x409   : > { %2654 = vst [vmem:[%s4395_s8 + $0x30] sm:$0xff] %v2622_v42  ;;  %v2643_v12 = vmul.f32 %v4378_v14, %v2449_v34  ;;  %v2644_v36 = vmul.f32 %v4378_v14, %v2450_v19  ;;  %v2645_v25 = vmul.f32 %v4378_v14, %v2451_v43  ;;  %v2646_v40 = vmul.f32 %v4378_v14, %v2452_v63 }
 0x40a   : > { %2655 = vst [vmem:[%s4395_s8 + $0x38] sm:$0xff] %v2623_v35  ;;  %v2647_v20 = vmul.f32 %v4378_v14, %v2453_v17 }
 0x40b   : > { %2656 = vst [vmem:[%s4395_s8 + $0x40] sm:$0xff] %v2624_v9 }
 0x40c   : > { %2657 = vst [vmem:[%s4395_s8 + $0x48] sm:$0xff] %v2625_v45 }
 0x40d   : > { %2658 = vst [vmem:[%s4395_s8 + $0x50] sm:$0xff] %v2626_v62 }
 0x40e   : > { %2659 = vst [vmem:[%s4395_s8 + $0x58] sm:$0xff] %v2627_v0 }
 0x40f   : > { %2660 = vst [vmem:[%s4395_s8 + $0x60] sm:$0xff] %v2628_v46 }
 0x410   : > { %2661 = vst [vmem:[%s4395_s8 + $0x68] sm:$0xff] %v2629_v32 }
 0x411   : > { %2662 = vst [vmem:[%s4395_s8 + $0x70] sm:$0xff] %v2630_v18 }
 0x412   : > { %2663 = vst [vmem:[%s4395_s8 + $0x78] sm:$0xff] %v2631_v27 }
 0x413   : > { %2664 = vst [vmem:[%s4395_s8 + $0x80] sm:$0xff] %v2632_v16 }
 0x414   : > { %2665 = vst [vmem:[%s4395_s8 + $0x88] sm:$0xff] %v2633_v50 }
 0x415   : > { %2666 = vst [vmem:[%s4395_s8 + $0x90] sm:$0xff] %v2634_v61 }
 0x416   : > { %2667 = vst [vmem:[%s4395_s8 + $0x98] sm:$0xff] %v2635_v7 }
 0x417   : > { %2668 = vst [vmem:[%s4395_s8 + $0xa0] sm:$0xff] %v2636_v11 }
 0x418   : > { %2669 = vst [vmem:[%s4395_s8 + $0xa8] sm:$0xff] %v2637_v1 }
 0x419   : > { %2670 = vst [vmem:[%s4395_s8 + $0xb0] sm:$0xff] %v2638_v15 }
 0x41a   : > { %2671 = vst [vmem:[%s4395_s8 + $0xb8] sm:$0xff] %v2639_v24 }
 0x41b   : > { %2672 = vst [vmem:[%s4395_s8 + $0xc0] sm:$0xff] %v2640_v56 }
 0x41c   : > { %2673 = vst [vmem:[%s4395_s8 + $0xc8] sm:$0xff] %v2641_v41 }
 0x41d   : > { %2674 = vst [vmem:[%s4395_s8 + $0xd0] sm:$0xff] %v2642_v21 }
 0x41e   : > { %2675 = vst [vmem:[%s4395_s8 + $0xd8] sm:$0xff] %v2643_v12 }
 0x41f   : > { %2676 = vst [vmem:[%s4395_s8 + $0xe0] sm:$0xff] %v2644_v36 }
 0x420   : > { %2677 = vst [vmem:[%s4395_s8 + $0xe8] sm:$0xff] %v2645_v25 }
 0x421   : > { %2678 = vst [vmem:[%s4395_s8 + $0xf0] sm:$0xff] %v2646_v40 }
 0x422   : > { %2679 = vst [vmem:[%s4395_s8 + $0xf8] sm:$0xff] %v2647_v20 }
 0x423   : > { %2954 = shalt.err (!%p2951_p8)
}
 0x424   : > { %s2999_s23 = smov 128   ;;  %s3000_s8 = smov 8  }
 0x425   : > { %2839 = dma.vmem_to_hbm [thread:$0]  (%p3079_p5), %s2694_s15, 4096, %s2696_s16, %s2681_s17, %s2999_s23, %s2999_s23, %s3000_s8  }
 0x426 PF: > { %p2851_p9 = scmp.ge.s32.totalorder %s2993_s27, 2  ;;  %s2710_s13 = sand.u32 1, %s2981_s24  }
 0x427   : > { %s2711_s28 = scalar_lea.sflag [#allocation7], %s2710_s13 }
 0x428   : > { %p2846_p10 = pnand %p2851_p9, %p3083_p6 }
 0x42a   : > { %p2847_p11 = pneg %p2846_p10 }
 0x42c   : > { %2976 = dma.done.wait (%p2847_p11), %s2711_s28, 4096  }
 0x42d   : > { %2978 = vsyncadd (%p2847_p11), %s2711_s28, 4294963200  ;;  %p18_p12 = scmp.ge.s32.totalorder %s3066_s30, 4   ;;  %s4628_s24 = smov %s2985_s25 }
 0x42e   : > { %s4629_s25 = smov %s2989_s26  ;;  %s4630_s26 = smov %s3077_s10 }
 0x42f   : > { %s4631_s27 = smov %s3066_s30  ;;  %20 = sbr.rel (!%p18_p12) target bundleno = 4 (0x4), region = 92 }
 0x434   :  { %2717 = vsyncpa [#allocation6], 1 }
 0x435   :  { %2719 = vsyncpa [#allocation6 + $0x1], 1 }
 0x436   :  { %2720 = vsyncpa [#allocation7], 1 }
 0x437   :  { %2722 = vsyncpa [#allocation7 + $0x1], 1 }

</bundles_post_ra>
